<compile_context>
chip_gen: v7x
topology: tpu7x:2x2x1
jax: 0.10.0
libtpu: 0.0.40
codegen_flags: <defaults>
</compile_context>

<pallas_src>
import functools

import jax
import jax.numpy as jnp
from jax.experimental import pallas as pl
from jax.experimental.pallas import tpu as pltpu


def _round_up(x, m):
    return (x + m - 1) // m * m


# ----------------------------------------------------------------------------
# Whitening / coloring (WCT).  The reference snippet references `whitening`
# and `coloring` without providing them; standard Avatar-Net ZCA whitening /
# coloring with eigenvalue clamping is used here.
# TODO(synk): eigendecomposition has no Pallas equivalent -> plain JAX eigh.
# ----------------------------------------------------------------------------
def whitening(feature, eps=1e-5):
    B, C, H, W = feature.shape
    x = feature.reshape(B, C, H * W).astype(jnp.float32)
    mean = x.mean(axis=-1, keepdims=True)
    xc = x - mean
    cov = jnp.einsum("bij,bkj->bik", xc, xc) / (H * W - 1)
    e, v = jnp.linalg.eigh(cov)
    d = jnp.where(e > eps, 1.0 / jnp.sqrt(jnp.maximum(e, eps)), 0.0)
    wm = jnp.einsum("bij,bj,bkj->bik", v, d, v)
    out = jnp.einsum("bij,bjn->bin", wm, xc)
    return out.reshape(B, C, H, W)


def coloring(feature, target, eps=1e-5):
    B, C, H, W = feature.shape
    x = feature.reshape(B, C, H * W).astype(jnp.float32)
    t = target.reshape(B, C, -1).astype(jnp.float32)
    t_mean = t.mean(axis=-1, keepdims=True)
    tc = t - t_mean
    cov = jnp.einsum("bij,bkj->bik", tc, tc) / (tc.shape[-1] - 1)
    e, v = jnp.linalg.eigh(cov)
    d = jnp.where(e > eps, jnp.sqrt(jnp.maximum(e, eps)), 0.0)
    cm = jnp.einsum("bij,bj,bkj->bik", v, d, v)
    out = jnp.einsum("bij,bjn->bin", cm, x) + t_mean
    return out.reshape(B, C, H, W)


# ----------------------------------------------------------------------------
# Patch extraction (same padding, stride 1) -> flat patch matrix.
# Matches torch unfold ordering: K index = c*(ps*ps) + ky*ps + kx.
# TODO(synk): fusing patch extraction into the Pallas kernel (halo'd shifted
#             loads on a VMEM-resident feature tile) left for a future pass.
# ----------------------------------------------------------------------------
def extract_patches_flat(feature, patch_size=3, out_dtype=None):
    B, C, H, W = feature.shape
    pad = (patch_size - 1) // 2
    if out_dtype is not None:
        feature = feature.astype(out_dtype)
    padded = jnp.pad(feature, ((0, 0), (0, 0), (pad, pad), (pad, pad)))
    shifts = [padded[:, :, ky:ky + H, kx:kx + W]
              for ky in range(patch_size) for kx in range(patch_size)]
    patches = jnp.stack(shifts, axis=2)                  # (B, C, ps*ps, H, W)
    patches = jnp.transpose(patches, (0, 3, 4, 1, 2))    # (B, H, W, C, ps*ps)
    return patches.reshape(B, H * W, C * patch_size * patch_size)


def style_patch_inv_norm(style_feature, patch_size=3, eps=1e-8):
    """Per style patch 1/||s||_2, computed without touching the (Ns, K) matrix.

    ||s(y,x)||^2 = 3x3 box-sum (same padding) of sum_c feature^2.
    """
    B, C, H, W = style_feature.shape
    pad = (patch_size - 1) // 2
    sq = jnp.sum(style_feature.astype(jnp.float32) ** 2, axis=1)      # (B,H,W)
    sq_p = jnp.pad(sq, ((0, 0), (pad, pad), (pad, pad)))
    acc = jnp.zeros((B, H, W), jnp.float32)
    for ky in range(patch_size):
        for kx in range(patch_size):
            acc = acc + sq_p[:, ky:ky + H, kx:kx + W]
    norm_sq = acc.reshape(B, H * W)                                   # (B, Ns)
    return jnp.where(norm_sq > 0,
                     jax.lax.rsqrt(jnp.maximum(norm_sq, eps)), 0.0)


# ----------------------------------------------------------------------------
# Pallas kernel: tiled patch matching with online first-max over Ns tiles.
# Per (b, m, n) grid step:
#   scores = (cp_tile @ sp_tile^T) * inv_norm          (bf16 MXU, f32 acc)
#   tile first-index argmax on the f32 scores
#   running-best update of the resident (TM, 1) int32 index block
#   (strict > keeps the earliest style index == torch.argmax tie-break).
# ----------------------------------------------------------------------------
def _match_kernel(cp_ref, sp_ref, inv_ref, idx_ref, best_ref, *, ns_real, tn):
    n = pl.program_id(2)

    @pl.when(n == 0)
    def _():
        best_ref[...] = jnp.full_like(best_ref, -jnp.inf)
        idx_ref[0] = jnp.zeros_like(idx_ref[0])

    cp = cp_ref[0]                                   # (TM, Kp) bf16
    sp = sp_ref[0]                                   # (TN, Kp) bf16
    inv = inv_ref[0]                                 # (1, TN)  f32

    # scores = cp @ sp^T  (transposed contraction; bf16 operands, f32 acc),
    # then per-column normalization by the precomputed 1/||s||.
    scores = jax.lax.dot_general(
        cp, sp,
        dimension_numbers=(((1,), (1,)), ((), ())),
        preferred_element_type=jnp.float32)                      # (TM, TN)
    scores = scores * inv

    # Mask style columns that are pure Ns padding.
    col = jax.lax.broadcasted_iota(jnp.int32, scores.shape, 1)
    global_col = col + n * tn
    scores = jnp.where(global_col < ns_real, scores, -jnp.inf)

    # First-index argmax inside the tile (f32 scores, exact equality).
    tile_max = jnp.max(scores, axis=-1, keepdims=True)           # (TM, 1)
    local_arg = jnp.min(jnp.where(scores == tile_max, col, tn),
                        axis=-1, keepdims=True)                  # (TM, 1)
    global_arg = local_arg + n * tn

    # Online first-max across Ns tiles: strict > keeps the earlier tile.
    better = tile_max > best_ref[...]
    best_ref[...] = jnp.where(better, tile_max, best_ref[...])
    idx_ref[0] = jnp.where(better, global_arg, idx_ref[0])


def patch_match_pallas(content_patches_bf16, style_patches_f32, inv_norm):
    """Returns (B, Nc) int32: argmax style-patch index per content patch."""
    B, Nc, K = content_patches_bf16.shape
    Ns = style_patches_f32.shape[1]

    # Lane-dense K; tiles up to 512, multiples of 16 (bf16 sublane packing).
    Kp = _round_up(K, 128)
    TM = min(512, _round_up(Nc, 16))
    TN = min(512, _round_up(Ns, 16))
    Nc_p = _round_up(Nc, TM)
    Ns_p = _round_up(Ns, TN)

    cp = content_patches_bf16
    if (Nc_p, Kp) != (Nc, K):
        cp = jnp.pad(cp, ((0, 0), (0, Nc_p - Nc), (0, Kp - K)))
    sp = style_patches_f32.astype(jnp.bfloat16)
    if (Ns_p, Kp) != (Ns, K):
        sp = jnp.pad(sp, ((0, 0), (0, Ns_p - Ns), (0, Kp - K)))
    inv = inv_norm
    if Ns_p != Ns:
        inv = jnp.pad(inv, ((0, 0), (0, Ns_p - Ns)))
    inv = inv.reshape(B, 1, Ns_p)

    grid = (B, Nc_p // TM, Ns_p // TN)
    kernel = functools.partial(_match_kernel, ns_real=Ns, tn=TN)

    # TODO(synk): on v5e consider pipeline_mode=pl.Buffered(3) on the sp spec
    #             if DMA remains exposed after the bf16 change.
    idx = pl.pallas_call(
        kernel,
        out_shape=jax.ShapeDtypeStruct((B, Nc_p, 1), jnp.int32),
        grid_spec=pltpu.PrefetchScalarGridSpec(
            num_scalar_prefetch=0,
            grid=grid,
            in_specs=[
                pl.BlockSpec((1, TM, Kp), lambda b, i, n: (b, i, 0)),
                pl.BlockSpec((1, TN, Kp), lambda b, i, n: (b, n, 0)),
                pl.BlockSpec((1, 1, TN), lambda b, i, n: (b, 0, n)),
            ],
            out_specs=pl.BlockSpec((1, TM, 1), lambda b, i, n: (b, i, 0)),
            scratch_shapes=[pltpu.VMEM((TM, 1), jnp.float32)],
        ),
        compiler_params=pltpu.CompilerParams(
            dimension_semantics=("parallel", "parallel", "arbitrary"),
            vmem_limit_bytes=48 * 1024 * 1024),
    )(cp, sp, inv)
    return idx[:, :Nc, 0]


# ----------------------------------------------------------------------------
# Overlap-add of the selected style patches (== conv_transpose2d of the
# one-hot mask with the style kernels).  The deconv normalization mask is
# analytic (coverage counts), not 9 pad+add passes.
# ----------------------------------------------------------------------------
def fold_patches(selected, H, W, C, patch_size=3):
    B = selected.shape[0]
    pad = (patch_size - 1) // 2
    g = selected.reshape(B, H, W, C, patch_size, patch_size)
    out = jnp.zeros((B, C, H + 2 * pad, W + 2 * pad), jnp.float32)
    for ky in range(patch_size):
        for kx in range(patch_size):
            contrib = jnp.transpose(g[:, :, :, :, ky, kx], (0, 3, 1, 2))
            out = out.at[:, :, ky:ky + H, kx:kx + W].add(contrib)
    return out[:, :, pad:pad + H, pad:pad + W]


def deconv_norm_mask(H, W, patch_size=3):
    pad = (patch_size - 1) // 2
    y = jnp.arange(H)
    x = jnp.arange(W)
    ry = jnp.minimum(y + pad, H - 1) - jnp.maximum(y - pad, 0) + 1
    rx = jnp.minimum(x + pad, W - 1) - jnp.maximum(x - pad, 0) + 1
    return (ry[:, None] * rx[None, :]).astype(jnp.float32).reshape(1, 1, H, W)


# ----------------------------------------------------------------------------
# Full StyleDecorator.forward
# ----------------------------------------------------------------------------
@functools.partial(jax.jit, static_argnames=("patch_size", "patch_stride"))
def style_decorator_forward(content_feature, style_feature,
                            style_strength=1.0, patch_size=3, patch_stride=1):
    # TODO(synk): only patch_stride == 1 and odd patch_size (default 3) are
    #             supported; the PyTorch reference allows other strides.
    B, C, H, W = content_feature.shape

    nc = whitening(content_feature)
    nsf = whitening(style_feature)

    # Content patches only feed the bf16 score matmul -> extract directly bf16.
    content_patches = extract_patches_flat(nc, patch_size,
                                           out_dtype=jnp.bfloat16)  # (B,Nc,K)
    # Style patches are also gathered/folded afterwards -> keep f32.
    style_patches = extract_patches_flat(nsf, patch_size)           # (B,Ns,K)
    inv_norm = style_patch_inv_norm(nsf, patch_size)                # (B, Ns)

    # Pallas kernel: per content patch, index of best-matching style patch.
    idx = patch_match_pallas(content_patches, style_patches, inv_norm)

    # Gather the selected (unnormalized, f32) style patches.
    # TODO(synk): could be a scalar-prefetch pl.Element row-gather kernel; XLA
    #             gather reads Nc*K once, same traffic as a kernel would.
    b_ix = jnp.arange(B)[:, None]
    selected = style_patches[b_ix, idx]                             # (B,Nc,K)

    folded = fold_patches(selected, H, W, C, patch_size)
    reassembled = folded / deconv_norm_mask(H, W, patch_size)

    stylized = coloring(reassembled, style_feature)
    return (1.0 - style_strength) * content_feature + style_strength * stylized


if __name__ == "__main__":
    key = jax.random.PRNGKey(0)
    k1, k2 = jax.random.split(key)
    B, C, H, W = 2, 4, 16, 16
    content = jax.random.normal(k1, (B, C, H, W), dtype=jnp.float32)
    style = jax.random.normal(k2, (B, C, H, W), dtype=jnp.float32)

    out = style_decorator_forward(content, style)
    out = jax.block_until_ready(out)
    assert out.shape == (B, C, H, W)
    assert bool(jnp.all(jnp.isfinite(out)))
    print("KERNEL_OK")
</pallas_src>

<mosaic_0001>
module attributes {stable_mosaic.version = 11 : i64} {
  func.func @_match_kernel(%arg0: i32, %arg1: i32, %arg2: i32, %arg3: memref<1x256x128xbf16, #tpu.memory_space<vmem>>, %arg4: memref<1x256x128xbf16, #tpu.memory_space<vmem>>, %arg5: memref<1x1x256xf32, #tpu.memory_space<vmem>>, %arg6: memref<1x256x1xi32, #tpu.memory_space<vmem>>, %arg7: memref<256x1xf32, #tpu.memory_space<vmem>>) attributes {dimension_semantics = [#tpu.dimension_semantics<parallel>, #tpu.dimension_semantics<parallel>, #tpu.dimension_semantics<arbitrary>], iteration_bounds = array<i64: 2, 1, 1>, scalar_prefetch = 0 : i64, scratch_operands = 1 : i64, tpu.core_type = #tpu.core_type<tc>, window_params = [{transform_indices = @transform_0, window_bounds = array<i64: 1, 256, 128>}, {transform_indices = @transform_1, window_bounds = array<i64: 1, 256, 128>}, {transform_indices = @transform_2, window_bounds = array<i64: 1, 1, 256>}, {transform_indices = @transform_3, window_bounds = array<i64: 1, 256, 1>}]} {
    %c0_i32 = arith.constant 0 : i32
    %0 = arith.cmpi eq, %arg2, %c0_i32 : i32
    %1 = arith.extui %0 : i1 to i32
    %c0_i32_0 = arith.constant 0 : i32
    %2 = arith.cmpi ne, %1, %c0_i32_0 : i32
    scf.if %2 {
      %cst_27 = arith.constant 0xFF800000 : f32
      %42 = vector.broadcast %cst_27 : f32 to vector<256x1xf32>
      %c0_28 = arith.constant 0 : index
      %c0_29 = arith.constant 0 : index
      %43 = vector.load %arg7[%c0_28, %c0_29] : memref<256x1xf32, #tpu.memory_space<vmem>>, vector<256x1xf32>
      tpu.vector_store %arg7[%c0_28, %c0_29], %42 {strides = array<i32>} : memref<256x1xf32, #tpu.memory_space<vmem>>, vector<256x1xf32>,
      %c0_i32_30 = arith.constant 0 : i32
      %44 = vector.broadcast %c0_i32_30 : i32 to vector<256x1xi32>
      %c0_31 = arith.constant 0 : index
      %c0_32 = arith.constant 0 : index
      %c0_33 = arith.constant 0 : index
      %45 = vector.load %arg6[%c0_31, %c0_32, %c0_33] : memref<1x256x1xi32, #tpu.memory_space<vmem>>, vector<1x256x1xi32>
      %46 = vector.shape_cast %45 : vector<1x256x1xi32> to vector<256x1xi32>
      %47 = vector.shape_cast %44 : vector<256x1xi32> to vector<1x256x1xi32>
      tpu.vector_store %arg6[%c0_31, %c0_32, %c0_33], %47 {strides = array<i32>} : memref<1x256x1xi32, #tpu.memory_space<vmem>>, vector<1x256x1xi32>,
    } else {
    }
    %c0 = arith.constant 0 : index
    %c0_1 = arith.constant 0 : index
    %c0_2 = arith.constant 0 : index
    %3 = vector.load %arg3[%c0, %c0_1, %c0_2] : memref<1x256x128xbf16, #tpu.memory_space<vmem>>, vector<1x256x128xbf16>
    %4 = vector.shape_cast %3 : vector<1x256x128xbf16> to vector<256x128xbf16>
    %c0_3 = arith.constant 0 : index
    %c0_4 = arith.constant 0 : index
    %c0_5 = arith.constant 0 : index
    %5 = vector.load %arg4[%c0_3, %c0_4, %c0_5] : memref<1x256x128xbf16, #tpu.memory_space<vmem>>, vector<1x256x128xbf16>
    %6 = vector.shape_cast %5 : vector<1x256x128xbf16> to vector<256x128xbf16>
    %c0_6 = arith.constant 0 : index
    %c0_7 = arith.constant 0 : index
    %c0_8 = arith.constant 0 : index
    %7 = vector.load %arg5[%c0_6, %c0_7, %c0_8] : memref<1x1x256xf32, #tpu.memory_space<vmem>>, vector<1x1x256xf32>
    %8 = vector.shape_cast %7 : vector<1x1x256xf32> to vector<1x256xf32>
    %cst = arith.constant dense<0.000000e+00> : vector<256x256xf32>
    %9 = tpu.matmul %4, %6, %cst {dimension_numbers = #tpu.dot_dimension_numbers<[1], [1], [0], [0], [0, 0, 1, 0], [], []>} : vector<256x128xbf16>, vector<256x128xbf16>, vector<256x256xf32> -> vector<256x256xf32>
    %10 = vector.broadcast %8 : vector<1x256xf32> to vector<256x256xf32>
    %11 = arith.mulf %9, %10 : vector<256x256xf32>
    %12 = tpu.iota {dimensions = array<i32: 1>} : vector<256x256xi32>
    %c256_i32 = arith.constant 256 : i32
    %13 = arith.muli %arg2, %c256_i32 : i32
    %14 = vector.broadcast %13 : i32 to vector<256x256xi32>
    %15 = arith.addi %12, %14 : vector<256x256xi32>
    %c256_i32_9 = arith.constant 256 : i32
    %16 = vector.broadcast %c256_i32_9 : i32 to vector<256x256xi32>
    %17 = arith.cmpi slt, %15, %16 : vector<256x256xi32>
    %cst_10 = arith.constant 0xFF800000 : f32
    %18 = vector.broadcast %cst_10 : f32 to vector<256x256xf32>
    %19 = arith.select %17, %11, %18 : vector<256x256xi1>, vector<256x256xf32>
    %cst_11 = arith.constant dense<0xFF800000> : vector<256xf32>
    %20 = vector.multi_reduction <maximumf>, %19, %cst_11 [1] : vector<256x256xf32> to vector<256xf32>
    %21 = vector.shape_cast %20 : vector<256xf32> to vector<256x1xf32>
    %22 = vector.broadcast %21 : vector<256x1xf32> to vector<256x256xf32>
    %23 = arith.cmpf oeq, %19, %22 : vector<256x256xf32>
    %c256_i32_12 = arith.constant 256 : i32
    %24 = vector.broadcast %c256_i32_12 : i32 to vector<256x256xi32>
    %25 = arith.select %23, %12, %24 : vector<256x256xi1>, vector<256x256xi32>
    %cst_13 = arith.constant dense<2147483647> : vector<256xi32>
    %26 = vector.multi_reduction <minsi>, %25, %cst_13 [1] : vector<256x256xi32> to vector<256xi32>
    %27 = vector.shape_cast %26 : vector<256xi32> to vector<256x1xi32>
    %c256_i32_14 = arith.constant 256 : i32
    %28 = arith.muli %arg2, %c256_i32_14 : i32
    %29 = vector.broadcast %28 : i32 to vector<256x1xi32>
    %30 = arith.addi %27, %29 : vector<256x1xi32>
    %c0_15 = arith.constant 0 : index
    %c0_16 = arith.constant 0 : index
    %31 = vector.load %arg7[%c0_15, %c0_16] : memref<256x1xf32, #tpu.memory_space<vmem>>, vector<256x1xf32>
    %32 = arith.cmpf ogt, %21, %31 : vector<256x1xf32>
    %c0_17 = arith.constant 0 : index
    %c0_18 = arith.constant 0 : index
    %33 = vector.load %arg7[%c0_17, %c0_18] : memref<256x1xf32, #tpu.memory_space<vmem>>, vector<256x1xf32>
    %34 = arith.select %32, %21, %33 : vector<256x1xi1>, vector<256x1xf32>
    %c0_19 = arith.constant 0 : index
    %c0_20 = arith.constant 0 : index
    %35 = vector.load %arg7[%c0_19, %c0_20] : memref<256x1xf32, #tpu.memory_space<vmem>>, vector<256x1xf32>
    tpu.vector_store %arg7[%c0_19, %c0_20], %34 {strides = array<i32>} : memref<256x1xf32, #tpu.memory_space<vmem>>, vector<256x1xf32>,
    %c0_21 = arith.constant 0 : index
    %c0_22 = arith.constant 0 : index
    %c0_23 = arith.constant 0 : index
    %36 = vector.load %arg6[%c0_21, %c0_22, %c0_23] : memref<1x256x1xi32, #tpu.memory_space<vmem>>, vector<1x256x1xi32>
    %37 = vector.shape_cast %36 : vector<1x256x1xi32> to vector<256x1xi32>
    %38 = arith.select %32, %30, %37 : vector<256x1xi1>, vector<256x1xi32>
    %c0_24 = arith.constant 0 : index
    %c0_25 = arith.constant 0 : index
    %c0_26 = arith.constant 0 : index
    %39 = vector.load %arg6[%c0_24, %c0_25, %c0_26] : memref<1x256x1xi32, #tpu.memory_space<vmem>>, vector<1x256x1xi32>
    %40 = vector.shape_cast %39 : vector<1x256x1xi32> to vector<256x1xi32>
    %41 = vector.shape_cast %38 : vector<256x1xi32> to vector<1x256x1xi32>
    tpu.vector_store %arg6[%c0_24, %c0_25, %c0_26], %41 {strides = array<i32>} : memref<1x256x1xi32, #tpu.memory_space<vmem>>, vector<1x256x1xi32>,
    return
  }
  func.func @transform_0(%arg0: i32, %arg1: i32, %arg2: i32) -> (i32, i32, i32) {
    %c0_i32 = arith.constant 0 : i32
    %c0_i32_0 = arith.constant 0 : i32
    return %arg0, %arg1, %c0_i32 : i32, i32, i32
  }
  func.func @transform_1(%arg0: i32, %arg1: i32, %arg2: i32) -> (i32, i32, i32) {
    %c0_i32 = arith.constant 0 : i32
    %c0_i32_0 = arith.constant 0 : i32
    return %arg0, %arg2, %c0_i32 : i32, i32, i32
  }
  func.func @transform_2(%arg0: i32, %arg1: i32, %arg2: i32) -> (i32, i32, i32) {
    %c0_i32 = arith.constant 0 : i32
    %c0_i32_0 = arith.constant 0 : i32
    return %arg0, %c0_i32, %arg2 : i32, i32, i32
  }
  func.func @transform_3(%arg0: i32, %arg1: i32, %arg2: i32) -> (i32, i32, i32) {
    %c0_i32 = arith.constant 0 : i32
    %c0_i32_0 = arith.constant 0 : i32
    return %arg0, %arg1, %c0_i32 : i32, i32, i32
  }
}

</mosaic_0001>

<bundles_post_ra>
// kernel: custom-call.5
= control target key start
LH: loop header
LB: loop body
LE: loop exit
PB: predicated region body
PF: predicated region fallthrough
CT: control target
= control target key end

     0   :  { %s1704_s30 = smov 0   ;;  %s1706_s10 = smov 0   ;;  %s2030_s0 = inlined_call_operand.vmem [shape: f32[2,2,2], index: 0, kind: input, shape index: {}]   ;;  %s2031_s1 = inlined_call_operand.vmem [shape: f32[2,2,2], index: 1, kind: input, shape index: {}]   ;;  %s2032_s2 = inlined_call_operand.vmem [shape: f32[2,2,2], index: 2, kind: input, shape index: {}]   ;;  %s2033_s3 = inlined_call_operand.vmem [shape: f32[2,2,2], index: 3, kind: input, shape index: {}]   ;;  %s2034_s4 = inlined_call_operand.vmem [shape: f32[2,2], index: 4, kind: output, shape index: {0}]   ;;  %s2035_s5 = inlined_call_operand.vmem [shape: f32[2,2], index: 5, kind: output, shape index: {1}]   ;;  %s2036_s6 = inlined_call_operand.vmem [shape: f32[2,2,2], index: 6, kind: output, shape index: {2}]   ;;  %s2037_s7 = inlined_call_operand.vmem [shape: f32[2,2,2], index: 7, kind: output, shape index: {3}]   ;;  %s2038_s8 = inlined_call_operand.vmem [shape: f32[2,2,2], index: 8, kind: output, shape index: {4}]   ;;  %s2039_s9 = inlined_call_operand.vmem [shape: f32[2,2,2], index: 9, kind: output, shape index: {5}]  }
   0x1   :  { %s1708_s11 = smov 0  }
   0x2 LB: > { %s1720_s12 = sadd.s32 4294967295, %s1641_s11   ;;  %s1723_s13 = sadd.s32 1, %s1641_s11   ;;  %s1641_s11 = sphi %s1708_s11, %s2058_s11   ;;  %s1637_s10 = sphi %s1706_s10, %s2057_s10   ;;  %s1633_s30 = sphi %s1704_s30, %s2056_s30  }
   0x3   : > { %s20_s14 = sshrl.u32 %s1641_s11, 3  ;;  %s21_s15 = sshrl.u32 %s1723_s13, 3 }
   0x4   : > { %s22_s16 = ssub.s32 %s20_s14, %s21_s15  ;;  %s25_s17 = sadd.s32 1, %s1637_s10 }
   0x5   : > { %p23_p0 = scmp.eq.s32.totalorder %s22_s16, 0  ;;  %p35_p1 = scmp.ne.s32.totalorder %s1637_s10, %s1633_s30 }
   0x6   : > { %p36_p2 = scmp.eq.s32.totalorder %s1720_s12, 1  ;;  %p1502_p4 = scmp.ge.s32.totalorder %s1641_s11, 2 }
   0x7   : > { %s1732_s18 = scalar_select %p23_p0, %s1637_s10, %s25_s17  }
   0x8   : > { %p1734_p3 = por %p36_p2, %p35_p1  ;;  %86 = sbr.rel (%p1502_p4) target bundleno = 17 (0x11), region = 16 }
   0x9   : > { %2040 = sst [smem:[#allocation33_spill]] %s1732_s18  ;;  %s88_s20 = sand.u32 (!%p1502_p4), 1, %s1641_s11  }
   0xa   : > { %s1504_s21 = sshll.u32 (!%p1502_p4), %s1641_s11, 1  ;;  %s1503_s22 = sshll.u32 (!%p1502_p4), %s88_s20, 1 }
   0xb   : > { %s92_s25 = scalar_lea.vmem (!%p1502_p4), %s2030_s0, %s1504_s21  ;;  %s90_s26 = scalar_lea.vmem (!%p1502_p4), [#allocation1], %s1503_s22 }
   0xc   : > { %v108_v0 = vld [vmem:[%s92_s25] sm:$0x3] (!%p1502_p4)  ;;  %s129_s29 = scalar_lea.vmem (!%p1502_p4), %s2031_s1, %s1504_s21  ;;  %s166_s16 = scalar_lea.vmem (!%p1502_p4), %s2032_s2, %s1504_s21 }
   0xd   : > { %109 = vst [vmem:[%s90_s26] sm:$0x3] (!%p1502_p4), %v108_v0  ;;  %v145_v1 = vld [vmem:[%s129_s29] sm:$0x3] (!%p1502_p4)  ;;  %s127_s17 = scalar_lea.vmem (!%p1502_p4), [#allocation3], %s1503_s22  ;;  %s203_s23 = scalar_lea.vmem (!%p1502_p4), %s2033_s3, %s1504_s21 }
   0xe   : > { %146 = vst [vmem:[%s127_s17] sm:$0x3] (!%p1502_p4), %v145_v1  ;;  %v182_v2 = vld [vmem:[%s166_s16] sm:$0x3] (!%p1502_p4)  ;;  %s164_s24 = scalar_lea.vmem (!%p1502_p4), [#allocation5], %s1503_s22  ;;  %s201_s25 = scalar_lea.vmem (!%p1502_p4), [#allocation7], %s1503_s22 }
   0xf   : > { %183 = vst [vmem:[%s164_s24] sm:$0x3] %v182_v2  ;;  %v219_v3 = vld [vmem:[%s203_s23] sm:$0x3] }
  0x10   : > { %220 = vst [vmem:[%s201_s25] sm:$0x3] %v219_v3 }
  0x11 PF: > { %p1511_p5 = scmp.ge.s32.totalorder %s1641_s11, 1  ;;  %p236_p6 = scmp.lt.s32.totalorder %s1641_s11, 3 }
  0x13   : > { %p237_p7 = pnand %p1511_p5, %p236_p6 }
  0x15   : > { %240 = sbr.rel (%p237_p7) target bundleno = 999 (0x3e7), region = 140 }
  0x1c   : > { %s259_s26 = sand.u32 1, %s1720_s12   ;;  %s277_s27 = sand.u32 1, %s1633_s30   ;;  %v337_v4 = vlaneseq  ;;  %v1651_v5 = vmov 0.0  }
  0x1d   : > { %s1757_s28 = sshll.u32 %s259_s26, 1  ;;  %s1759_s18 = sshll.u32 %s277_s27, 1  ;;  %332 = vst [vmem:[#allocation12] sm:$0xff] %v1651_v5  ;;  %333 = vst [vmem:[#allocation14] sm:$0xff] %v1651_v5 }
  0x1e   : > { %334 = vst [vmem:[#allocation16] sm:$0xff] %v1651_v5  ;;  %335 = vst [vmem:[#allocation18] sm:$0xff] %v1651_v5  ;;  %v1761_v6 = vand.u32 127, %v337_v4  ;;  %v1763_v7 = vshrl.u32 %v337_v4, 7  ;;  %s261_s11 = scalar_lea.vmem [#allocation1], %s1757_s28  ;;  %s265_s30 = scalar_lea.vmem [#allocation3], %s1757_s28 }
  0x1f   : > { %v304_v8 = vld [vmem:[%s261_s11] sm:$0x3]  ;;  %v308_v9 = vld [vmem:[%s265_s30] sm:$0x3]  ;;  %s269_s21 = scalar_lea.vmem [#allocation5], %s1757_s28  ;;  %s273_s22 = scalar_lea.vmem [#allocation7], %s1757_s28 }
  0x20   : > { %305 = vst [vmem:[#allocation0] sm:$0x3] %v304_v8  ;;  %309 = vst [vmem:[#allocation2] sm:$0x3] %v308_v9  ;;  %v312_v10 = vld [vmem:[%s269_s21] sm:$0x3]  ;;  %v339_v6 = vmov %v1761_v6  ;;  %v342_v7 = vmov %v1763_v7 }
  0x21   : > { %v316_v11 = vld [vmem:[%s273_s22] sm:$0x3]  ;;  %313 = vst [vmem:[#allocation4] sm:$0x3] %v312_v10  ;;  %v352_v6 = vmov %v1761_v6  ;;  %v355_v7 = vmov %v1763_v7  ;;  %s320_s29 = smov [#allocation20]  ;;  %s323_s14 = smov [#allocation21]  ;;  %vm346_vm0 = vcmp.eq.s32.totalorder %v342_v7, %v339_v6 }
  0x22   : > { %317 = vst [vmem:[#allocation6] sm:$0x3] %v316_v11  ;;  %vm359_vm1 = vcmp.eq.s32.totalorder %v355_v7, %v352_v6  ;;  %s336_s15 = smov [#allocation12]  ;;  %s349_s16 = smov [#allocation18]  ;;  %vm1391_vm2 = vcmp.lt.s32.totalorder %v1761_v6, 2  ;;  %v1383_v6 = vmov %v1761_v6  ;;  %v1386_v7 = vmov %v1763_v7 }
  0x23   : > { %s326_s17 = smov [#allocation22]  ;;  %s329_s20 = smov [#allocation23]  ;;  %vm1396_vm3 = vcmp.eq.s32.totalorder %v1386_v7, %v1383_v6  ;;  %v1434_v6 = vmov %v1761_v6  ;;  %v1403_v7 = vmov %v1763_v7 }
  0x24   : > { %v343_v12 = vld [vmem:[%s336_s15] sm:$0x3]  ;;  %s1387_s30 = smov [#allocation20]  ;;  %s1404_s21 = smov [#allocation21]  ;;  %v1400_v6 = vmov %v1761_v6  ;;  %v1437_v7 = vmov %v1763_v7 }
  0x25   : > { %v356_v13 = vld [vmem:[%s349_s16] sm:$0x3]  ;;  %v347_v16 = vsel %vm346_vm0, 1.0, %v343_v12  ;;  %s1421_s22 = smov [#allocation22]  ;;  %v1417_v6 = vmov %v1761_v6  ;;  %v1420_v7 = vmov %v1763_v7  ;;  %vm1447_vm4 = vcmp.eq.s32.totalorder %v1437_v7, %v1434_v6 }
  0x26   : > { %v360_v17 = vsel %vm359_vm1, 1.0, %v356_v13  ;;  %348 = vst [vmem:[%s336_s15] sm:$0x3] %v347_v16 }
  0x27   : > { %v321_v14 = vld [vmem:[#allocation0] sm:$0xff]  ;;  %v324_v15 = vld [vmem:[#allocation2] sm:$0xff]  ;;  %361 = vst [vmem:[%s349_s16] sm:$0x3] %v360_v17 }
  0x28   : > { %322 = vst [vmem:[%s320_s29] sm:$0xff] %v321_v14  ;;  %325 = vst [vmem:[%s323_s14] sm:$0xff] %v324_v15  ;;  %v327_v18 = vld [vmem:[#allocation4] sm:$0xff]  ;;  %s1438_s29 = smov [#allocation23] }
  0x29   : > { %v330_v19 = vld [vmem:[#allocation6] sm:$0xff]  ;;  %328 = vst [vmem:[%s326_s17] sm:$0xff] %v327_v18 }
  0x2a   : > { %331 = vst [vmem:[%s329_s20] sm:$0xff] %v330_v19 }
  0x2f   : > { %v1393_v20 = vld [vmem:[%s1387_s30] sm:$0x3] }
  0x30   : > { %v1410_v21 = vld [vmem:[%s1404_s21] sm:$0x3]  ;;  %v1394_v22 = vsel %vm1391_vm2, %v1393_v20, 0.0 }
  0x31   : > { %v1411_v23 = vsel %vm1391_vm2, %v1410_v21, 0.0  ;;  %v1427_v24 = vld [vmem:[%s1421_s22] sm:$0x3]  ;;  %v1395_v26 = vmul.f32 %v1394_v22, %v1394_v22 }
  0x32   : > { %v1444_v25 = vld [vmem:[%s1438_s29] sm:$0x3]  ;;  %v1412_v27 = vmul.f32 %v1411_v23, %v1411_v23  ;;  %v1428_v28 = vsel %vm1391_vm2, %v1427_v24, 0.0 }
  0x33   : > { %v1445_v29 = vsel %vm1391_vm2, %v1444_v25, 0.0  ;;  %v1429_v30 = vmul.f32 %v1428_v28, %v1428_v28  ;;  %v1397_v33 = vsel %vm1396_vm3, 0.0, %v1395_v26 }
  0x34   : > { %v1414_v31 = vadd.f32 %v1412_v27, %v1395_v26  ;;  %v1446_v32 = vmul.f32 %v1445_v29, %v1445_v29  ;;  %v1413_v34 = vadd.f32 %v1412_v27, %v1397_v33 }
  0x36   : > { %v1431_v35 = vadd.f32 %v1429_v30, %v1414_v31  ;;  %v1430_v36 = vadd.f32 %v1429_v30, %v1413_v34  ;;  %v1448_v37 = vsel %vm1447_vm4, 0.0, %v1446_v32 }
  0x38   : > { %v1450_v38 = vadd.f32 %v1446_v32, %v1431_v35  ;;  %v1449_v39 = vadd.f32 %v1448_v37, %v1430_v36 }
  0x3a   : > { %1451 = vadd.xlane.f32.xlu0 %v1450_v38 }
  0x3e   : > { %1459 = vadd.xlane.f32.xlu0 %v1449_v39 }
  0xc7   : > { %v1452_v40 = vpop.xlane.xlu0 %1451 }
  0xc8   : > { %v1453_v41 = vrot.slane %v1452_v40, 4 }
  0xca   : > { %v1454_v42 = vadd.f32 %v1453_v41, %v1452_v40 }
  0xcb   : > { %v1460_v43 = vpop.xlane.xlu0 %1459 }
  0xcc   : > { %v1455_v44 = vrot.slane %v1454_v42, 2  ;;  %v1461_v45 = vrot.slane %v1460_v43, 4 }
  0xce   : > { %v1462_v46 = vadd.f32 %v1461_v45, %v1460_v43  ;;  %v1456_v47 = vadd.f32 %v1455_v44, %v1454_v42 }
  0xd0   : > { %v1463_v48 = vrot.slane %v1462_v46, 2  ;;  %v1457_v50 = vrot.slane %v1456_v47, 1 }
  0xd2   : > { %v1464_v49 = vadd.f32 %v1463_v48, %v1462_v46  ;;  %v1458_v53 = vadd.f32 %v1457_v50, %v1456_v47 }
  0xd4   : > { %v1465_v51 = vrot.slane %v1464_v49, 1 }
  0xd6   : > { %v1466_v52 = vadd.f32 %v1465_v51, %v1464_v49 }
  0xd8   : > { %1552 = vpush %v1466_v52 }
  0xd9   : > { %1554 = vpush %v1458_v53 }
 0x109   : > { %s1553_s14 = spop %1552 }
 0x10a   : > { %s1555_s15 = spop %1554 }
 0x10b   : > { %s1469_s16 = smul.f32 1e-10, %s1555_s15 }
 0x10d   : > { %p1470_p8 = scmp.le.f32.partialorder %s1553_s14, %s1469_s16 }
 0x10e   : > { %s1797_s17 = smov (!%p1470_p8), 0  }
 0x10f   : > { %1473 = sbr.rel (%p1470_p8) target bundleno = 953 (0x3b9), region = 467 }
 0x116 LB: >> { %s1802_s20 = smov 0   ;;  %s1645_s17 = sphi %s1797_s17, %s2042_s17  }
 0x117 LB: >>> { %s466_s30 = smov [#allocation20]  ;;  %v470_v6 = vmov %v1761_v6  ;;  %v473_v7 = vmov %v1763_v7  ;;  %s486_s21 = smov [#allocation21]  ;;  %vm789_vm14 = vcmp.eq.s32.totalorder %v1763_v7, 0  ;;  %vm801_vm15 = vcmp.eq.s32.totalorder %v1763_v7, 1  ;;  %s1649_s20 = sphi %s1802_s20, %s465_s20  }
 0x118   : >>> { %v490_v6 = vmov %v1761_v6  ;;  %v493_v7 = vmov %v1763_v7  ;;  %v474_v54 = vld [vmem:[%s466_s30] sm:$0x3]  ;;  %vm477_vm5 = vcmp.eq.s32.totalorder %v473_v7, %v470_v6  ;;  %s506_s22 = smov [#allocation23]  ;;  %s467_s29 = smov [#allocation24] }
 0x119   : >>> { %vm497_vm6 = vcmp.eq.s32.totalorder %v493_v7, %v490_v6  ;;  %v510_v6 = vmov %v1761_v6  ;;  %v513_v7 = vmov %v1763_v7  ;;  %v478_v55 = vsel %vm477_vm5, %v474_v54, 0.0  ;;  %v494_v56 = vld [vmem:[%s486_s21] sm:$0x3]  ;;  %s487_s14 = smov [#allocation25]  ;;  %s507_s15 = smov [#allocation26] }
 0x11a   : >>> { %vm517_vm7 = vcmp.eq.s32.totalorder %v513_v7, %v510_v6  ;;  %v479_v57 = vrot.slane %v478_v55, 4  ;;  %v498_v58 = vsel %vm497_vm6, %v494_v56, 0.0  ;;  %v514_v59 = vld [vmem:[%s506_s22] sm:$0x3]  ;;  %s530_s16 = smov [#allocation25]  ;;  %s528_s30 = smov [#allocation24]  ;;  %v579_v6 = vmov %v1761_v6 }
 0x11b   : >>> { %v499_v60 = vrot.slane %v498_v58, 4  ;;  %v518_v61 = vsel %vm517_vm7, %v514_v59, 0.0  ;;  %s532_s21 = smov [#allocation26]  ;;  %s567_s22 = smov [#allocation27]  ;;  %v582_v7 = vmov %v1763_v7  ;;  %v594_v6 = vmov %v1761_v6 }
 0x11c   : >>> { %v480_v62 = vadd.f32 %v479_v57, %v478_v55  ;;  %v519_v63 = vrot.slane %v518_v61, 4  ;;  %v597_v7 = vmov %v1763_v7  ;;  %vm584_vm12 = vcmp.eq.s32.totalorder %v582_v7, %v579_v6  ;;  %s1821_s24 = smov [#allocation22]  ;;  %s1827_s23 = smov [#allocation14] }
 0x11d   : >>> { %v500_v0 = vadd.f32 %v499_v60, %v498_v58  ;;  %vm599_vm13 = vcmp.eq.s32.totalorder %v597_v7, %v594_v6  ;;  %s829_s11 = smov [#allocation31]  ;;  %s1833_s27 = smov [#allocation18]  ;;  %v615_v55 = vld [vmem:[%s1821_s24] sm:$0x3]  ;;  %v692_v6 = vmov %v1761_v6  ;;  %v695_v7 = vmov %v1763_v7 }
 0x11e   : >>> { %v481_v1 = vrot.slane %v480_v62, 2  ;;  %v520_v2 = vadd.f32 %v519_v63, %v518_v61  ;;  %v838_v58 = vld [vmem:[%s1827_s23] sm:$0x3]  ;;  %s607_s26 = smov [#allocation32]  ;;  %s831_s25 = smov [#allocation32]  ;;  %v706_v6 = vmov %v1761_v6  ;;  %v709_v7 = vmov %v1763_v7 }
 0x11f   : >>> { %v501_v3 = vrot.slane %v500_v0, 2  ;;  %v840_v61 = vld [vmem:[%s1833_s27] sm:$0x3]  ;;  %vm699_vm0 = vcmp.eq.s32.totalorder %v695_v7, %v692_v6  ;;  %v665_v6 = vmov %v1761_v6  ;;  %v668_v7 = vmov %v1763_v7  ;;  %s465_s20 = sadd.s32 1, %s1649_s20  }
 0x120   : >>> { %v482_v4 = vadd.f32 %v481_v1, %v480_v62  ;;  %v521_v5 = vrot.slane %v520_v2, 2  ;;  %v679_v6 = vmov %v1761_v6  ;;  %v682_v7 = vmov %v1763_v7  ;;  %p462_p9 = scmp.ge.s32.totalorder %s465_s20, 3  }
 0x121   : >>> { %v502_v8 = vadd.f32 %v501_v3, %v500_v0  ;;  %vm714_vm1 = vcmp.eq.s32.totalorder %v709_v7, %v706_v6  ;;  %vm673_vm3 = vcmp.eq.s32.totalorder %v668_v7, %v665_v6  ;;  %vm686_vm4 = vcmp.eq.s32.totalorder %v682_v7, %v679_v6 }
 0x122   : >>> { %v483_v9 = vrot.slane %v482_v4, 1  ;;  %v522_v10 = vadd.f32 %v521_v5, %v520_v2  ;;  %vm728_vm5 = vcmp.eq.s32.totalorder %v1761_v6, 0  ;;  %vm732_vm6 = vcmp.eq.s32.totalorder %v1761_v6, 1 }
 0x123   : >>> { %v503_v11 = vrot.slane %v502_v8, 1  ;;  %v366_v6 = vmov (%p462_p9), %v1761_v6  ;;  %v369_v7 = vmov (%p462_p9), %v1763_v7 }
 0x124   : >>> { %v484_v12 = vadd.f32 %v483_v9, %v482_v4  ;;  %v523_v13 = vrot.slane %v522_v10, 1  ;;  %v419_v6 = vmov (%p462_p9), %v1761_v6  ;;  %vm381_vm7 = vcmp.eq.s32.totalorder (%p462_p9), %v369_v7, %v366_v6 }
 0x125   : >>> { %v504_v14 = vadd.f32 %v503_v11, %v502_v8  ;;  %v422_v7 = vmov (%p462_p9), %v1763_v7  ;;  %v385_v6 = vmov (%p462_p9), %v1761_v6 }
 0x126   : >>> { %485 = vst [vmem:[%s467_s29] sm:$0x1] %v484_v12  ;;  %v524_v15 = vadd.f32 %v523_v13, %v522_v10  ;;  %s569_s29 = smov [#allocation28]  ;;  %v388_v7 = vmov (%p462_p9), %v1763_v7  ;;  %v402_v6 = vmov (%p462_p9), %v1761_v6 }
 0x127   : >>> { %505 = vst [vmem:[%s487_s14] sm:$0x1] %v504_v14  ;;  %s526_s14 = smov [#allocation29]  ;;  %v405_v7 = vmov (%p462_p9), %v1763_v7 }
 0x128   : >>> { %525 = vst [vmem:[%s507_s15] sm:$0x1] %v524_v15  ;;  %s527_s15 = smov [#allocation30]  ;;  %s571_s14 = smov %s526_s14 }
 0x129   : >>> { %s573_s15 = smov %s527_s15 }
 0x12d   : >>> { %v529_v18 = vld [vmem:[%s528_s30] sm:$0xff]  ;;  %s590_s30 = smov [#allocation30] }
 0x12e   : >>> { %v531_v16 = vld [vmem:[%s530_s16] sm:$0xff]  ;;  %v552_v31 = vand.u32 2147483647, %v529_v18  ;;  %s575_s16 = smov [#allocation29] }
 0x12f   : >>> { %v535_v17 = vmul.f32 2.0, %v531_v16  ;;  %v533_v19 = vld [vmem:[%s532_s21] sm:$0xff]  ;;  %v553_v36 = vand.u32 2147483647, %v531_v16  ;;  %s588_s21 = smov [#allocation31] }
 0x130   : >>> { %v534_v20 = vsub.f32 %v533_v19, %v529_v18  ;;  %v554_v32 = vand.u32 2147483647, %v533_v19 }
 0x131   : >>> { %1603 = vrcp.f32 %v535_v17 }
 0x132   : >>> { %v555_v35 = vmin.f32 %v552_v31, %v554_v32 }
 0x134   : >>> { %v556_v37 = vmul.f32 1.1920929e-08, %v555_v35 }
 0x136   : >>> { %vm557_vm11 = vcmp.le.f32.partialorder %v553_v36, %v556_v37 }
 0x13b   : >>> { %v1604_v21 = vpop.eup %1603 }
 0x13c   : >>> { %v537_v22 = vmul.f32 %v1604_v21, %v534_v20 }
 0x13e   : >>> { %v539_v23 = vmul.f32 %v537_v22, %v537_v22  ;;  %vm538_vm10 = vcmp.ge.f32.partialorder %v537_v22, 0.0 }
 0x140   : >>> { %v540_v24 = vadd.f32 1.0, %v539_v23 }
 0x142   : >>> { %1605 = vrsqrt.f32 %v540_v24  ;;  %vm543_vm8 = vcmp.eq.f32.partialorder %v540_v24, inf  ;;  %v546_v26 = vand.u32 2147483648, %v540_v24  ;;  %vm545_vm9 = vcmp.eq.f32.partialorder %v540_v24, 0.0 }
 0x14c   : >>> { %v1606_v25 = vpop.eup %1605 }
 0x14d   : >>> { %v542_v27 = vmul.f32 %v1606_v25, %v540_v24 }
 0x14f   : >>> { %v544_v28 = vsel %vm543_vm8, %v540_v24, %v542_v27  ;;  %vm434_vm8 = vcmp.eq.s32.totalorder (%p462_p9), %v422_v7, %v419_v6 }
 0x150   : >>> { %v547_v29 = vsel %vm545_vm9, %v546_v26, %v544_v28 }
 0x151   : >>> { %v548_v30 = vxor.u32 2147483648, %v547_v29 }
 0x153   : >>> { %v549_v33 = vsel %vm538_vm10, %v547_v29, %v548_v30 }
 0x154   : >>> { %v550_v34 = vadd.f32 %v549_v33, %v537_v22 }
 0x156   : >>> { %1607 = vrcp.f32 %v550_v34 }
 0x160   : >>> { %v1608_v38 = vpop.eup %1607 }
 0x161   : >>> { %v558_v39 = vsel %vm557_vm11, 0.0, %v1608_v38 }
 0x162   : >>> { %v559_v40 = vmul.f32 %v558_v39, %v558_v39  ;;  %v563_v41 = vmul.f32 %v558_v39, %v531_v16 }
 0x164   : >>> { %v560_v42 = vadd.f32 1.0, %v559_v40  ;;  %v564_v43 = vsub.f32 %v529_v18, %v563_v41  ;;  %v566_v44 = vadd.f32 %v563_v41, %v533_v19 }
 0x166   : >>> { %1609 = vrsqrt.f32 %v560_v42  ;;  %568 = vst [vmem:[%s567_s22] sm:$0xff] %v564_v43  ;;  %570 = vst [vmem:[%s569_s29] sm:$0xff] %v566_v44  ;;  %s605_s22 = smov [#allocation31]  ;;  %s1817_s29 = smov [#allocation20] }
 0x167   : >>> { %v613_v53 = vld [vmem:[%s1817_s29] sm:$0x3] }
 0x170   : >>> { %v1610_v45 = vpop.eup %1609 }
 0x171   : >>> { %572 = vst [vmem:[%s571_s14] sm:$0xff] %v1610_v45  ;;  %v562_v46 = vmul.f32 %v1610_v45, %v558_v39  ;;  %s603_s14 = smov [#allocation32] }
 0x173   : >>> { %574 = vst [vmem:[%s573_s15] sm:$0xff] %v562_v46  ;;  %s1819_s15 = smov [#allocation21] }
 0x174   : >>> { %v614_v54 = vld [vmem:[%s1819_s15] sm:$0x3] }
 0x178   : >>> { %v576_v47 = vld [vmem:[%s575_s16] ss:$0 sm:$0xff]  ;;  %s1823_s16 = smov [#allocation23] }
 0x179   : >>> { %v585_v48 = vsel %vm584_vm12, %v576_v47, 0.0  ;;  %v616_v56 = vld [vmem:[%s1823_s16] sm:$0x3] }
 0x17a   : >>> { %586 = vadd.xlane.f32.xlu0 %v585_v48  ;;  %v591_v49 = vld [vmem:[%s590_s30] ss:$0 sm:$0xff]  ;;  %s1825_s30 = smov [#allocation12] }
 0x17b   : >>> { %v600_v50 = vsel %vm599_vm13, %v591_v49, 0.0  ;;  %v837_v57 = vld [vmem:[%s1825_s30] sm:$0x3] }
 0x17e   : >>> { %601 = vadd.xlane.f32.xlu0 %v600_v50 }
 0x207   : >>> { %v587_v51 = vpop.xlane.xlu0 %586 }
 0x208   : >>> { %589 = vst [vmem:[%s588_s21] sm:$0xff] %v587_v51  ;;  %s1829_s21 = smov [#allocation16] }
 0x209   : >>> { %v839_v59 = vld [vmem:[%s1829_s21] sm:$0x3] }
 0x20b   : >>> { %v602_v52 = vpop.xlane.xlu0 %601 }
 0x20c   : >>> { %604 = vst [vmem:[%s603_s14] sm:$0xff] %v602_v52  ;;  %s1853_s14 = smov [#allocation23] }
 0x20f   : >>> { %v606_v60 = vld [vmem:[%s605_s22] sm:$0xff]  ;;  %s1851_s22 = smov [#allocation22] }
 0x210   : >>> { %v830_v62 = vld [vmem:[%s829_s11] sm:$0xff]  ;;  %v617_v63 = vmul.f32 %v613_v53, %v606_v60  ;;  %v620_v0 = vmul.f32 %v614_v54, %v606_v60  ;;  %v624_v1 = vmul.f32 %v615_v55, %v606_v60  ;;  %v627_v2 = vmul.f32 %v616_v56, %v606_v60  ;;  %s1849_s11 = smov [#allocation12] }
 0x211   : >>> { %v841_v3 = vmul.f32 %v837_v57, %v830_v62  ;;  %v844_v4 = vmul.f32 %v838_v58, %v830_v62  ;;  %v848_v5 = vmul.f32 %v839_v59, %v830_v62  ;;  %v851_v8 = vmul.f32 %v840_v61, %v830_v62 }
 0x213   : >>> { %v608_v9 = vld [vmem:[%s607_s26] sm:$0xff]  ;;  %s635_s26 = smov [#allocation30] }
 0x214   : >>> { %v832_v10 = vld [vmem:[%s831_s25] sm:$0xff]  ;;  %v618_v11 = vmul.f32 %v615_v55, %v608_v9  ;;  %v621_v12 = vmul.f32 %v616_v56, %v608_v9  ;;  %v623_v13 = vmul.f32 %v613_v53, %v608_v9  ;;  %v626_v14 = vmul.f32 %v614_v54, %v608_v9  ;;  %s633_s25 = smov [#allocation29] }
 0x215   : >>> { %v842_v15 = vmul.f32 %v839_v59, %v832_v10  ;;  %v845_v16 = vmul.f32 %v840_v61, %v832_v10  ;;  %v847_v17 = vmul.f32 %v837_v57, %v832_v10  ;;  %v850_v18 = vmul.f32 %v838_v58, %v832_v10  ;;  %v634_v27 = vld [vmem:[%s633_s25] ss:$0 sm:$0xff]  ;;  %s662_s25 = smov [#allocation27] }
 0x216   : >>> { %v619_v19 = vsub.f32 %v617_v63, %v618_v11  ;;  %v622_v20 = vsub.f32 %v620_v0, %v621_v12  ;;  %v625_v21 = vadd.f32 %v624_v1, %v623_v13  ;;  %v628_v22 = vadd.f32 %v627_v2, %v626_v14  ;;  %v636_v28 = vld [vmem:[%s635_s26] ss:$0 sm:$0xff]  ;;  %s661_s26 = smov [#allocation20] }
 0x217   : >>> { %v843_v23 = vsub.f32 %v841_v3, %v842_v15  ;;  %v846_v24 = vsub.f32 %v844_v4, %v845_v16  ;;  %v849_v25 = vadd.f32 %v848_v5, %v847_v17  ;;  %v852_v26 = vadd.f32 %v851_v8, %v850_v18  ;;  %v669_v63 = vld [vmem:[%s662_s25] ss:$0 sm:$0xff]  ;;  %s905_s25 = sadd.s32 (%p462_p9), 1, %s1645_s17  }
 0x218   : >>> { %630 = vst [vmem:[%s1819_s15] sm:$0x3] %v622_v20  ;;  %632 = vst [vmem:[%s1823_s16] sm:$0x3] %v628_v22  ;;  %s1855_s15 = smov [#allocation20]  ;;  %s703_s16 = smov [#allocation28] }
 0x219   : >>> { %629 = vst [vmem:[%s1817_s29] sm:$0x3] %v619_v19  ;;  %631 = vst [vmem:[%s1821_s24] sm:$0x3] %v625_v21  ;;  %s1857_s24 = smov [#allocation16]  ;;  %s1865_s29 = smov [#allocation21]  ;;  %v710_v59 = vld [vmem:[%s703_s16] ss:$0 sm:$0xff] }
 0x21a   : >>> { %853 = vst [vmem:[%s1825_s30] sm:$0x3] %v843_v23  ;;  %854 = vst [vmem:[%s1827_s23] sm:$0x3] %v846_v24  ;;  %s1859_s23 = smov [#allocation14]  ;;  %s689_s30 = smov [#allocation22] }
 0x21b   : >>> { %855 = vst [vmem:[%s1829_s21] sm:$0x3] %v849_v25  ;;  %856 = vst [vmem:[%s1833_s27] sm:$0x3] %v852_v26  ;;  %s1863_s27 = smov [#allocation18]  ;;  %s702_s21 = smov [#allocation23] }
 0x21c   : >>> { %s805_s16 = smov [#allocation21]  ;;  %p458_p10 = scmp.ge.s32.totalorder (%p462_p9), %s905_s25, 15 }
 0x21d   : >> { %s2042_s17 = smov (%p462_p9), %s905_s25 }
 0x21f   : >>> { %v644_v30 = vld [vmem:[%s1853_s14] sm:$0x3] }
 0x220   : >>> { %v643_v29 = vld [vmem:[%s1851_s22] sm:$0x3]  ;;  %v652_v36 = vmul.f32 %v644_v30, %v636_v28  ;;  %v655_v42 = vmul.f32 %v644_v30, %v634_v27 }
 0x221   : >>> { %v641_v31 = vld [vmem:[%s1855_s15] sm:$0x3]  ;;  %v651_v35 = vmul.f32 %v643_v29, %v634_v27  ;;  %v654_v37 = vmul.f32 %v643_v29, %v636_v28 }
 0x222   : >>> { %v859_v32 = vld [vmem:[%s1849_s11] ss:$0 sm:$0xff]  ;;  %v1531_v34 = vld [vmem:[%s1849_s11 + $0x1] ss:$0 sm:$0xff]  ;;  %v645_v48 = vmul.f32 %v641_v31, %v634_v27  ;;  %v648_v49 = vmul.f32 %v641_v31, %v636_v28 }
 0x223   : >>> { %v1530_v33 = vld [vmem:[%s1849_s11 - $0x1] sm:$0x2]  ;;  %v1533_v40 = vld [vmem:[%s1857_s24 + $0x1] sm:$0x1]  ;;  %v653_v47 = vsub.f32 %v651_v35, %v652_v36  ;;  %v656_v53 = vadd.f32 %v655_v42, %v654_v37 }
 0x224   : >>> { %v866_v38 = vsel %vm789_vm14, %v859_v32, %v1530_v33  ;;  %v870_v39 = vld [vmem:[%s1857_s24] ss:$0 sm:$0xff]  ;;  %v878_v43 = vsel %vm801_vm15, %v1531_v34, %v1533_v40  ;;  %v1535_v45 = vld [vmem:[%s1859_s23 + $0x1] ss:$0 sm:$0xff] }
 0x225   : >>> { %v883_v41 = vld [vmem:[%s1859_s23] ss:$0 sm:$0xff]  ;;  %869 = vst [vmem:[%s1849_s11] sm:$0x3] %v866_v38  ;;  %880 = vst [vmem:[%s1857_s24] sm:$0x3] %v878_v43  ;;  %v1537_v51 = vld [vmem:[%s1863_s27 + $0x1] sm:$0x1] }
 0x226   : >>> { %v1534_v44 = vld [vmem:[%s1859_s23 - $0x1] sm:$0x2]  ;;  %1532 = vst [vmem:[%s1849_s11 + $0x1] sm:$0x1] %v870_v39  ;;  %v902_v54 = vsel %vm801_vm15, %v1535_v45, %v1537_v51  ;;  %659 = vst [vmem:[%s1851_s22] sm:$0x3] %v653_v47  ;;  %s676_s11 = smov [#allocation21] }
 0x227   : >>> { %v894_v46 = vld [vmem:[%s1863_s27] ss:$0 sm:$0xff]  ;;  %v890_v50 = vsel %vm789_vm14, %v883_v41, %v1534_v44  ;;  %660 = vst [vmem:[%s1853_s14] sm:$0x3] %v656_v53  ;;  %s1907_s22 = smov [#allocation22]  ;;  %s1652_s14 = smov 1  }
 0x228   : >>> { %v642_v52 = vld [vmem:[%s1865_s29] sm:$0x3]  ;;  %893 = vst [vmem:[%s1859_s23] sm:$0x3] %v890_v50  ;;  %904 = vst [vmem:[%s1863_s27] sm:$0x3] %v902_v54  ;;  %s718_s24 = smov [#allocation21]  ;;  %s1910_s27 = smov [#allocation23] }
 0x229   : >>> { %v646_v55 = vmul.f32 %v642_v52, %v636_v28  ;;  %v649_v56 = vmul.f32 %v642_v52, %v634_v27  ;;  %1536 = vst [vmem:[%s1859_s23 + $0x1] sm:$0x1] %v894_v46  ;;  %s1653_s23 = smov 127  }
 0x22b   : >>> { %v647_v57 = vsub.f32 %v645_v48, %v646_v55  ;;  %v650_v58 = vadd.f32 %v649_v56, %v648_v49 }
 0x22d   : >>> { %657 = vst [vmem:[%s1855_s15] sm:$0x3] %v647_v57  ;;  %658 = vst [vmem:[%s1865_s29] sm:$0x3] %v650_v58  ;;  %v696_v60 = vld [vmem:[%s689_s30] sm:$0x3]  ;;  %s717_s15 = smov [#allocation20]  ;;  %s781_s29 = smov [#allocation20] }
 0x22e   : >>> { %v700_v61 = vsel %vm699_vm0, 0.0, %v696_v60  ;;  %v711_v62 = vld [vmem:[%s702_s21] sm:$0x3] }
 0x22f   : >>> { %701 = vst [vmem:[%s689_s30] sm:$0x3] %v700_v61  ;;  %v715_v0 = vsel %vm714_vm1, %v710_v59, %v711_v62  ;;  %s782_s30 = smov [#allocation22] }
 0x230   : >>> { %716 = vst [vmem:[%s702_s21] sm:$0x3] %v715_v0  ;;  %s806_s21 = smov [#allocation23] }
 0x234   : >>> { %v670_v1 = vld [vmem:[%s661_s26] sm:$0x3] }
 0x235   : >>> { %v683_v2 = vld [vmem:[%s676_s11] sm:$0x3]  ;;  %v674_v3 = vsel %vm673_vm3, %v669_v63, %v670_v1 }
 0x236   : >>> { %v687_v4 = vsel %vm686_vm4, 0.0, %v683_v2  ;;  %675 = vst [vmem:[%s661_s26] sm:$0x3] %v674_v3  ;;  %v755_v5 = vld [vmem:[%s1907_s22] sm:$0x3]  ;;  %s370_s26 = smov (%p462_p9), [#allocation20] }
 0x237   : >>> { %688 = vst [vmem:[%s676_s11] sm:$0x3] %v687_v4  ;;  %756 = vrot.lane.b32.xlu0 %v755_v5, %s1652_s14  ;;  %v751_v11 = vld [vmem:[%s1910_s27] sm:$0x3]  ;;  %s389_s11 = smov (%p462_p9), [#allocation21] }
 0x238   : >>> { %v772_v12 = vld [vmem:[%s1910_s27] sm:$0x3] }
 0x239   : >>> { %v754_v30 = vld [vmem:[%s1907_s22] sm:$0x3] }
 0x23d   : >>> { %v723_v8 = vld [vmem:[%s717_s15] sm:$0x3] }
 0x23e   : >>> { %724 = vrot.lane.b32.xlu1 %v723_v8, %s1652_s14  ;;  %v719_v9 = vld [vmem:[%s718_s24] sm:$0x3] }
 0x23f   : >>> { %v740_v10 = vld [vmem:[%s718_s24] sm:$0x3] }
 0x240   : >>> { %v722_v18 = vld [vmem:[%s717_s15] sm:$0x3] }
 0x242   : >>> { %720 = vrot.lane.b32.xlu1 %v719_v9, %s1652_s14 }
 0x246   : >>> { %741 = vrot.lane.b32.xlu1 %v740_v10, %s1653_s23 }
 0x24a   : >>> { %752 = vrot.lane.b32.xlu1 %v751_v11, %s1652_s14  ;;  %s423_s14 = smov (%p462_p9), [#allocation23] }
 0x24e   : >>> { %773 = vrot.lane.b32.xlu1 %v772_v12, %s1653_s23 }
 0x2a9   : >>> { %v757_v20 = vpop.permute.xlu0 %756 }
 0x2aa   : >>> { %v761_v22 = vsel %vm728_vm5, %v755_v5, %v757_v20 }
 0x2b0   : >>> { %v725_v13 = vpop.permute.xlu1 %724 }
 0x2b1   : >>> { %v729_v14 = vsel %vm728_vm5, %v723_v8, %v725_v13 }
 0x2b4   : >>> { %v721_v15 = vpop.permute.xlu1 %720 }
 0x2b5   : >>> { %v733_v16 = vsel %vm732_vm6, %v721_v15, %v729_v14 }
 0x2b6   : >>> { %v739_v17 = vsel %vm1391_vm2, %v733_v16, 0.0 }
 0x2b7   : >>> { %747 = vst [vmem:[%s717_s15] sm:$0x3] %v739_v17 }
 0x2b8   : >>> { %v742_v19 = vpop.permute.xlu1 %741 }
 0x2b9   : >>> { %v746_v21 = vsel %vm732_vm6, %v722_v18, %v742_v19 }
 0x2ba   : >>> { %748 = vst [vmem:[%s718_s24] sm:$0x3] %v746_v21 }
 0x2bc   : >>> { %v753_v23 = vpop.permute.xlu1 %752 }
 0x2bd   : >>> { %v765_v24 = vsel %vm732_vm6, %v753_v23, %v761_v22 }
 0x2be   : >>> { %v783_v25 = vld [vmem:[%s781_s29] ss:$0 sm:$0xff]  ;;  %v1523_v27 = vld [vmem:[%s781_s29 + $0x1] ss:$0 sm:$0xff]  ;;  %v771_v29 = vsel %vm1391_vm2, %v765_v24, 0.0 }
 0x2bf   : >>> { %v1522_v26 = vld [vmem:[%s781_s29 - $0x1] sm:$0x2]  ;;  %779 = vst [vmem:[%s1907_s22] sm:$0x3] %v771_v29  ;;  %s406_s22 = smov (%p462_p9), [#allocation22] }
 0x2c0   : >>> { %v790_v28 = vsel %vm789_vm14, %v783_v25, %v1522_v26  ;;  %v774_v31 = vpop.permute.xlu1 %773 }
 0x2c1   : >>> { %793 = vst [vmem:[%s781_s29] sm:$0x3] %v790_v28  ;;  %v807_v32 = vld [vmem:[%s805_s16] ss:$0 sm:$0xff]  ;;  %v1527_v34 = vld [vmem:[%s805_s16 + $0x1] ss:$0 sm:$0xff]  ;;  %v778_v35 = vsel %vm732_vm6, %v754_v30, %v774_v31 }
 0x2c2   : >>> { %v1526_v33 = vld [vmem:[%s805_s16 - $0x1] sm:$0x2]  ;;  %780 = vst [vmem:[%s1910_s27] sm:$0x3] %v778_v35 }
 0x2c3   : >>> { %v814_v36 = vsel %vm789_vm14, %v807_v32, %v1526_v33 }
 0x2c4   : >>> { %817 = vst [vmem:[%s805_s16] sm:$0x3] %v814_v36 }
 0x2c6   : >>> { %v794_v37 = vld [vmem:[%s782_s30] ss:$0 sm:$0xff]  ;;  %v1525_v38 = vld [vmem:[%s782_s30 + $0x1] sm:$0x1] }
 0x2c7   : >>> { %1524 = vst [vmem:[%s781_s29 + $0x1] sm:$0x1] %v794_v37  ;;  %v802_v39 = vsel %vm801_vm15, %v1523_v27, %v1525_v38  ;;  %464 = sbr.rel (!%p462_p9) target bundleno = 279 (0x117), region = 462 }
 0x2c8   : >>> { %804 = vst [vmem:[%s782_s30] sm:$0x3] %v802_v39 }
 0x2c9   : >>> { %v818_v40 = vld [vmem:[%s806_s21] ss:$0 sm:$0xff]  ;;  %v1529_v41 = vld [vmem:[%s806_s21 + $0x1] sm:$0x1] }
 0x2ca   : >>> { %1528 = vst [vmem:[%s805_s16 + $0x1] sm:$0x1] %v818_v40  ;;  %v826_v42 = vsel %vm801_vm15, %v1527_v34, %v1529_v41 }
 0x2cb   : >>> { %828 = vst [vmem:[%s806_s21] sm:$0x3] %v826_v42 }
 0x2ce   : >> { %v376_v43 = vld [vmem:[%s370_s26] sm:$0x3] }
 0x2cf   : >> { %v377_v45 = vsel %vm1391_vm2, %v376_v43, 0.0  ;;  %v412_v47 = vld [vmem:[%s406_s22] sm:$0x3] }
 0x2d0   : >> { %v378_v49 = vmul.f32 %v377_v45, %v377_v45  ;;  %v413_v51 = vsel %vm1391_vm2, %v412_v47, 0.0 }
 0x2d1   : >> { %v395_v44 = vld [vmem:[%s389_s11] sm:$0x3]  ;;  %v414_v53 = vmul.f32 %v413_v51, %v413_v51 }
 0x2d2   : >> { %v396_v46 = vsel %vm1391_vm2, %v395_v44, 0.0  ;;  %v429_v48 = vld [vmem:[%s423_s14] sm:$0x3]  ;;  %v382_v56 = vsel %vm381_vm7, 0.0, %v378_v49 }
 0x2d3   : >> { %v397_v50 = vmul.f32 %v396_v46, %v396_v46  ;;  %v430_v52 = vsel %vm1391_vm2, %v429_v48, 0.0 }
 0x2d4   : >> { %v431_v55 = vmul.f32 %v430_v52, %v430_v52 }
 0x2d5   : >> { %v399_v54 = vadd.f32 %v397_v50, %v378_v49  ;;  %v398_v57 = vadd.f32 %v397_v50, %v382_v56 }
 0x2d6   : >> { %v435_v60 = vsel %vm434_vm8, 0.0, %v431_v55 }
 0x2d7   : >> { %v416_v58 = vadd.f32 %v414_v53, %v399_v54  ;;  %v415_v59 = vadd.f32 %v414_v53, %v398_v57 }
 0x2d9   : >> { %v437_v61 = vadd.f32 %v431_v55, %v416_v58  ;;  %v436_v62 = vadd.f32 %v435_v60, %v415_v59 }
 0x2db   : >> { %438 = vadd.xlane.f32.xlu0 %v437_v61 }
 0x2df   : >> { %446 = vadd.xlane.f32.xlu0 %v436_v62 }
 0x368   : >> { %v439_v63 = vpop.xlane.xlu0 %438 }
 0x369   : >> { %v440_v0 = vrot.slane %v439_v63, 4 }
 0x36b   : >> { %v441_v1 = vadd.f32 %v440_v0, %v439_v63 }
 0x36c   : >> { %v447_v2 = vpop.xlane.xlu0 %446 }
 0x36d   : >> { %v442_v3 = vrot.slane %v441_v1, 2  ;;  %v448_v4 = vrot.slane %v447_v2, 4 }
 0x36f   : >> { %v449_v5 = vadd.f32 %v448_v4, %v447_v2  ;;  %v443_v8 = vadd.f32 %v442_v3, %v441_v1 }
 0x371   : >> { %v450_v9 = vrot.slane %v449_v5, 2  ;;  %v444_v11 = vrot.slane %v443_v8, 1 }
 0x373   : >> { %v451_v10 = vadd.f32 %v450_v9, %v449_v5  ;;  %v445_v14 = vadd.f32 %v444_v11, %v443_v8 }
 0x375   : >> { %v452_v12 = vrot.slane %v451_v10, 1 }
 0x377   : >> { %v453_v13 = vadd.f32 %v452_v12, %v451_v10 }
 0x379   : >> { %1556 = vpush %v453_v13 }
 0x37a   : >> { %1558 = vpush %v445_v14 }
 0x3aa   : >> { %s1557_s20 = spop %1556 }
 0x3ab   : >> { %s1559_s15 = spop %1558 }
 0x3ac   : >> { %s456_s24 = smul.f32 1e-10, %s1559_s15 }
 0x3ae   : >> { %p457_p11 = scmp.le.f32.partialorder %s1557_s20, %s456_s24 }
 0x3b0   : >> { %p459_p12 = por %p458_p10, %p457_p11 }
 0x3b2   : > { %907 = sbr.rel (!%p459_p12) target bundleno = 278 (0x116), region = 473 }
 0x3b9 PF: > { %s912_s23 = smov [#allocation20]  ;;  %v916_v6 = vmov %v1761_v6  ;;  %v919_v7 = vmov %v1763_v7  ;;  %v967_v15 = vld [vmem:[#allocation12] sm:$0x3]  ;;  %v973_v16 = vld [vmem:[#allocation14] sm:$0x3]  ;;  %s2043_s17 = scalar_lea.vmem [#allocation13], %s1757_s28 }
 0x3ba   : > { %v936_v6 = vmov %v1761_v6  ;;  %v939_v7 = vmov %v1763_v7  ;;  %v920_v17 = vld [vmem:[%s912_s23] sm:$0x3]  ;;  %vm923_vm9 = vcmp.eq.s32.totalorder %v919_v7, %v916_v6  ;;  %969 = vst [vmem:[%s2043_s17] sm:$0x3] %v967_v15  ;;  %s2044_s27 = scalar_lea.vmem [#allocation15], %s1757_s28  ;;  %s932_s29 = smov [#allocation23] }
 0x3bb   : > { %vm943_vm10 = vcmp.eq.s32.totalorder %v939_v7, %v936_v6  ;;  %975 = vst [vmem:[%s2044_s27] sm:$0x3] %v973_v16  ;;  %v979_v18 = vld [vmem:[#allocation16] sm:$0x3]  ;;  %v924_v19 = vsel %vm923_vm9, %v920_v17, 0.0  ;;  %s2045_s16 = scalar_lea.vmem [#allocation17], %s1757_s28  ;;  %s2046_s30 = scalar_lea.vmem [#allocation19], %s1757_s28 }
 0x3bc   : > { %981 = vst [vmem:[%s2045_s16] sm:$0x3] %v979_v18  ;;  %v985_v20 = vld [vmem:[#allocation18] sm:$0x3]  ;;  %v925_v21 = vrot.slane %v924_v19, 4  ;;  %v940_v22 = vld [vmem:[%s932_s29] sm:$0x3] }
 0x3bd   : > { %987 = vst [vmem:[%s2046_s30] sm:$0x3] %v985_v20  ;;  %v944_v23 = vsel %vm943_vm10, %v940_v22, 0.0  ;;  %s908_s21 = sand.u32 7, %s1720_s12   ;;  %s2047_s11 = scalar_lea.vmem [#allocation9], %s1759_s18 }
 0x3be   : > { %v926_v24 = vadd.f32 %v925_v21, %v924_v19  ;;  %v945_v25 = vrot.slane %v944_v23, 4  ;;  %s909_s25 = scalar_lea.vmem [#allocation8], %s908_s21  ;;  %s911_s26 = scalar_lea.vmem [#allocation10], %s908_s21 }
 0x3bf   : > { %s913_s25 = smov %s909_s25  ;;  %s933_s26 = smov %s911_s26 }
 0x3c0   : > { %v927_v26 = vrot.slane %v926_v24, 2  ;;  %v946_v6 = vadd.f32 %v945_v25, %v944_v23  ;;  %s2048_s22 = scalar_lea.vmem [#allocation11], %s1759_s18  ;;  %s1015_s14 = sshrl.u32 (%p1734_p3), %s1720_s12, 3 }
 0x3c1   : > { %s2049_s20 = scalar_lea.vmem (%p1734_p3), [#allocation9], %s1759_s18  ;;  %s1544_s15 = sshll.u32 (%p1734_p3), %s1015_s14, 1 }
 0x3c2   : > { %v928_v7 = vadd.f32 %v927_v26, %v926_v24  ;;  %v947_v27 = vrot.slane %v946_v6, 2  ;;  %s1017_s17 = scalar_lea.vmem (%p1734_p3), %s2034_s4, %s1544_s15 }
 0x3c4   : > { %v929_v28 = vrot.slane %v928_v7, 1  ;;  %v948_v29 = vadd.f32 %v947_v27, %v946_v6 }
 0x3c6   : > { %v930_v30 = vadd.f32 %v929_v28, %v928_v7  ;;  %v949_v31 = vrot.slane %v948_v29, 1 }
 0x3c8   : > { %931 = vst [vmem:[%s913_s25] sm:$0x1] %v930_v30  ;;  %v950_v32 = vadd.f32 %v949_v31, %v948_v29 }
 0x3ca   : > { %951 = vst [vmem:[%s933_s26] sm:$0x1] %v950_v32 }
 0x3cc   : > { %1014 = sbr.rel (!%p1734_p3) target bundleno = 985 (0x3d9), region = 158 }
 0x3cf   : > { %v955_v33 = vld [vmem:[#allocation8] sm:$0x3] }
 0x3d0   : > { %957 = vst [vmem:[%s2047_s11] sm:$0x3] %v955_v33 }
 0x3d1   : > { %v961_v34 = vld [vmem:[#allocation10] sm:$0x3] }
 0x3d2   : > { %963 = vst [vmem:[%s2048_s22] sm:$0x3] %v961_v34 }
 0x3d7   : > { %v1033_v35 = vld [vmem:[%s2049_s20] sm:$0x3] }
 0x3d8   : > { %1034 = vst [vmem:[%s1017_s17] sm:$0x3] %v1033_v35 }
 0x3d9 PF: > { %1051 = sbr.rel (!%p1734_p3) target bundleno = 993 (0x3e1), region = 192  ;;  %s1052_s27 = sshrl.u32 (%p1734_p3), %s1720_s12, 3 }
 0x3da   : > { %s2050_s29 = scalar_lea.vmem (%p1734_p3), [#allocation11], %s1759_s18  ;;  %s1545_s16 = sshll.u32 (%p1734_p3), %s1052_s27, 1 }
 0x3db   : > { %s1054_s25 = scalar_lea.vmem (%p1734_p3), %s2035_s5, %s1545_s16 }
 0x3df   : > { %v1070_v36 = vld [vmem:[%s2050_s29] sm:$0x3] (%p1734_p3) }
 0x3e0   : > { %1071 = vst [vmem:[%s1054_s25] sm:$0x3] %v1070_v36 }
 0x3e1 PF: > { %s1546_s26 = sshll.u32 %s1720_s12, 1  ;;  %s2051_s19 = scalar_lea.vmem [#allocation13], %s1757_s28 }
 0x3e2   : > { %v1103_v37 = vld [vmem:[%s2051_s19] sm:$0x3]  ;;  %s2052_s11 = scalar_lea.vmem [#allocation15], %s1757_s28  ;;  %s1087_s14 = scalar_lea.vmem %s2036_s6, %s1546_s26 }
 0x3e3   : > { %v1136_v38 = vld [vmem:[%s2052_s11] sm:$0x3]  ;;  %s1120_s24 = scalar_lea.vmem %s2037_s7, %s1546_s26  ;;  %s2053_s23 = scalar_lea.vmem [#allocation17], %s1757_s28  ;;  %1104 = vst [vmem:[%s1087_s14] sm:$0x3] %v1103_v37 }
 0x3e4   : > { %v1169_v39 = vld [vmem:[%s2053_s23] sm:$0x3]  ;;  %s2054_s17 = scalar_lea.vmem [#allocation19], %s1757_s28  ;;  %1137 = vst [vmem:[%s1120_s24] sm:$0x3] %v1136_v38  ;;  %s1153_s29 = scalar_lea.vmem %s2038_s8, %s1546_s26 }
 0x3e5   : > { %v1202_v40 = vld [vmem:[%s2054_s17] sm:$0x3]  ;;  %s1186_s21 = scalar_lea.vmem %s2039_s9, %s1546_s26  ;;  %1170 = vst [vmem:[%s1153_s29] sm:$0x3] %v1169_v39 }
 0x3e6   : > { %1203 = vst [vmem:[%s1186_s21] sm:$0x3] %v1202_v40 }
 0x3e7 PF: > { %s2055_s25 = sld [smem:[#allocation33_spill]]  ;;  %p13_p13 = scmp.ge.s32.totalorder %s1723_s13, 4  }
 0x3e8   : > { %s2056_s30 = smov %s1637_s10  ;;  %s2058_s11 = smov %s1723_s13 }
 0x3e9   :  { %15 = sbr.rel (!%p13_p13) target bundleno = 2 (0x2), region = 484 }
 0x3ed   : > { %s2057_s10 = smov %s2055_s25 }

// kernel: style_decorator_forward.1
= control target key start
LH: loop header
LB: loop body
LE: loop exit
PB: predicated region body
PF: predicated region fallthrough
CT: control target
= control target key end

     0   :  { %s2287_s12 = smov 0   ;;  %s2289_s13 = smov 0   ;;  %s4050_s0 = inlined_call_operand.vmem [shape: bf16[2,256,128], index: 0, kind: input, shape index: {}]   ;;  %s4051_s1 = inlined_call_operand.vmem [shape: bf16[2,256,128], index: 1, kind: input, shape index: {}]   ;;  %s4052_s2 = inlined_call_operand.vmem [shape: f32[2,1,256], index: 2, kind: input, shape index: {}]   ;;  %s4053_s3 = inlined_call_operand.vmem [shape: s32[2,256,1], index: 3, kind: output, shape index: {}]  }
   0x1   :  { %s2291_s14 = smov 0  }
   0x2 LB: > { %s32_s15 = sadd.s32 1, %s2259_s13  ;;  %p2074_p0 = scmp.ge.s32.totalorder %s2263_s14, 1  ;;  %s2263_s14 = sphi %s2291_s14, %s13_s14   ;;  %s2259_s13 = sphi %s2289_s13, %s4386_s13   ;;  %s2255_s12 = sphi %s2287_s12, %s4385_s12  }
   0x3   : > { %p34_p1 = scmp.ge.s32.totalorder %s32_s15, 2  ;;  %p198_p2 = scmp.lt.s32.totalorder %s2263_s14, 3 }
   0x5   : > { %s4388_s15 = smov (%p34_p1, %s32_s15), 0  ;;  %p199_p3 = pnand %p2074_p0, %p198_p2 }
   0x7   : > { %202 = sbr.rel (%p199_p3) target bundleno = 829 (0x33d), region = 32 }
   0xe   : > { %p248_p4 = scmp.lt.s32.totalorder %s2255_s12, 1  ;;  %vm291_vm0 = vcmask 7168   ;;  %v2265_v32 = vmov -inf   ;;  %v4054_v33 = vlaneseq }
   0xf   : > { %292 = vst.msk [vmem:[#allocation2] sm:$0xff] %vm291_vm0, %v2265_v32  ;;  %293 = vst.msk [vmem:[#allocation2 + $0x8] sm:$0xff] %vm291_vm0, %v2265_v32 }
  0x10   : > { %s4390_s12 = smov (!%p248_p4, %s2255_s12), 1  ;;  %294 = vst.msk [vmem:[#allocation2 + $0x10] sm:$0xff] %vm291_vm0, %v2265_v32  ;;  %295 = vst.msk [vmem:[#allocation2 + $0x18] sm:$0xff] %vm291_vm0, %v2265_v32  ;;  %v808_v34 = vshrl.u32 %v4054_v33, 7 }
  0x11   : > { %s2116_s16 = sshll.u32 %s4390_s12, 7  ;;  %296 = vst.msk [vmem:[#allocation2 + $0x20] sm:$0xff] %vm291_vm0, %v2265_v32  ;;  %297 = vst.msk [vmem:[#allocation2 + $0x28] sm:$0xff] %vm291_vm0, %v2265_v32  ;;  %s2079_s23 = sshll.u32 %s4390_s12, 1 }
  0x12   : > { %s2311_s19 = scalar_lea.vmem %s4051_s1, %s2116_s16  ;;  %s2321_s22 = scalar_lea.vmem %s4050_s0, %s2116_s16  ;;  %298 = vst.msk [vmem:[#allocation2 + $0x30] sm:$0xff] %vm291_vm0, %v2265_v32  ;;  %299 = vst.msk [vmem:[#allocation2 + $0x38] sm:$0xff] %vm291_vm0, %v2265_v32  ;;  %v809_v35 = vsub.s32 0, %v808_v34  ;;  %v813_v37 = vsub.s32 1, %v808_v34 }
  0x13   : > { %v2209_v0 = vld [vmem:[%s2311_s19 + $0x40] sm:$0xff]   ;;  %v2211_v2 = vld [vmem:[%s2311_s19 + $0x48] sm:$0xff]   ;;  %v2213_v4 = vld [vmem:[%s2311_s19 + $0x50] sm:$0xff]   ;;  %300 = vst.msk [vmem:[#allocation2 + $0x40] sm:$0xff] %vm291_vm0, %v2265_v32  ;;  %s274_s26 = scalar_lea.vmem %s4052_s2, %s2079_s23  ;;  %s2118_s27 = sshll.u32 %s4390_s12, 8 }
  0x14   : > { %2119 = vmatprep.subr.bf16.mxu0 %v2209_v0  ;;  %2167 = vmatprep.subr.bf16.mxu1 %v2209_v0  ;;  %v2210_v1 = vld [vmem:[%s2311_s19] sm:$0xff]   ;;  %v2212_v3 = vld [vmem:[%s2311_s19 + $0x8] sm:$0xff]   ;;  %v2214_v5 = vld [vmem:[%s2311_s19 + $0x10] sm:$0xff]   ;;  %301 = vst.msk [vmem:[#allocation2 + $0x48] sm:$0xff] %vm291_vm0, %v2265_v32  ;;  %s3591_s30 = scalar_lea.vmem %s4053_s3, %s2118_s27 }
  0x15   : > { %2120 = vmatpush3.bf16.xpose.msra.mxu0 %v2210_v1  ;;  %2175 = vmatpush3.bf16.xpose.msra.mxu1 %v2210_v1  ;;  %v2215_v6 = vld [vmem:[%s2311_s19 + $0x58] sm:$0xff]   ;;  %v2225_v7 = vld [vmem:[%s2321_s22] sm:$0xff]   ;;  %v2219_v12 = vld [vmem:[%s2311_s19 + $0x68] sm:$0xff]   ;;  %302 = vst.msk [vmem:[#allocation2 + $0x50] sm:$0xff] %vm291_vm0, %v2265_v32 }
  0x16   : > { %2121 = vmatprep.subr.bf16.mxu0 %v2211_v2  ;;  %2168 = vmatprep.subr.bf16.mxu1 %v2211_v2  ;;  %v2226_v8 = vld [vmem:[%s2321_s22 + $0x40] sm:$0xff]   ;;  %v2216_v9 = vld [vmem:[%s2311_s19 + $0x18] sm:$0xff]   ;;  %v2220_v13 = vld [vmem:[%s2311_s19 + $0x28] sm:$0xff]   ;;  %303 = vst.msk [vmem:[#allocation2 + $0x58] sm:$0xff] %vm291_vm0, %v2265_v32 }
  0x17   : > { %2135 = vmatprep.mubr.bf16.mxu0 %v2225_v7  ;;  %2151 = vmatprep.mubr.bf16.mxu1 %v2226_v8  ;;  %v2217_v10 = vld [vmem:[%s2311_s19 + $0x60] sm:$0xff]   ;;  %v2221_v14 = vld [vmem:[%s2311_s19 + $0x70] sm:$0xff]   ;;  %v2223_v16 = vld [vmem:[%s2311_s19 + $0x78] sm:$0xff]   ;;  %304 = vst.msk [vmem:[#allocation2 + $0x60] sm:$0xff] %vm291_vm0, %v2265_v32 }
  0x18   : > { %v2218_v11 = vld [vmem:[%s2311_s19 + $0x20] sm:$0xff]   ;;  %v2222_v15 = vld [vmem:[%s2311_s19 + $0x30] sm:$0xff]   ;;  %v2224_v17 = vld [vmem:[%s2311_s19 + $0x38] sm:$0xff]   ;;  %305 = vst.msk [vmem:[#allocation2 + $0x68] sm:$0xff] %vm291_vm0, %v2265_v32 }
  0x19   : > { %v2227_v18 = vld [vmem:[%s2321_s22 + $0x8] sm:$0xff]   ;;  %v2229_v20 = vld [vmem:[%s2321_s22 + $0x10] sm:$0xff]   ;;  %v2231_v22 = vld [vmem:[%s2321_s22 + $0x18] sm:$0xff]   ;;  %306 = vst.msk [vmem:[#allocation2 + $0x70] sm:$0xff] %vm291_vm0, %v2265_v32 }
  0x1a   : > { %v2228_v19 = vld [vmem:[%s2321_s22 + $0x48] sm:$0xff]   ;;  %v2230_v21 = vld [vmem:[%s2321_s22 + $0x50] sm:$0xff]   ;;  %v2232_v23 = vld [vmem:[%s2321_s22 + $0x58] sm:$0xff]   ;;  %307 = vst.msk [vmem:[#allocation2 + $0x78] sm:$0xff] %vm291_vm0, %v2265_v32 }
  0x1b   : > { %v2233_v24 = vld [vmem:[%s2321_s22 + $0x20] sm:$0xff]   ;;  %v2235_v26 = vld [vmem:[%s2321_s22 + $0x28] sm:$0xff]   ;;  %v2237_v28 = vld [vmem:[%s2321_s22 + $0x30] sm:$0xff]   ;;  %308 = vst.msk [vmem:[#allocation2 + $0x80] sm:$0xff] %vm291_vm0, %v2265_v32 }
  0x1c   : > { %v2234_v25 = vld [vmem:[%s2321_s22 + $0x60] sm:$0xff]   ;;  %v2236_v27 = vld [vmem:[%s2321_s22 + $0x68] sm:$0xff]   ;;  %v2238_v29 = vld [vmem:[%s2321_s22 + $0x70] sm:$0xff]   ;;  %309 = vst.msk [vmem:[#allocation2 + $0x88] sm:$0xff] %vm291_vm0, %v2265_v32 }
  0x1d   : > { %2122 = vmatpush3.bf16.xpose.msra.mxu0 %v2212_v3  ;;  %2176 = vmatpush3.bf16.xpose.msra.mxu1 %v2212_v3  ;;  %v2239_v30 = vld [vmem:[%s2321_s22 + $0x38] sm:$0xff]   ;;  %310 = vst.msk [vmem:[#allocation2 + $0x90] sm:$0xff] %vm291_vm0, %v2265_v32  ;;  %311 = vst.msk [vmem:[#allocation2 + $0x98] sm:$0xff] %vm291_vm0, %v2265_v32  ;;  %v420_v36 = vld [vmem:[%s274_s26] sm:$0x3] }
  0x1e   : > { %2123 = vmatprep.subr.bf16.mxu0 %v2213_v4  ;;  %2169 = vmatprep.subr.bf16.mxu1 %v2213_v4  ;;  %v2240_v31 = vld [vmem:[%s2321_s22 + $0x78] sm:$0xff]   ;;  %312 = vst.msk [vmem:[#allocation2 + $0xa0] sm:$0xff] %vm291_vm0, %v2265_v32  ;;  %313 = vst.msk [vmem:[#allocation2 + $0xa8] sm:$0xff] %vm291_vm0, %v2265_v32  ;;  %v2387_v38 = vrot.slane %v420_v36, %v809_v35  ;;  %v2389_v39 = vrot.slane %v420_v36, %v813_v37 }
  0x1f   : > { %314 = vst.msk [vmem:[#allocation2 + $0xb0] sm:$0xff] %vm291_vm0, %v2265_v32  ;;  %315 = vst.msk [vmem:[#allocation2 + $0xb8] sm:$0xff] %vm291_vm0, %v2265_v32 }
  0x20   : > { %316 = vst.msk [vmem:[#allocation2 + $0xc0] sm:$0xff] %vm291_vm0, %v2265_v32  ;;  %317 = vst.msk [vmem:[#allocation2 + $0xc8] sm:$0xff] %vm291_vm0, %v2265_v32 }
  0x21   : > { %318 = vst.msk [vmem:[#allocation2 + $0xd0] sm:$0xff] %vm291_vm0, %v2265_v32  ;;  %319 = vst.msk [vmem:[#allocation2 + $0xd8] sm:$0xff] %vm291_vm0, %v2265_v32 }
  0x22   : > { %320 = vst.msk [vmem:[#allocation2 + $0xe0] sm:$0xff] %vm291_vm0, %v2265_v32  ;;  %321 = vst.msk [vmem:[#allocation2 + $0xe8] sm:$0xff] %vm291_vm0, %v2265_v32 }
  0x23   : > { %322 = vst.msk [vmem:[#allocation2 + $0xf0] sm:$0xff] %vm291_vm0, %v2265_v32  ;;  %323 = vst.msk [vmem:[#allocation2 + $0xf8] sm:$0xff] %vm291_vm0, %v2265_v32 }
  0x25   : > { %2124 = vmatpush3.bf16.xpose.msra.mxu0 %v2214_v5  ;;  %2177 = vmatpush3.bf16.xpose.msra.mxu1 %v2214_v5 }
  0x26   : > { %2125 = vmatprep.subr.bf16.mxu0 %v2215_v6  ;;  %2170 = vmatprep.subr.bf16.mxu1 %v2215_v6 }
  0x2d   : > { %2126 = vmatpush3.bf16.xpose.msra.mxu0 %v2216_v9  ;;  %2178 = vmatpush3.bf16.xpose.msra.mxu1 %v2216_v9 }
  0x2e   : > { %2127 = vmatprep.subr.bf16.mxu0 %v2217_v10  ;;  %2171 = vmatprep.subr.bf16.mxu1 %v2217_v10 }
  0x35   : > { %2128 = vmatpush3.bf16.xpose.msra.mxu0 %v2218_v11  ;;  %2179 = vmatpush3.bf16.xpose.msra.mxu1 %v2218_v11 }
  0x36   : > { %2129 = vmatprep.subr.bf16.mxu0 %v2219_v12  ;;  %2172 = vmatprep.subr.bf16.mxu1 %v2219_v12 }
  0x3d   : > { %2130 = vmatpush3.bf16.xpose.msra.mxu0 %v2220_v13  ;;  %2180 = vmatpush3.bf16.xpose.msra.mxu1 %v2220_v13 }
  0x3e   : > { %2131 = vmatprep.subr.bf16.mxu0 %v2221_v14  ;;  %2173 = vmatprep.subr.bf16.mxu1 %v2221_v14 }
  0x45   : > { %2132 = vmatpush3.bf16.xpose.msra.mxu0 %v2222_v15  ;;  %2181 = vmatpush3.bf16.xpose.msra.mxu1 %v2222_v15 }
  0x46   : > { %2133 = vmatprep.subr.bf16.mxu0 %v2223_v16  ;;  %2174 = vmatprep.subr.bf16.mxu1 %v2223_v16 }
  0x4d   : > { %2134 = vmatpush3.bf16.xpose.msra.mxu0 %v2224_v17  ;;  %2182 = vmatpush3.bf16.xpose.msra.mxu1 %v2224_v17 }
  0x54   : > { %2136 = vmatmul.mubr.bf16.vlgmr.msra.gmra.mrb[0].mxu0 %v2225_v7  ;;  %2152 = vmatmul.mubr.bf16.vlgmr.msra.gmra.mrb[0].mxu1 %v2226_v8 }
  0x55   : > { %2137 = vmatprep.mubr.bf16.mxu0 %v2227_v18  ;;  %2153 = vmatprep.mubr.bf16.mxu1 %v2228_v19 }
  0x5c   : > { %2138 = vmatmul.mubr.bf16.gmra.mrb[4].mxu0 %v2227_v18  ;;  %2154 = vmatmul.mubr.bf16.gmra.mrb[4].mxu1 %v2228_v19 }
  0x5d   : > { %2139 = vmatprep.mubr.bf16.mxu0 %v2229_v20  ;;  %2155 = vmatprep.mubr.bf16.mxu1 %v2230_v21 }
  0x64   : > { %2140 = vmatmul.mubr.bf16.gmra.mrb[8].mxu0 %v2229_v20  ;;  %2156 = vmatmul.mubr.bf16.gmra.mrb[8].mxu1 %v2230_v21 }
  0x65   : > { %2141 = vmatprep.mubr.bf16.mxu0 %v2231_v22  ;;  %2157 = vmatprep.mubr.bf16.mxu1 %v2232_v23 }
  0x6c   : > { %2142 = vmatmul.mubr.bf16.gmra.mrb[12].mxu0 %v2231_v22  ;;  %2158 = vmatmul.mubr.bf16.gmra.mrb[12].mxu1 %v2232_v23 }
  0x6d   : > { %2143 = vmatprep.mubr.bf16.mxu0 %v2233_v24  ;;  %2159 = vmatprep.mubr.bf16.mxu1 %v2234_v25 }
  0x74   : > { %2144 = vmatmul.mubr.bf16.gmra.mrb[16].mxu0 %v2233_v24  ;;  %2160 = vmatmul.mubr.bf16.gmra.mrb[16].mxu1 %v2234_v25 }
  0x75   : > { %2145 = vmatprep.mubr.bf16.mxu0 %v2235_v26  ;;  %2161 = vmatprep.mubr.bf16.mxu1 %v2236_v27 }
  0x7c   : > { %2146 = vmatmul.mubr.bf16.gmra.mrb[20].mxu0 %v2235_v26  ;;  %2162 = vmatmul.mubr.bf16.gmra.mrb[20].mxu1 %v2236_v27 }
  0x7d   : > { %2147 = vmatprep.mubr.bf16.mxu0 %v2237_v28  ;;  %2163 = vmatprep.mubr.bf16.mxu1 %v2238_v29 }
  0x84   : > { %2148 = vmatmul.mubr.bf16.gmra.mrb[24].mxu0 %v2237_v28  ;;  %2164 = vmatmul.mubr.bf16.gmra.mrb[24].mxu1 %v2238_v29 }
  0x85   : > { %2149 = vmatprep.mubr.bf16.mxu0 %v2239_v30  ;;  %2165 = vmatprep.mubr.bf16.mxu1 %v2240_v31 }
  0x8c   : > { %2150 = vmatmul.mubr.bf16.gmra.mrb[28].mxu0 %v2239_v30  ;;  %2166 = vmatmul.mubr.bf16.gmra.mrb[28].mxu1 %v2240_v31 }
 0x127   : > { %v647_v40 = vpop.f32.mrb[0].mxu0  ;;  %v727_v41 = vpop.f32.mrb[0].mxu1 }
 0x128   : > { %v2392_v42 = vmul.f32 %v2387_v38, %v647_v40  ;;  %v2395_v43 = vmul.f32 %v2387_v38, %v727_v41  ;;  %v649_v44 = vpop.f32.mrb[1].mxu0  ;;  %v729_v45 = vpop.f32.mrb[1].mxu1 }
 0x129   : > { %v2398_v46 = vmul.f32 %v2389_v39, %v649_v44  ;;  %v2401_v47 = vmul.f32 %v2389_v39, %v729_v45  ;;  %v651_v48 = vpop.f32.mrb[2].mxu0  ;;  %v731_v49 = vpop.f32.mrb[2].mxu1 }
 0x12a   : > { %v2404_v50 = vmul.f32 %v2387_v38, %v651_v48  ;;  %v2407_v51 = vmul.f32 %v2387_v38, %v731_v49  ;;  %v653_v52 = vpop.f32.mrb[3].mxu0  ;;  %v733_v53 = vpop.f32.mrb[3].mxu1 }
 0x12b   : > { %v2410_v54 = vmul.f32 %v2389_v39, %v653_v52  ;;  %v2413_v55 = vmul.f32 %v2389_v39, %v733_v53  ;;  %v954_v56 = vmax.f32 %v2392_v42, %v2398_v46  ;;  %v1002_v58 = vmax.f32 %v2395_v43, %v2401_v47 }
 0x12d   : > { %955 = vmax.xlane.f32.xlu0 %v954_v56  ;;  %v1005_v57 = vmax.f32 %v2407_v51, %v2413_v55  ;;  %v957_v10 = vmax.f32 %v2404_v50, %v2410_v54 }
 0x12f   : > { %1006 = vmax.xlane.f32.xlu1 %v1005_v57  ;;  %v657_v59 = vpop.f32.mrb[4].mxu0  ;;  %v737_v60 = vpop.f32.mrb[4].mxu1 }
 0x130   : > { %v2422_v61 = vmul.f32 %v2387_v38, %v657_v59  ;;  %v659_v62 = vpop.f32.mrb[5].mxu0  ;;  %v2425_v63 = vmul.f32 %v2387_v38, %v737_v60  ;;  %v739_v0 = vpop.f32.mrb[5].mxu1 }
 0x131   : > { %v2428_v1 = vmul.f32 %v2389_v39, %v659_v62  ;;  %1003 = vmax.xlane.f32.xlu0 %v1002_v58  ;;  %v661_v2 = vpop.f32.mrb[6].mxu0  ;;  %v2431_v3 = vmul.f32 %v2389_v39, %v739_v0  ;;  %v741_v4 = vpop.f32.mrb[6].mxu1 }
 0x132   : > { %v2434_v5 = vmul.f32 %v2387_v38, %v661_v2  ;;  %v663_v6 = vpop.f32.mrb[7].mxu0  ;;  %v2437_v7 = vmul.f32 %v2387_v38, %v741_v4  ;;  %v743_v8 = vpop.f32.mrb[7].mxu1 }
 0x133   : > { %v2440_v9 = vmul.f32 %v2389_v39, %v663_v6  ;;  %v960_v11 = vmax.f32 %v2422_v61, %v2428_v1  ;;  %v2447_v12 = vmul.f32 %v2389_v39, %v743_v8  ;;  %v1008_v13 = vmax.f32 %v2425_v63, %v2431_v3 }
 0x135   : > { %958 = vmax.xlane.f32.xlu0 %v957_v10  ;;  %961 = vmax.xlane.f32.xlu1 %v960_v11  ;;  %v963_v14 = vmax.f32 %v2434_v5, %v2440_v9  ;;  %v1011_v24 = vmax.f32 %v2437_v7, %v2447_v12 }
 0x137   : > { %v667_v15 = vpop.f32.mrb[8].mxu0  ;;  %v747_v16 = vpop.f32.mrb[8].mxu1 }
 0x138   : > { %v2454_v17 = vmul.f32 %v2387_v38, %v667_v15  ;;  %v669_v18 = vpop.f32.mrb[9].mxu0  ;;  %v2457_v19 = vmul.f32 %v2387_v38, %v747_v16  ;;  %v749_v20 = vpop.f32.mrb[9].mxu1 }
 0x139   : > { %v2460_v21 = vmul.f32 %v2389_v39, %v669_v18  ;;  %1009 = vmax.xlane.f32.xlu0 %v1008_v13  ;;  %964 = vmax.xlane.f32.xlu1 %v963_v14  ;;  %v671_v22 = vpop.f32.mrb[10].mxu0  ;;  %v2463_v23 = vmul.f32 %v2389_v39, %v749_v20  ;;  %v751_v25 = vpop.f32.mrb[10].mxu1 }
 0x13a   : > { %v2468_v26 = vmul.f32 %v2387_v38, %v671_v22  ;;  %v673_v27 = vpop.f32.mrb[11].mxu0  ;;  %v2471_v28 = vmul.f32 %v2387_v38, %v751_v25  ;;  %v753_v29 = vpop.f32.mrb[11].mxu1 }
 0x13b   : > { %v2474_v30 = vmul.f32 %v2389_v39, %v673_v27  ;;  %v966_v31 = vmax.f32 %v2454_v17, %v2460_v21  ;;  %v2479_v32 = vmul.f32 %v2389_v39, %v753_v29  ;;  %v1014_v34 = vmax.f32 %v2457_v19, %v2463_v23 }
 0x13d   : > { %1012 = vmax.xlane.f32.xlu1 %v1011_v24  ;;  %967 = vmax.xlane.f32.xlu0 %v966_v31  ;;  %v969_v35 = vmax.f32 %v2468_v26, %v2474_v30  ;;  %v1017_v53 = vmax.f32 %v2471_v28, %v2479_v32 }
 0x13f   : > { %v677_v36 = vpop.f32.mrb[12].mxu0  ;;  %v757_v37 = vpop.f32.mrb[12].mxu1 }
 0x140   : > { %v2486_v40 = vmul.f32 %v2387_v38, %v677_v36  ;;  %v679_v41 = vpop.f32.mrb[13].mxu0  ;;  %v2489_v44 = vmul.f32 %v2387_v38, %v757_v37  ;;  %v759_v45 = vpop.f32.mrb[13].mxu1 }
 0x141   : > { %v2492_v48 = vmul.f32 %v2389_v39, %v679_v41  ;;  %1015 = vmax.xlane.f32.xlu0 %v1014_v34  ;;  %970 = vmax.xlane.f32.xlu1 %v969_v35  ;;  %v681_v49 = vpop.f32.mrb[14].mxu0  ;;  %v2495_v52 = vmul.f32 %v2389_v39, %v759_v45  ;;  %v761_v56 = vpop.f32.mrb[14].mxu1 }
 0x142   : > { %v2500_v57 = vmul.f32 %v2387_v38, %v681_v49  ;;  %v683_v58 = vpop.f32.mrb[15].mxu0  ;;  %v2503_v59 = vmul.f32 %v2387_v38, %v761_v56  ;;  %v763_v60 = vpop.f32.mrb[15].mxu1 }
 0x143   : > { %v2506_v62 = vmul.f32 %v2389_v39, %v683_v58  ;;  %v972_v0 = vmax.f32 %v2486_v40, %v2492_v48  ;;  %v2511_v2 = vmul.f32 %v2389_v39, %v763_v60  ;;  %v1020_v4 = vmax.f32 %v2489_v44, %v2495_v52 }
 0x145   : > { %1018 = vmax.xlane.f32.xlu1 %v1017_v53  ;;  %973 = vmax.xlane.f32.xlu0 %v972_v0  ;;  %v975_v6 = vmax.f32 %v2500_v57, %v2506_v62  ;;  %v1023_v22 = vmax.f32 %v2503_v59, %v2511_v2 }
 0x147   : > { %v687_v8 = vpop.f32.mrb[16].mxu0  ;;  %v767_v10 = vpop.f32.mrb[16].mxu1 }
 0x148   : > { %v2518_v11 = vmul.f32 %v2387_v38, %v687_v8  ;;  %v689_v13 = vpop.f32.mrb[17].mxu0  ;;  %v2521_v14 = vmul.f32 %v2387_v38, %v767_v10  ;;  %v769_v15 = vpop.f32.mrb[17].mxu1 }
 0x149   : > { %v2524_v16 = vmul.f32 %v2389_v39, %v689_v13  ;;  %1021 = vmax.xlane.f32.xlu0 %v1020_v4  ;;  %976 = vmax.xlane.f32.xlu1 %v975_v6  ;;  %v691_v18 = vpop.f32.mrb[18].mxu0  ;;  %v2527_v20 = vmul.f32 %v2389_v39, %v769_v15  ;;  %v771_v24 = vpop.f32.mrb[18].mxu1 }
 0x14a   : > { %v2532_v25 = vmul.f32 %v2387_v38, %v691_v18  ;;  %v693_v27 = vpop.f32.mrb[19].mxu0  ;;  %v2535_v29 = vmul.f32 %v2387_v38, %v771_v24  ;;  %v773_v31 = vpop.f32.mrb[19].mxu1 }
 0x14b   : > { %v2538_v34 = vmul.f32 %v2389_v39, %v693_v27  ;;  %v978_v35 = vmax.f32 %v2518_v11, %v2524_v16  ;;  %v2543_v36 = vmul.f32 %v2389_v39, %v773_v31  ;;  %v1026_v37 = vmax.f32 %v2521_v14, %v2527_v20 }
 0x14d   : > { %1024 = vmax.xlane.f32.xlu1 %v1023_v22  ;;  %979 = vmax.xlane.f32.xlu0 %v978_v35  ;;  %v981_v41 = vmax.f32 %v2532_v25, %v2538_v34  ;;  %v1029_v8 = vmax.f32 %v2535_v29, %v2543_v36 }
 0x14f   : > { %v697_v45 = vpop.f32.mrb[20].mxu0  ;;  %v777_v49 = vpop.f32.mrb[20].mxu1 }
 0x150   : > { %v2550_v53 = vmul.f32 %v2387_v38, %v697_v45  ;;  %v699_v56 = vpop.f32.mrb[21].mxu0  ;;  %v2553_v58 = vmul.f32 %v2387_v38, %v777_v49  ;;  %v779_v60 = vpop.f32.mrb[21].mxu1 }
 0x151   : > { %v2556_v0 = vmul.f32 %v2389_v39, %v699_v56  ;;  %1027 = vmax.xlane.f32.xlu0 %v1026_v37  ;;  %982 = vmax.xlane.f32.xlu1 %v981_v41  ;;  %v701_v4 = vpop.f32.mrb[22].mxu0  ;;  %v2559_v6 = vmul.f32 %v2389_v39, %v779_v60  ;;  %v781_v10 = vpop.f32.mrb[22].mxu1 }
 0x152   : > { %v2564_v13 = vmul.f32 %v2387_v38, %v701_v4  ;;  %v703_v15 = vpop.f32.mrb[23].mxu0  ;;  %v2567_v18 = vmul.f32 %v2387_v38, %v781_v10  ;;  %v783_v22 = vpop.f32.mrb[23].mxu1 }
 0x153   : > { %v2570_v24 = vmul.f32 %v2389_v39, %v703_v15  ;;  %v984_v27 = vmax.f32 %v2550_v53, %v2556_v0  ;;  %v2575_v31 = vmul.f32 %v2389_v39, %v783_v22  ;;  %v1032_v35 = vmax.f32 %v2553_v58, %v2559_v6 }
 0x154   : > { %4181 = vst [vmem:[#allocation3_spill] sm:$0xff] %v2564_v13  ;;  %4182 = vst [vmem:[#allocation4_spill] sm:$0xff] %v2567_v18 }
 0x155   : > { %4183 = vst [vmem:[#allocation5_spill] sm:$0xff] %v2570_v24  ;;  %4184 = vst [vmem:[#allocation6_spill] sm:$0xff] %v2575_v31  ;;  %1030 = vmax.xlane.f32.xlu1 %v1029_v8  ;;  %985 = vmax.xlane.f32.xlu0 %v984_v27  ;;  %v987_v37 = vmax.f32 %v2564_v13, %v2570_v24  ;;  %v1035_v22 = vmax.f32 %v2567_v18, %v2575_v31 }
 0x157   : > { %v707_v41 = vpop.f32.mrb[24].mxu0  ;;  %v787_v45 = vpop.f32.mrb[24].mxu1 }
 0x158   : > { %v2582_v49 = vmul.f32 %v2387_v38, %v707_v41  ;;  %v709_v56 = vpop.f32.mrb[25].mxu0  ;;  %v2585_v60 = vmul.f32 %v2387_v38, %v787_v45  ;;  %v789_v4 = vpop.f32.mrb[25].mxu1 }
 0x159   : > { %v2588_v10 = vmul.f32 %v2389_v39, %v709_v56  ;;  %1033 = vmax.xlane.f32.xlu0 %v1032_v35  ;;  %988 = vmax.xlane.f32.xlu1 %v987_v37  ;;  %v711_v8 = vpop.f32.mrb[26].mxu0  ;;  %v2591_v15 = vmul.f32 %v2389_v39, %v789_v4  ;;  %v791_v27 = vpop.f32.mrb[26].mxu1 }
 0x15a   : > { %4185 = vst [vmem:[#allocation7_spill] sm:$0xff] %v2585_v60  ;;  %v2596_v41 = vmul.f32 %v2387_v38, %v711_v8  ;;  %v713_v33 = vpop.f32.mrb[27].mxu0  ;;  %v2599_v45 = vmul.f32 %v2387_v38, %v791_v27  ;;  %v793_v24 = vpop.f32.mrb[27].mxu1 }
 0x15b   : > { %4186 = vst [vmem:[#allocation8_spill] sm:$0xff] %v2588_v10  ;;  %4187 = vst [vmem:[#allocation9_spill] sm:$0xff] %v2591_v15  ;;  %v2602_v56 = vmul.f32 %v2389_v39, %v713_v33  ;;  %v990_v35 = vmax.f32 %v2582_v49, %v2588_v10  ;;  %v2607_v37 = vmul.f32 %v2389_v39, %v793_v24 }
 0x15c   : > { %4188 = vst [vmem:[#allocation10_spill] sm:$0xff] %v2596_v41  ;;  %v1038_v4 = vmax.f32 %v2585_v60, %v2591_v15 }
 0x15d   : > { %4189 = vst [vmem:[#allocation11_spill] sm:$0xff] %v2602_v56  ;;  %4190 = vst [vmem:[#allocation12_spill] sm:$0xff] %v2607_v37  ;;  %1036 = vmax.xlane.f32.xlu1 %v1035_v22  ;;  %991 = vmax.xlane.f32.xlu0 %v990_v35  ;;  %v993_v8 = vmax.f32 %v2596_v41, %v2602_v56  ;;  %v1041_v56 = vmax.f32 %v2599_v45, %v2607_v37  ;;  %v2650_v37 = vld [vmem:[#allocation2] sm:$0xff] }
 0x15e   : > { %4192 = vst [vmem:[#allocation13_spill] sm:$0xff] %v2650_v37 }
 0x15f   : > { %v717_v27 = vpop.f32.mrb[28].mxu0  ;;  %v797_v31 = vpop.f32.mrb[28].mxu1 }
 0x160   : > { %v2614_v18 = vmul.f32 %v2387_v38, %v717_v27  ;;  %v719_v33 = vpop.f32.mrb[29].mxu0  ;;  %v2617_v13 = vmul.f32 %v2387_v38, %v797_v31  ;;  %v799_v10 = vpop.f32.mrb[29].mxu1 }
 0x161   : > { %v2620_v24 = vmul.f32 %v2389_v39, %v719_v33  ;;  %1039 = vmax.xlane.f32.xlu0 %v1038_v4  ;;  %994 = vmax.xlane.f32.xlu1 %v993_v8  ;;  %v721_v22 = vpop.f32.mrb[30].mxu0  ;;  %v2623_v35 = vmul.f32 %v2389_v39, %v799_v10  ;;  %v801_v41 = vpop.f32.mrb[30].mxu1 }
 0x162   : > { %v2628_v27 = vmul.f32 %v2387_v38, %v721_v22  ;;  %v723_v15 = vpop.f32.mrb[31].mxu0  ;;  %v2631_v31 = vmul.f32 %v2387_v38, %v801_v41  ;;  %v803_v60 = vpop.f32.mrb[31].mxu1 }
 0x163   : > { %v2634_v33 = vmul.f32 %v2389_v39, %v723_v15  ;;  %v996_v4 = vmax.f32 %v2614_v18, %v2620_v24  ;;  %v2639_v10 = vmul.f32 %v2389_v39, %v803_v60  ;;  %v1044_v8 = vmax.f32 %v2617_v13, %v2623_v35 }
 0x164   : > { %v4191_v15 = vlaneseq }
 0x165   : > { %1042 = vmax.xlane.f32.xlu1 %v1041_v56  ;;  %997 = vmax.xlane.f32.xlu0 %v996_v4  ;;  %v999_v22 = vmax.f32 %v2628_v27, %v2634_v33  ;;  %v1047_v38 = vmax.f32 %v2631_v31, %v2639_v10  ;;  %v2657_v56 = vld [vmem:[#allocation2 + $0x88] sm:$0xff] }
 0x166   : > { %v2648_v41 = vand.u32 127, %v4191_v15  ;;  %4194 = vst [vmem:[#allocation15_spill] sm:$0xff] %v2657_v56 }
 0x168   : > { %v2653_v39 = vadd.s32 128, %v2648_v41 }
 0x169   : > { %1045 = vmax.xlane.f32.xlu0 %v1044_v8  ;;  %1000 = vmax.xlane.f32.xlu1 %v999_v22  ;;  %v2672_v22 = vld [vmem:[#allocation2 + $0x80] sm:$0xff] }
 0x16a   : > { %4196 = vst [vmem:[#allocation17_spill] sm:$0xff] %v2672_v22 }
 0x16d   : > { %1048 = vmax.xlane.f32.xlu1 %v1047_v38 }
 0x1ba   : > { %v2655_v60 = vpop.xlane.xlu0 %955 }
 0x1bb   : > { %4193 = vst [vmem:[#allocation14_spill] sm:$0xff] %v2655_v60  ;;  %vm1050_vm1 = vcmp.eq.f32.partialorder %v2392_v42, %v2655_v60  ;;  %vm1051_vm2 = vcmp.eq.f32.partialorder %v2398_v46, %v2655_v60  ;;  %vm4171_vm3 = vcmp.gt.f32.partialorder %v2655_v60, %v2650_v37 }
 0x1bc   : > { %v1786_v4 = vsel %vm4171_vm3, %v2655_v60, %v2650_v37  ;;  %v2670_v8 = vpop.xlane.xlu1 %1006  ;;  %v1114_v38 = vsel %vm1050_vm1, %v2648_v41, 256  ;;  %v1115_v42 = vsel %vm1051_vm2, %v2653_v39, 256 }
 0x1bd   : > { %4195 = vst [vmem:[#allocation16_spill] sm:$0xff] %v2670_v8  ;;  %1819 = vst.msk [vmem:[#allocation2] sm:$0xff] %vm291_vm0, %v1786_v4  ;;  %vm1084_vm4 = vcmp.eq.f32.partialorder %v2407_v51, %v2670_v8  ;;  %vm1085_vm5 = vcmp.eq.f32.partialorder %v2413_v55, %v2670_v8  ;;  %vm4131_vm6 = vcmp.gt.f32.partialorder %v2670_v8, %v2657_v56 }
 0x1be   : > { %vm1178_vm7 = vcmp.lt.s32.totalorder %v1114_v38, %v1115_v42  ;;  %v1803_v46 = vsel %vm4131_vm6, %v2670_v8, %v2657_v56  ;;  %v2688_v15 = vpop.xlane.xlu0 %1003  ;;  %v1148_v4 = vsel %vm1084_vm4, %v2648_v41, 256  ;;  %v1149_v51 = vsel %vm1085_vm5, %v2653_v39, 256 }
 0x1bf   : > { %4197 = vst [vmem:[#allocation18_spill] sm:$0xff] %v2688_v15  ;;  %v2690_v37 = vsel %vm1178_vm7, %v1114_v38, %v1115_v42  ;;  %1836 = vst.msk [vmem:[#allocation2 + $0x88] sm:$0xff] %vm291_vm0, %v1803_v46  ;;  %vm1082_vm8 = vcmp.eq.f32.partialorder %v2395_v43, %v2688_v15  ;;  %vm1083_vm9 = vcmp.eq.f32.partialorder %v2401_v47, %v2688_v15  ;;  %v2707_v42 = vld [vmem:[#allocation2 + $0x8] sm:$0xff]  ;;  %v2712_v47 = vld [vmem:[#allocation2 + $0x10] sm:$0xff] }
 0x1c0   : > { %4198 = vst [vmem:[#allocation19_spill] sm:$0xff] %v2690_v37  ;;  %vm4163_vm10 = vcmp.gt.f32.partialorder %v2688_v15, %v2672_v22  ;;  %v1181_v55 = vshra.s32 %v2690_v37, 16  ;;  %4199 = vst [vmem:[#allocation20_spill] sm:$0xff] %v2707_v42  ;;  %v1146_v46 = vsel %vm1082_vm8, %v2648_v41, 256  ;;  %v1147_v43 = vsel %vm1083_vm9, %v2653_v39, 256 }
 0x1c1   : > { %v1802_v38 = vsel %vm4163_vm10, %v2688_v15, %v2672_v22  ;;  %4200 = vst [vmem:[#allocation21_spill] sm:$0xff] %v2712_v47  ;;  %vm1434_vm11 = vcmp.lt.s32.totalorder %v1146_v46, %v1147_v43  ;;  %vm1450_vm12 = vcmp.lt.s32.totalorder %v1148_v4, %v1149_v51 }
 0x1c2   : > { %1835 = vst.msk [vmem:[#allocation2 + $0x80] sm:$0xff] %vm291_vm0, %v1802_v38  ;;  %v2714_v56 = vcvt.s32.f32 %v1181_v55  ;;  %v2716_v8 = vpop.xlane.xlu0 %958  ;;  %v2718_v60 = vpop.xlane.xlu1 %961  ;;  %v2720_v37 = vsel %vm1434_vm11, %v1146_v46, %v1147_v43  ;;  %v2740_v38 = vld [vmem:[#allocation2 + $0x90] sm:$0xff]  ;;  %v2749_v43 = vld [vmem:[#allocation2 + $0x18] sm:$0xff]  ;;  %v2754_v22 = vsel %vm1450_vm12, %v1148_v4, %v1149_v51 }
 0x1c3   : > { %4201 = vst [vmem:[#allocation22_spill] sm:$0xff] %v2716_v8  ;;  %4202 = vst [vmem:[#allocation23_spill] sm:$0xff] %v2718_v60  ;;  %vm1052_vm13 = vcmp.eq.f32.partialorder %v2404_v50, %v2716_v8  ;;  %vm1053_vm14 = vcmp.eq.f32.partialorder %v2410_v54, %v2716_v8  ;;  %vm4159_vm15 = vcmp.gt.f32.partialorder %v2716_v8, %v2707_v42  ;;  %v1437_v46 = vshra.s32 %v2720_v37, 16  ;;  %v2789_v54 = vld [vmem:[#allocation2 + $0x98] sm:$0xff] }
 0x1c4   : > { %4203 = vst [vmem:[#allocation24_spill] sm:$0xff] %v2720_v37  ;;  %vm1054_vm1 = vcmp.eq.f32.partialorder %v2422_v61, %v2718_v60  ;;  %1184 = vmin.xlane.f32.xlu0 %v2714_v56  ;;  %v1787_v55 = vsel %vm4159_vm15, %v2716_v8, %v2707_v42  ;;  %vm1055_vm2 = vcmp.eq.f32.partialorder %v2428_v1, %v2718_v60  ;;  %4204 = vst [vmem:[#allocation25_spill] sm:$0xff] %v2740_v38 }
 0x1c5   : > { %vm4160_vm4 = vcmp.gt.f32.partialorder %v2718_v60, %v2712_v47  ;;  %1820 = vst.msk [vmem:[#allocation2 + $0x8] sm:$0xff] %vm291_vm0, %v1787_v55  ;;  %4205 = vst [vmem:[#allocation26_spill] sm:$0xff] %v2749_v43  ;;  %v1118_v42 = vsel %vm1054_vm1, %v2648_v41, 256  ;;  %v1119_v1 = vsel %vm1055_vm2, %v2653_v39, 256  ;;  %v2761_v37 = vcvt.s32.f32 %v1437_v46 }
 0x1c6   : > { %v1788_v61 = vsel %vm4160_vm4, %v2718_v60, %v2712_v47  ;;  %v2757_v15 = vpop.xlane.xlu0 %1009  ;;  %v2759_v55 = vpop.xlane.xlu1 %964  ;;  %vm1210_vm5 = vcmp.lt.s32.totalorder %v1118_v42, %v1119_v1  ;;  %v1116_v47 = vsel %vm1052_vm13, %v2648_v41, 256  ;;  %v1117_v4 = vsel %vm1053_vm14, %v2653_v39, 256  ;;  %4208 = vst [vmem:[#allocation29_spill] sm:$0xff] %v2789_v54 }
 0x1c7   : > { %1821 = vst.msk [vmem:[#allocation2 + $0x10] sm:$0xff] %vm291_vm0, %v1788_v61  ;;  %4206 = vst [vmem:[#allocation27_spill] sm:$0xff] %v2757_v15  ;;  %vm1086_vm7 = vcmp.eq.f32.partialorder %v2425_v63, %v2757_v15  ;;  %vm1087_vm8 = vcmp.eq.f32.partialorder %v2431_v3, %v2757_v15  ;;  %vm4152_vm9 = vcmp.gt.f32.partialorder %v2757_v15, %v2740_v38  ;;  %v2799_v61 = vld [vmem:[#allocation2 + $0x20] sm:$0xff] }
 0x1c8   : > { %4207 = vst [vmem:[#allocation28_spill] sm:$0xff] %v2759_v55  ;;  %vm1056_vm11 = vcmp.eq.f32.partialorder %v2434_v5, %v2759_v55  ;;  %v1804_v50 = vsel %vm4152_vm9, %v2757_v15, %v2740_v38  ;;  %vm1057_vm12 = vcmp.eq.f32.partialorder %v2440_v9, %v2759_v55  ;;  %vm4124_vm13 = vcmp.gt.f32.partialorder %v2759_v55, %v2749_v43  ;;  %v2841_v5 = vld [vmem:[#allocation2 + $0xa0] sm:$0xff] }
 0x1c9   : > { %1440 = vmin.xlane.f32.xlu0 %v2761_v37  ;;  %v2791_v51 = vsel %vm1210_vm5, %v1118_v42, %v1119_v1  ;;  %1837 = vst.msk [vmem:[#allocation2 + $0x90] sm:$0xff] %vm291_vm0, %v1804_v50  ;;  %v1789_v46 = vsel %vm4124_vm13, %v2759_v55, %v2749_v43  ;;  %4209 = vst [vmem:[#allocation30_spill] sm:$0xff] %v2799_v61  ;;  %vm1194_vm14 = vcmp.lt.s32.totalorder %v1116_v47, %v1117_v4 }
 0x1ca   : > { %v1213_v38 = vshra.s32 %v2791_v51, 16  ;;  %1822 = vst.msk [vmem:[#allocation2 + $0x18] sm:$0xff] %vm291_vm0, %v1789_v46  ;;  %v2803_v8 = vpop.xlane.xlu1 %1012  ;;  %v2805_v60 = vpop.xlane.xlu0 %967  ;;  %v2807_v42 = vsel %vm1194_vm14, %v1116_v47, %v1117_v4  ;;  %v1150_v1 = vsel %vm1086_vm7, %v2648_v41, 256  ;;  %v1151_v50 = vsel %vm1087_vm8, %v2653_v39, 256  ;;  %4212 = vst [vmem:[#allocation33_spill] sm:$0xff] %v2841_v5 }
 0x1cb   : > { %4210 = vst [vmem:[#allocation31_spill] sm:$0xff] %v2803_v8  ;;  %4211 = vst [vmem:[#allocation32_spill] sm:$0xff] %v2805_v60  ;;  %v1453_v43 = vshra.s32 %v2754_v22, 16  ;;  %vm4095_vm1 = vcmp.gt.f32.partialorder %v2803_v8, %v2789_v54  ;;  %vm1058_vm2 = vcmp.eq.f32.partialorder %v2454_v17, %v2805_v60  ;;  %v1120_v47 = vsel %vm1056_vm11, %v2648_v41, 256 }
 0x1cc   : > { %v1121_v63 = vsel %vm1057_vm12, %v2653_v39, 256  ;;  %v1805_v3 = vsel %vm4095_vm1, %v2803_v8, %v2789_v54  ;;  %vm1059_vm5 = vcmp.eq.f32.partialorder %v2460_v21, %v2805_v60  ;;  %vm4130_vm7 = vcmp.gt.f32.partialorder %v2805_v60, %v2799_v61  ;;  %v2850_v54 = vld [vmem:[#allocation2 + $0x28] sm:$0xff] }
 0x1cd   : > { %v2839_v4 = vcvt.s32.f32 %v1213_v38  ;;  %1838 = vst.msk [vmem:[#allocation2 + $0x98] sm:$0xff] %vm291_vm0, %v1805_v3  ;;  %v1790_v9 = vsel %vm4130_vm7, %v2805_v60, %v2799_v61  ;;  %v1197_v46 = vshra.s32 %v2807_v42, 16  ;;  %4213 = vst [vmem:[#allocation34_spill] sm:$0xff] %v2850_v54  ;;  %vm1466_vm8 = vcmp.lt.s32.totalorder %v1150_v1, %v1151_v50 }
 0x1ce   : > { %1823 = vst.msk [vmem:[#allocation2 + $0x20] sm:$0xff] %vm291_vm0, %v1790_v9  ;;  %v2854_v21 = vpop.xlane.xlu0 %1015  ;;  %v2856_v38 = vpop.xlane.xlu1 %970  ;;  %v2858_v3 = vsel %vm1466_vm8, %v1150_v1, %v1151_v50  ;;  %v1122_v55 = vsel %vm1058_vm2, %v2648_v41, 256  ;;  %v1123_v61 = vsel %vm1059_vm5, %v2653_v39, 256  ;;  %vm1226_vm11 = vcmp.lt.s32.totalorder %v1120_v47, %v1121_v63  ;;  %v2882_v50 = vld [vmem:[#allocation2 + $0xa8] sm:$0xff] }
 0x1cf   : > { %1216 = vmin.xlane.f32.xlu0 %v2839_v4  ;;  %4214 = vst [vmem:[#allocation35_spill] sm:$0xff] %v2854_v21  ;;  %4215 = vst [vmem:[#allocation36_spill] sm:$0xff] %v2856_v38  ;;  %v2865_v15 = vcvt.s32.f32 %v1197_v46  ;;  %vm1090_vm12 = vcmp.eq.f32.partialorder %v2457_v19, %v2854_v21  ;;  %vm1091_vm14 = vcmp.eq.f32.partialorder %v2463_v23, %v2854_v21  ;;  %v2880_v1 = vcvt.s32.f32 %v1453_v43  ;;  %v2931_v23 = vld [vmem:[#allocation2 + $0xb0] sm:$0xff] }
 0x1d0   : > { %vm4108_vm8 = vcmp.gt.f32.partialorder %v2854_v21, %v2841_v5  ;;  %vm4098_vm2 = vcmp.gt.f32.partialorder %v2856_v38, %v2850_v54  ;;  %4218 = vst [vmem:[#allocation39_spill] sm:$0xff] %v2882_v50  ;;  %v1469_v46 = vshra.s32 %v2858_v3, 16  ;;  %vm1242_vm5 = vcmp.lt.s32.totalorder %v1122_v55, %v1123_v61  ;;  %4224 = vst [vmem:[#allocation45_spill] sm:$0xff] %v2931_v23 }
 0x1d1   : > { %4216 = vst [vmem:[#allocation37_spill] sm:$0xff] %v2865_v15  ;;  %v1806_v17 = vsel %vm4108_vm8, %v2854_v21, %v2841_v5  ;;  %4217 = vst [vmem:[#allocation38_spill] sm:$0xff] %v2880_v1  ;;  %1200 = vmin.xlane.f32.xlu1 %v2865_v15  ;;  %v1791_v9 = vsel %vm4098_vm2, %v2856_v38, %v2850_v54  ;;  %v2892_v5 = vld [vmem:[#allocation2 + $0x30] sm:$0xff]  ;;  %v2894_v60 = vsel %vm1226_vm11, %v1120_v47, %v1121_v63 }
 0x1d2   : > { %1839 = vst.msk [vmem:[#allocation2 + $0xa0] sm:$0xff] %vm291_vm0, %v1806_v17  ;;  %4219 = vst [vmem:[#allocation40_spill] sm:$0xff] %v2892_v5  ;;  %vm1088_vm1 = vcmp.eq.f32.partialorder %v2437_v7, %v2803_v8  ;;  %v2899_v43 = vpop.xlane.xlu1 %1018  ;;  %v2901_v17 = vpop.xlane.xlu0 %973  ;;  %v2903_v15 = vsel %vm1242_vm5, %v1122_v55, %v1123_v61  ;;  %v1154_v54 = vsel %vm1090_vm12, %v2648_v41, 256  ;;  %v1155_v47 = vsel %vm1091_vm14, %v2653_v39, 256 }
 0x1d3   : > { %4220 = vst [vmem:[#allocation41_spill] sm:$0xff] %v2894_v60  ;;  %1824 = vst.msk [vmem:[#allocation2 + $0x28] sm:$0xff] %vm291_vm0, %v1791_v9  ;;  %vm1089_vm11 = vcmp.eq.f32.partialorder %v2447_v12, %v2803_v8  ;;  %v2915_v63 = vcvt.s32.f32 %v1469_v46  ;;  %vm4099_vm2 = vcmp.gt.f32.partialorder %v2899_v43, %v2882_v50  ;;  %v1229_v55 = vshra.s32 %v2894_v60, 16  ;;  %v2942_v46 = vld [vmem:[#allocation2 + $0x38] sm:$0xff] }
 0x1d4   : > { %4221 = vst [vmem:[#allocation42_spill] sm:$0xff] %v2899_v43  ;;  %4222 = vst [vmem:[#allocation43_spill] sm:$0xff] %v2901_v17  ;;  %v1807_v19 = vsel %vm4099_vm2, %v2899_v43, %v2882_v50  ;;  %vm1062_vm12 = vcmp.eq.f32.partialorder %v2486_v40, %v2901_v17  ;;  %vm1063_vm14 = vcmp.eq.f32.partialorder %v2492_v48, %v2901_v17  ;;  %v1245_v9 = vshra.s32 %v2903_v15, 16 }
 0x1d5   : > { %4223 = vst [vmem:[#allocation44_spill] sm:$0xff] %v2915_v63  ;;  %vm4107_vm5 = vcmp.gt.f32.partialorder %v2901_v17, %v2892_v5  ;;  %1472 = vmin.xlane.f32.xlu0 %v2915_v63  ;;  %1456 = vmin.xlane.f32.xlu1 %v2880_v1  ;;  %1840 = vst.msk [vmem:[#allocation2 + $0xa8] sm:$0xff] %vm291_vm0, %v1807_v19  ;;  %vm1498_vm2 = vcmp.lt.s32.totalorder %v1154_v54, %v1155_v47  ;;  %v1152_v50 = vsel %vm1088_vm1, %v2648_v41, 256 }
 0x1d6   : > { %v1792_v61 = vsel %vm4107_vm5, %v2901_v17, %v2892_v5  ;;  %4225 = vst [vmem:[#allocation46_spill] sm:$0xff] %v2942_v46  ;;  %v2949_v21 = vpop.xlane.xlu0 %1021  ;;  %v2951_v19 = vpop.xlane.xlu1 %976  ;;  %v2953_v1 = vsel %vm1498_vm2, %v1154_v54, %v1155_v47  ;;  %v1153_v5 = vsel %vm1089_vm11, %v2653_v39, 256  ;;  %v1126_v63 = vsel %vm1062_vm12, %v2648_v41, 256  ;;  %v2993_v54 = vld [vmem:[#allocation2 + $0xb8] sm:$0xff]  ;;  %v2995_v47 = vld [vmem:[#allocation2 + $0x40] sm:$0xff] }
 0x1d7   : > { %1825 = vst.msk [vmem:[#allocation2 + $0x30] sm:$0xff] %vm291_vm0, %v1792_v61  ;;  %4226 = vst [vmem:[#allocation47_spill] sm:$0xff] %v2949_v21  ;;  %v1127_v7 = vsel %vm1063_vm14, %v2653_v39, 256  ;;  %v2967_v61 = vcvt.s32.f32 %v1245_v9  ;;  %v2969_v60 = vcvt.s32.f32 %v1229_v55  ;;  %vm4106_vm1 = vcmp.gt.f32.partialorder %v2949_v21, %v2931_v23 }
 0x1d8   : > { %4227 = vst [vmem:[#allocation48_spill] sm:$0xff] %v2951_v19  ;;  %vm1060_vm2 = vcmp.eq.f32.partialorder %v2468_v26, %v2856_v38  ;;  %vm1061_vm11 = vcmp.eq.f32.partialorder %v2474_v30, %v2856_v38  ;;  %v1808_v12 = vsel %vm4106_vm1, %v2949_v21, %v2931_v23  ;;  %vm4113_vm12 = vcmp.gt.f32.partialorder %v2951_v19, %v2942_v46 }
 0x1d9   : > { %1248 = vmin.xlane.f32.xlu0 %v2967_v61  ;;  %1232 = vmin.xlane.f32.xlu1 %v2969_v60  ;;  %1841 = vst.msk [vmem:[#allocation2 + $0xb0] sm:$0xff] %vm291_vm0, %v1808_v12  ;;  %v1793_v40 = vsel %vm4113_vm12, %v2951_v19, %v2942_v46  ;;  %v1501_v48 = vshra.s32 %v2953_v1, 16  ;;  %vm1482_vm14 = vcmp.lt.s32.totalorder %v1152_v50, %v1153_v5  ;;  %4228 = vst [vmem:[#allocation49_spill] sm:$0xff] %v2993_v54 }
 0x1da   : > { %4229 = vst [vmem:[#allocation50_spill] sm:$0xff] %v2995_v47  ;;  %vm1274_vm1 = vcmp.lt.s32.totalorder %v1126_v63, %v1127_v7  ;;  %vm1094_vm5 = vcmp.eq.f32.partialorder %v2489_v44, %v2949_v21  ;;  %vm1095_vm8 = vcmp.eq.f32.partialorder %v2495_v52, %v2949_v21  ;;  %1826 = vst.msk [vmem:[#allocation2 + $0x38] sm:$0xff] %vm291_vm0, %v1793_v40  ;;  %v3004_v9 = vpop.xlane.xlu1 %1024  ;;  %v3006_v12 = vpop.xlane.xlu0 %979  ;;  %v1124_v8 = vsel %vm1060_vm2, %v2648_v41, 256  ;;  %v3049_v40 = vld [vmem:[#allocation2 + $0x48] sm:$0xff] }
 0x1db   : > { %v3002_v55 = vsel %vm1482_vm14, %v1152_v50, %v1153_v5  ;;  %4230 = vst [vmem:[#allocation51_spill] sm:$0xff] %v3004_v9  ;;  %4231 = vst [vmem:[#allocation52_spill] sm:$0xff] %v3006_v12  ;;  %v3008_v46 = vsel %vm1274_vm1, %v1126_v63, %v1127_v7  ;;  %v3010_v23 = vcvt.s32.f32 %v1501_v48  ;;  %v1125_v5 = vsel %vm1061_vm11, %v2653_v39, 256  ;;  %v3041_v7 = vld [vmem:[#allocation2 + $0xc0] sm:$0xff] }
 0x1dc   : > { %v1485_v17 = vshra.s32 %v3002_v55, 16  ;;  %vm1092_vm14 = vcmp.eq.f32.partialorder %v2471_v28, %v2899_v43  ;;  %vm4117_vm1 = vcmp.gt.f32.partialorder %v3004_v9, %v2993_v54  ;;  %vm4122_vm12 = vcmp.gt.f32.partialorder %v3006_v12, %v2995_v47  ;;  %4232 = vst [vmem:[#allocation53_spill] sm:$0xff] %v3041_v7  ;;  %4234 = vst [vmem:[#allocation55_spill] sm:$0xff] %v3049_v40 }
 0x1dd   : > { %1504 = vmin.xlane.f32.xlu0 %v3010_v23  ;;  %v1809_v26 = vsel %vm4117_vm1, %v3004_v9, %v2993_v54  ;;  %v1794_v30 = vsel %vm4122_vm12, %v3006_v12, %v2995_v47  ;;  %v1277_v63 = vshra.s32 %v3008_v46, 16  ;;  %vm1093_vm2 = vcmp.eq.f32.partialorder %v2479_v32, %v2899_v43 }
 0x1de   : > { %v3028_v50 = vcvt.s32.f32 %v1485_v17  ;;  %1842 = vst.msk [vmem:[#allocation2 + $0xb8] sm:$0xff] %vm291_vm0, %v1809_v26  ;;  %1827 = vst.msk [vmem:[#allocation2 + $0x40] sm:$0xff] %vm291_vm0, %v1794_v30  ;;  %vm1258_vm11 = vcmp.lt.s32.totalorder %v1124_v8, %v1125_v5  ;;  %v3047_v17 = vpop.xlane.xlu0 %1027  ;;  %v3051_v48 = vpop.xlane.xlu1 %982  ;;  %v1158_v54 = vsel %vm1094_vm5, %v2648_v41, 256  ;;  %v1159_v47 = vsel %vm1095_vm8, %v2653_v39, 256 }
 0x1df   : > { %4233 = vst [vmem:[#allocation54_spill] sm:$0xff] %v3047_v17  ;;  %4235 = vst [vmem:[#allocation56_spill] sm:$0xff] %v3051_v48  ;;  %v3062_v26 = vcvt.s32.f32 %v1277_v63  ;;  %v3064_v30 = vsel %vm1258_vm11, %v1124_v8, %v1125_v5  ;;  %v1156_v38 = vsel %vm1092_vm14, %v2648_v41, 256  ;;  %vm1064_vm1 = vcmp.eq.f32.partialorder %v2500_v57, %v2951_v19  ;;  %v3089_v8 = vld [vmem:[#allocation2 + $0xc8] sm:$0xff] }
 0x1e0   : > { %1488 = vmin.xlane.f32.xlu1 %v3028_v50  ;;  %vm1066_vm5 = vcmp.eq.f32.partialorder %v2518_v11, %v3006_v12  ;;  %v1261_v44 = vshra.s32 %v3064_v30, 16  ;;  %vm4119_vm8 = vcmp.gt.f32.partialorder %v3047_v17, %v3041_v7  ;;  %vm4123_vm14 = vcmp.gt.f32.partialorder %v3051_v48, %v3049_v40  ;;  %4237 = vst [vmem:[#allocation58_spill] sm:$0xff] %v3089_v8 }
 0x1e1   : > { %4236 = vst [vmem:[#allocation57_spill] sm:$0xff] %v3062_v26  ;;  %1280 = vmin.xlane.f32.xlu0 %v3062_v26  ;;  %v1810_v28 = vsel %vm4119_vm8, %v3047_v17, %v3041_v7  ;;  %vm1530_vm11 = vcmp.lt.s32.totalorder %v1158_v54, %v1159_v47  ;;  %v1157_v52 = vsel %vm1093_vm2, %v2653_v39, 256  ;;  %v1795_v63 = vsel %vm4123_vm14, %v3051_v48, %v3049_v40  ;;  %v3103_v26 = vld [vmem:[#allocation2 + $0x50] sm:$0xff] }
 0x1e2   : > { %v3091_v5 = vcvt.s32.f32 %v1261_v44  ;;  %1843 = vst.msk [vmem:[#allocation2 + $0xc0] sm:$0xff] %vm291_vm0, %v1810_v28  ;;  %v3099_v7 = vsel %vm1530_vm11, %v1158_v54, %v1159_v47  ;;  %vm1514_vm8 = vcmp.lt.s32.totalorder %v1156_v38, %v1157_v52  ;;  %v3101_v21 = vpop.xlane.xlu1 %1030  ;;  %4239 = vst [vmem:[#allocation60_spill] sm:$0xff] %v3103_v26  ;;  %v3105_v32 = vpop.xlane.xlu0 %985  ;;  %vm1065_vm2 = vcmp.eq.f32.partialorder %v2506_v62, %v2951_v19 }
 0x1e3   : > { %4238 = vst [vmem:[#allocation59_spill] sm:$0xff] %v3101_v21  ;;  %4240 = vst [vmem:[#allocation61_spill] sm:$0xff] %v3105_v32  ;;  %vm1067_vm12 = vcmp.eq.f32.partialorder %v2524_v16, %v3006_v12  ;;  %v1533_v44 = vshra.s32 %v3099_v7, 16  ;;  %v3113_v28 = vsel %vm1514_vm8, %v1156_v38, %v1157_v52  ;;  %vm1096_vm11 = vcmp.eq.f32.partialorder %v2503_v59, %v3004_v9  ;;  %v3168_v16 = vld [vmem:[#allocation2 + $0x58] sm:$0xff]  ;;  %v3231_v12 = vld [vmem:[#allocation2 + $0x60] sm:$0xff] }
 0x1e4   : > { %1828 = vst.msk [vmem:[#allocation2 + $0x48] sm:$0xff] %vm291_vm0, %v1795_v63  ;;  %vm1097_vm14 = vcmp.eq.f32.partialorder %v2511_v2, %v3004_v9  ;;  %1264 = vmin.xlane.f32.xlu1 %v3091_v5  ;;  %v1517_v54 = vshra.s32 %v3113_v28, 16  ;;  %vm4128_vm13 = vcmp.gt.f32.partialorder %v3101_v21, %v3089_v8  ;;  %vm4129_vm8 = vcmp.gt.f32.partialorder %v3105_v32, %v3103_v26  ;;  %v3136_v63 = vld [vmem:[#allocation2 + $0xd0] sm:$0xff] }
 0x1e5   : > { %v3123_v47 = vcvt.s32.f32 %v1533_v44  ;;  %v1811_v38 = vsel %vm4128_vm13, %v3101_v21, %v3089_v8  ;;  %v1130_v52 = vsel %vm1066_vm5, %v2648_v41, 256  ;;  %4241 = vst [vmem:[#allocation62_spill] sm:$0xff] %v3136_v63  ;;  %v1796_v44 = vsel %vm4129_vm8, %v3105_v32, %v3103_v26  ;;  %4244 = vst [vmem:[#allocation65_spill] sm:$0xff] %v3168_v16 }
 0x1e6   : > { %v3138_v40 = vcvt.s32.f32 %v1517_v54  ;;  %1844 = vst.msk [vmem:[#allocation2 + $0xc8] sm:$0xff] %vm291_vm0, %v1811_v38  ;;  %v1131_v8 = vsel %vm1067_vm12, %v2653_v39, 256  ;;  %v1128_v11 = vsel %vm1064_vm1, %v2648_v41, 256  ;;  %v3154_v54 = vpop.xlane.xlu0 %1033  ;;  %v3156_v43 = vpop.xlane.xlu1 %988  ;;  %vm1098_vm5 = vcmp.eq.f32.partialorder %v2521_v14, %v3047_v17  ;;  %1829 = vst.msk [vmem:[#allocation2 + $0x50] sm:$0xff] %vm291_vm0, %v1796_v44 }
 0x1e7   : > { %4242 = vst [vmem:[#allocation63_spill] sm:$0xff] %v3154_v54  ;;  %4243 = vst [vmem:[#allocation64_spill] sm:$0xff] %v3156_v43  ;;  %vm1099_vm13 = vcmp.eq.f32.partialorder %v2527_v20, %v3047_v17  ;;  %1536 = vmin.xlane.f32.xlu0 %v3123_v47  ;;  %vm1306_vm12 = vcmp.lt.s32.totalorder %v1130_v52, %v1131_v8  ;;  %v1129_v57 = vsel %vm1065_vm2, %v2653_v39, 256  ;;  %v1160_v20 = vsel %vm1096_vm11, %v2648_v41, 256 }
 0x1e8   : > { %vm1068_vm1 = vcmp.eq.f32.partialorder %v2532_v25, %v3051_v48  ;;  %1520 = vmin.xlane.f32.xlu1 %v3138_v40  ;;  %v3173_v38 = vsel %vm1306_vm12, %v1130_v52, %v1131_v8  ;;  %vm1290_vm8 = vcmp.lt.s32.totalorder %v1128_v11, %v1129_v57  ;;  %vm4139_vm7 = vcmp.gt.f32.partialorder %v3154_v54, %v3136_v63  ;;  %v4255_v25 = vld [vmem:[#allocation5_spill] sm:$0xff] }
 0x1e9   : > { %vm1069_vm6 = vcmp.eq.f32.partialorder %v2538_v34, %v3051_v48  ;;  %v1309_v44 = vshra.s32 %v3173_v38, 16  ;;  %v3180_v62 = vsel %vm1290_vm8, %v1128_v11, %v1129_v57  ;;  %v1812_v26 = vsel %vm4139_vm7, %v3154_v54, %v3136_v63  ;;  %v3199_v57 = vld [vmem:[#allocation2 + $0xd8] sm:$0xff]  ;;  %4248 = vst [vmem:[#allocation69_spill] sm:$0xff] %v3231_v12 }
 0x1ea   : > { %v1293_v8 = vshra.s32 %v3180_v62, 16  ;;  %1845 = vst.msk [vmem:[#allocation2 + $0xd0] sm:$0xff] %vm291_vm0, %v1812_v26  ;;  %vm4138_vm2 = vcmp.gt.f32.partialorder %v3156_v43, %v3168_v16  ;;  %v1162_v52 = vsel %vm1098_vm5, %v2648_v41, 256  ;;  %v1163_v11 = vsel %vm1099_vm13, %v2653_v39, 256  ;;  %4245 = vst [vmem:[#allocation66_spill] sm:$0xff] %v3199_v57  ;;  %v3201_v63 = vpop.xlane.xlu1 %1036  ;;  %v3203_v19 = vpop.xlane.xlu0 %991 }
 0x1eb   : > { %4246 = vst [vmem:[#allocation67_spill] sm:$0xff] %v3203_v19  ;;  %vm1100_vm8 = vcmp.eq.f32.partialorder %v2535_v29, %v3101_v21  ;;  %vm1101_vm12 = vcmp.eq.f32.partialorder %v2543_v36, %v3101_v21  ;;  %v3209_v26 = vcvt.s32.f32 %v1309_v44  ;;  %v1797_v14 = vsel %vm4138_vm2, %v3156_v43, %v3168_v16  ;;  %v4270_v36 = vld [vmem:[#allocation10_spill] sm:$0xff] }
 0x1ec   : > { %vm1562_vm13 = vcmp.lt.s32.totalorder %v1162_v52, %v1163_v11  ;;  %vm1070_vm5 = vcmp.eq.f32.partialorder %v2550_v53, %v3105_v32  ;;  %v3222_v17 = vcvt.s32.f32 %v1293_v8  ;;  %1830 = vst.msk [vmem:[#allocation2 + $0x58] sm:$0xff] %vm291_vm0, %v1797_v14  ;;  %v1161_v16 = vsel %vm1097_vm14, %v2653_v39, 256 }
 0x1ed   : > { %v3225_v44 = vsel %vm1562_vm13, %v1162_v52, %v1163_v11  ;;  %vm1071_vm2 = vcmp.eq.f32.partialorder %v2556_v0, %v3105_v32  ;;  %1312 = vmin.xlane.f32.xlu0 %v3209_v26  ;;  %vm1546_vm11 = vcmp.lt.s32.totalorder %v1160_v20, %v1161_v16  ;;  %vm4144_vm7 = vcmp.gt.f32.partialorder %v3201_v63, %v3199_v57  ;;  %v3290_v0 = vld [vmem:[#allocation2 + $0x68] sm:$0xff] }
 0x1ee   : > { %4247 = vst [vmem:[#allocation68_spill] sm:$0xff] %v3222_v17  ;;  %v1565_v59 = vshra.s32 %v3225_v44, 16  ;;  %1296 = vmin.xlane.f32.xlu1 %v3222_v17  ;;  %vm1102_vm13 = vcmp.eq.f32.partialorder %v2553_v58, %v3154_v54  ;;  %vm1103_vm14 = vcmp.eq.f32.partialorder %v2559_v6, %v3154_v54  ;;  %v3244_v2 = vsel %vm1546_vm11, %v1160_v20, %v1161_v16  ;;  %v3251_v52 = vpop.xlane.xlu0 %1039  ;;  %v3253_v11 = vpop.xlane.xlu1 %994  ;;  %v3265_v20 = vld [vmem:[#allocation2 + $0xe0] sm:$0xff]  ;;  %v3355_v17 = vld [vmem:[#allocation2 + $0x70] sm:$0xff] }
 0x1ef   : > { %4249 = vst [vmem:[#allocation70_spill] sm:$0xff] %v3244_v2  ;;  %v1813_v8 = vsel %vm4144_vm7, %v3201_v63, %v3199_v57  ;;  %v1549_v9 = vshra.s32 %v3244_v2, 16  ;;  %vm4147_vm11 = vcmp.gt.f32.partialorder %v3203_v19, %v3231_v12  ;;  %v1134_v16 = vsel %vm1070_vm5, %v2648_v41, 256  ;;  %4251 = vst [vmem:[#allocation72_spill] sm:$0xff] %v3265_v20  ;;  %v4252_v2 = vld [vmem:[#allocation3_spill] sm:$0xff] }
 0x1f0   : > { %v3255_v14 = vcvt.s32.f32 %v1565_v59  ;;  %1846 = vst.msk [vmem:[#allocation2 + $0xd8] sm:$0xff] %vm291_vm0, %v1813_v8  ;;  %v1798_v59 = vsel %vm4147_vm11, %v3203_v19, %v3231_v12  ;;  %v1135_v8 = vsel %vm1071_vm2, %v2653_v39, 256  ;;  %v1132_v57 = vsel %vm1068_vm1, %v2648_v41, 256  ;;  %4254 = vst [vmem:[#allocation73_spill] sm:$0xff] %v3290_v0  ;;  %v4265_v6 = vld [vmem:[#allocation7_spill] sm:$0xff] }
 0x1f1   : > { %v1133_v53 = vsel %vm1069_vm6, %v2653_v39, 256  ;;  %vm1072_vm5 = vcmp.eq.f32.partialorder %v4252_v2, %v3156_v43  ;;  %v3287_v12 = vcvt.s32.f32 %v1549_v9  ;;  %1831 = vst.msk [vmem:[#allocation2 + $0x60] sm:$0xff] %vm291_vm0, %v1798_v59  ;;  %vm1338_vm2 = vcmp.lt.s32.totalorder %v1134_v16, %v1135_v8  ;;  %4267 = vst [vmem:[#allocation76_spill] sm:$0xff] %v3355_v17  ;;  %v3422_v2 = vld [vmem:[#allocation2 + $0x78] sm:$0xff] }
 0x1f2   : > { %4250 = vst [vmem:[#allocation71_spill] sm:$0xff] %v3255_v14  ;;  %1568 = vmin.xlane.f32.xlu0 %v3255_v14  ;;  %vm1322_vm7 = vcmp.lt.s32.totalorder %v1132_v57, %v1133_v53  ;;  %vm1073_vm1 = vcmp.eq.f32.partialorder %v4255_v25, %v3156_v43  ;;  %v3294_v32 = vsel %vm1338_vm2, %v1134_v16, %v1135_v8  ;;  %v3300_v48 = vpop.xlane.xlu1 %1042  ;;  %v3302_v9 = vpop.xlane.xlu0 %997  ;;  %v4259_v16 = vld [vmem:[#allocation8_spill] sm:$0xff]  ;;  %v1166_v8 = vsel %vm1102_vm13, %v2648_v41, 256 }
 0x1f3   : > { %4253 = vst [vmem:[#allocation3_spill] sm:$0xff] %v3287_v12  ;;  %4256 = vst [vmem:[#allocation5_spill] sm:$0xff] %v3294_v32  ;;  %v3296_v34 = vsel %vm1322_vm7, %v1132_v57, %v1133_v53  ;;  %vm4151_vm6 = vcmp.gt.f32.partialorder %v3251_v52, %v3265_v20  ;;  %1552 = vmin.xlane.f32.xlu1 %v3287_v12  ;;  %vm1074_vm11 = vcmp.eq.f32.partialorder %v2582_v49, %v3203_v19  ;;  %v3327_v12 = vld [vmem:[#allocation2 + $0xe8] sm:$0xff] }
 0x1f4   : > { %4257 = vst [vmem:[#allocation74_spill] sm:$0xff] %v3296_v34  ;;  %4258 = vst [vmem:[#allocation75_spill] sm:$0xff] %v3300_v48  ;;  %v1341_v59 = vshra.s32 %v3294_v32, 16  ;;  %v1325_v14 = vshra.s32 %v3296_v34, 16  ;;  %v1814_v57 = vsel %vm4151_vm6, %v3251_v52, %v3265_v20  ;;  %vm1075_vm7 = vcmp.eq.f32.partialorder %v4259_v16, %v3203_v19  ;;  %v4261_v20 = vld [vmem:[#allocation4_spill] sm:$0xff] }
 0x1f5   : > { %1847 = vst.msk [vmem:[#allocation2 + $0xe0] sm:$0xff] %vm291_vm0, %v1814_v57  ;;  %vm4157_vm2 = vcmp.gt.f32.partialorder %v3253_v11, %v3290_v0  ;;  %v1167_v53 = vsel %vm1103_vm14, %v2653_v39, 256  ;;  %4260 = vst [vmem:[#allocation8_spill] sm:$0xff] %v3327_v12  ;;  %vm1104_vm6 = vcmp.eq.f32.partialorder %v4261_v20, %v3201_v63  ;;  %v4262_v57 = vld [vmem:[#allocation6_spill] sm:$0xff]  ;;  %vm1106_vm14 = vcmp.eq.f32.partialorder %v4265_v6, %v3251_v52  ;;  %v4274_v16 = vld [vmem:[#allocation12_spill] sm:$0xff] }
 0x1f6   : > { %vm1105_vm9 = vcmp.eq.f32.partialorder %v4262_v57, %v3201_v63  ;;  %v3333_v34 = vcvt.s32.f32 %v1341_v59  ;;  %v3335_v32 = vcvt.s32.f32 %v1325_v14  ;;  %v1799_v58 = vsel %vm4157_vm2, %v3253_v11, %v3290_v0  ;;  %v3364_v29 = vpop.xlane.xlu1 %1000  ;;  %v3379_v21 = vpop.xlane.xlu0 %1045  ;;  %4275 = vst [vmem:[#allocation12_spill] sm:$0xff] %v3422_v2 }
 0x1f7   : > { %vm1594_vm13 = vcmp.lt.s32.totalorder %v1166_v8, %v1167_v53  ;;  %1832 = vst.msk [vmem:[#allocation2 + $0x68] sm:$0xff] %vm291_vm0, %v1799_v58  ;;  %v1164_v14 = vsel %vm1100_vm8, %v2648_v41, 256  ;;  %v1165_v59 = vsel %vm1101_vm12, %v2653_v39, 256  ;;  %v4268_v58 = vld [vmem:[#allocation9_spill] sm:$0xff]  ;;  %vm4168_vm8 = vcmp.gt.f32.partialorder %v3300_v48, %v3327_v12 }
 0x1f8   : > { %4263 = vst [vmem:[#allocation4_spill] sm:$0xff] %v3333_v34  ;;  %4264 = vst [vmem:[#allocation6_spill] sm:$0xff] %v3335_v32  ;;  %v3345_v54 = vsel %vm1594_vm13, %v1166_v8, %v1167_v53  ;;  %1344 = vmin.xlane.f32.xlu0 %v3333_v34  ;;  %1328 = vmin.xlane.f32.xlu1 %v3335_v32  ;;  %vm1107_vm13 = vcmp.eq.f32.partialorder %v4268_v58, %v3251_v52  ;;  %v4272_v32 = vld [vmem:[#allocation11_spill] sm:$0xff]  ;;  %v1137_v49 = vsel %vm1073_vm1, %v2653_v39, 256 }
 0x1f9   : > { %4266 = vst [vmem:[#allocation7_spill] sm:$0xff] %v3345_v54  ;;  %v1597_v8 = vshra.s32 %v3345_v54, 16  ;;  %vm1578_vm2 = vcmp.lt.s32.totalorder %v1164_v14, %v1165_v59  ;;  %4269 = vst [vmem:[#allocation9_spill] sm:$0xff] %v3364_v29  ;;  %vm1076_vm12 = vcmp.eq.f32.partialorder %v4270_v36, %v3253_v11  ;;  %v1815_v0 = vsel %vm4168_vm8, %v3300_v48, %v3327_v12  ;;  %v3393_v12 = vld [vmem:[#allocation2 + $0xf0] sm:$0xff] }
 0x1fa   : > { %v3368_v53 = vsel %vm1578_vm2, %v1164_v14, %v1165_v59  ;;  %vm1078_vm15 = vcmp.eq.f32.partialorder %v2614_v18, %v3302_v9  ;;  %vm1079_vm4 = vcmp.eq.f32.partialorder %v2620_v24, %v3302_v9  ;;  %vm1077_vm10 = vcmp.eq.f32.partialorder %v4272_v32, %v3253_v11  ;;  %1848 = vst.msk [vmem:[#allocation2 + $0xe8] sm:$0xff] %vm291_vm0, %v1815_v0 }
 0x1fb   : > { %4271 = vst [vmem:[#allocation10_spill] sm:$0xff] %v3368_v53  ;;  %v3383_v34 = vcvt.s32.f32 %v1597_v8  ;;  %v1581_v14 = vshra.s32 %v3368_v53, 16  ;;  %vm4169_vm2 = vcmp.gt.f32.partialorder %v3302_v9, %v3355_v17  ;;  %v1138_v59 = vsel %vm1074_vm11, %v2648_v41, 256  ;;  %4273 = vst [vmem:[#allocation11_spill] sm:$0xff] %v3393_v12 }
 0x1fc   : > { %v1800_v8 = vsel %vm4169_vm2, %v3302_v9, %v3355_v17  ;;  %v1139_v0 = vsel %vm1075_vm7, %v2653_v39, 256  ;;  %v1136_v53 = vsel %vm1072_vm5, %v2648_v41, 256  ;;  %vm1108_vm11 = vcmp.eq.f32.partialorder %v2599_v45, %v3300_v48 }
 0x1fd   : > { %1600 = vmin.xlane.f32.xlu0 %v3383_v34  ;;  %v3413_v54 = vcvt.s32.f32 %v1581_v14  ;;  %1833 = vst.msk [vmem:[#allocation2 + $0x70] sm:$0xff] %vm291_vm0, %v1800_v8  ;;  %vm1370_vm8 = vcmp.lt.s32.totalorder %v1138_v59, %v1139_v0  ;;  %vm1354_vm2 = vcmp.lt.s32.totalorder %v1136_v53, %v1137_v49  ;;  %vm1110_vm5 = vcmp.eq.f32.partialorder %v2617_v13, %v3379_v21 }
 0x1fe   : > { %v3424_v25 = vsel %vm1370_vm8, %v1138_v59, %v1139_v0  ;;  %v3426_v17 = vsel %vm1354_vm2, %v1136_v53, %v1137_v49  ;;  %vm1111_vm1 = vcmp.eq.f32.partialorder %v2623_v35, %v3379_v21  ;;  %vm4175_vm3 = vcmp.gt.f32.partialorder %v3379_v21, %v3393_v12  ;;  %v3442_v53 = vpop.xlane.xlu1 %1048 }
 0x1ff   : > { %1584 = vmin.xlane.f32.xlu1 %v3413_v54  ;;  %v1373_v14 = vshra.s32 %v3424_v25, 16  ;;  %v1357_v8 = vshra.s32 %v3426_v17, 16  ;;  %v1816_v59 = vsel %vm4175_vm3, %v3379_v21, %v3393_v12  ;;  %vm1080_vm8 = vcmp.eq.f32.partialorder %v2628_v27, %v3364_v29  ;;  %4276 = vst [vmem:[#allocation77_spill] sm:$0xff] %v3442_v53  ;;  %v3457_v12 = vld [vmem:[#allocation2 + $0xf8] sm:$0xff] }
 0x200   : > { %1849 = vst.msk [vmem:[#allocation2 + $0xf0] sm:$0xff] %vm291_vm0, %v1816_v59  ;;  %vm1081_vm2 = vcmp.eq.f32.partialorder %v2634_v33, %v3364_v29  ;;  %vm1769_vm7 = vcmp.gt.f32.partialorder %v3364_v29, %v3422_v2  ;;  %v1170_v0 = vsel %vm1106_vm14, %v2648_v41, 256  ;;  %v1171_v49 = vsel %vm1107_vm13, %v2653_v39, 256  ;;  %4277 = vst [vmem:[#allocation78_spill] sm:$0xff] %v3457_v12 }
 0x201   : > { %v3459_v43 = vcvt.s32.f32 %v1373_v14  ;;  %v3461_v59 = vcvt.s32.f32 %v1357_v8  ;;  %v1801_v19 = vsel %vm1769_vm7, %v3364_v29, %v3422_v2  ;;  %vm1626_vm3 = vcmp.lt.s32.totalorder %v1170_v0, %v1171_v49 }
 0x202   : > { %1834 = vst.msk [vmem:[#allocation2 + $0x78] sm:$0xff] %vm291_vm0, %v1801_v19  ;;  %v3469_v6 = vsel %vm1626_vm3, %v1170_v0, %v1171_v49  ;;  %v1168_v58 = vsel %vm1104_vm6, %v2648_v41, 256  ;;  %v1169_v14 = vsel %vm1105_vm9, %v2653_v39, 256  ;;  %vm1112_vm14 = vcmp.eq.f32.partialorder %v2631_v31, %v3442_v53 }
 0x203   : > { %1376 = vmin.xlane.f32.xlu0 %v3459_v43  ;;  %1360 = vmin.xlane.f32.xlu1 %v3461_v59  ;;  %v1629_v19 = vshra.s32 %v3469_v6, 16  ;;  %vm1610_vm3 = vcmp.lt.s32.totalorder %v1168_v58, %v1169_v14  ;;  %vm1113_vm13 = vcmp.eq.f32.partialorder %v2639_v10, %v3442_v53  ;;  %vm1785_vm6 = vcmp.gt.f32.partialorder %v3442_v53, %v3457_v12 }
 0x204   : > { %v3488_v20 = vsel %vm1610_vm3, %v1168_v58, %v1169_v14  ;;  %v1817_v57 = vsel %vm1785_vm6, %v3442_v53, %v3457_v12  ;;  %v1142_v8 = vsel %vm1078_vm15, %v2648_v41, 256  ;;  %v1143_v0 = vsel %vm1079_vm4, %v2653_v39, 256 }
 0x205   : > { %v3503_v49 = vcvt.s32.f32 %v1629_v19  ;;  %v1613_v58 = vshra.s32 %v3488_v20, 16  ;;  %1850 = vst.msk [vmem:[#allocation2 + $0xf8] sm:$0xff] %vm291_vm0, %v1817_v57  ;;  %vm1402_vm9 = vcmp.lt.s32.totalorder %v1142_v8, %v1143_v0  ;;  %v1140_v14 = vsel %vm1076_vm12, %v2648_v41, 256 }
 0x206   : > { %v3511_v12 = vsel %vm1402_vm9, %v1142_v8, %v1143_v0  ;;  %v1141_v18 = vsel %vm1077_vm10, %v2653_v39, 256  ;;  %v1174_v24 = vsel %vm1110_vm5, %v2648_v41, 256  ;;  %v1175_v19 = vsel %vm1111_vm1, %v2653_v39, 256 }
 0x207   : > { %1632 = vmin.xlane.f32.xlu0 %v3503_v49  ;;  %v3526_v36 = vcvt.s32.f32 %v1613_v58  ;;  %v1405_v57 = vshra.s32 %v3511_v12, 16  ;;  %vm1386_vm15 = vcmp.lt.s32.totalorder %v1140_v14, %v1141_v18  ;;  %vm1658_vm4 = vcmp.lt.s32.totalorder %v1174_v24, %v1175_v19 }
 0x208   : > { %v3529_v32 = vsel %vm1386_vm15, %v1140_v14, %v1141_v18  ;;  %v3531_v8 = vsel %vm1658_vm4, %v1174_v24, %v1175_v19  ;;  %v1172_v13 = vsel %vm1108_vm11, %v2648_v41, 256  ;;  %vm4278_vm10 = vcmp.eq.f32.partialorder %v4274_v16, %v3300_v48 }
 0x209   : > { %v1173_v35 = vsel %vm4278_vm10, %v2653_v39, 256  ;;  %1616 = vmin.xlane.f32.xlu1 %v3526_v36  ;;  %v3542_v0 = vcvt.s32.f32 %v1405_v57  ;;  %v1389_v58 = vshra.s32 %v3529_v32, 16  ;;  %v1661_v14 = vshra.s32 %v3531_v8, 16 }
 0x20a   : > { %vm1642_vm12 = vcmp.lt.s32.totalorder %v1172_v13, %v1173_v35  ;;  %v1144_v45 = vsel %vm1080_vm8, %v2648_v41, 256  ;;  %v1145_v16 = vsel %vm1081_vm2, %v2653_v39, 256  ;;  %v1176_v24 = vsel %vm1112_vm14, %v2648_v41, 256 }
 0x20b   : > { %v3546_v18 = vsel %vm1642_vm12, %v1172_v13, %v1173_v35  ;;  %1408 = vmin.xlane.f32.xlu0 %v3542_v0  ;;  %v3561_v19 = vcvt.s32.f32 %v1389_v58  ;;  %v3563_v57 = vcvt.s32.f32 %v1661_v14  ;;  %vm1418_vm11 = vcmp.lt.s32.totalorder %v1144_v45, %v1145_v16 }
 0x20c   : > { %v1645_v13 = vshra.s32 %v3546_v18, 16  ;;  %v3566_v27 = vsel %vm1418_vm11, %v1144_v45, %v1145_v16  ;;  %v1177_v33 = vsel %vm1113_vm13, %v2653_v39, 256  ;;  %v2266_v39 = vmov 0   ;;  %v4279_v45 = vld [vmem:[#allocation19_spill] sm:$0xff] }
 0x20d   : > { %1392 = vmin.xlane.f32.xlu1 %v3561_v19  ;;  %vm1674_vm5 = vcmp.lt.s32.totalorder %v1176_v24, %v1177_v33  ;;  %v1421_v41 = vshra.s32 %v3566_v27, 16  ;;  %324 = vst.msk [vmem:[%s3591_s30] sm:$0xff] %vm291_vm0, %v2266_v39  ;;  %325 = vst.msk [vmem:[%s3591_s30 + $0x8] sm:$0xff] %vm291_vm0, %v2266_v39  ;;  %v1180_v16 = vand.u32 65535, %v4279_v45  ;;  %v1196_v45 = vand.u32 65535, %v2807_v42 }
 0x20e   : > { %v3574_v31 = vcvt.s32.f32 %v1645_v13  ;;  %v3577_v35 = vsel %vm1674_vm5, %v1176_v24, %v1177_v33  ;;  %326 = vst.msk [vmem:[%s3591_s30 + $0x10] sm:$0xff] %vm291_vm0, %v2266_v39  ;;  %327 = vst.msk [vmem:[%s3591_s30 + $0x18] sm:$0xff] %vm291_vm0, %v2266_v39  ;;  %v4280_v33 = vld [vmem:[#allocation24_spill] sm:$0xff] }
 0x20f   : > { %1664 = vmin.xlane.f32.xlu0 %v3563_v57  ;;  %v3580_v58 = vcvt.s32.f32 %v1421_v41  ;;  %v1677_v14 = vshra.s32 %v3577_v35, 16  ;;  %328 = vst.msk [vmem:[%s3591_s30 + $0x20] sm:$0xff] %vm291_vm0, %v2266_v39  ;;  %329 = vst.msk [vmem:[%s3591_s30 + $0x28] sm:$0xff] %vm291_vm0, %v2266_v39  ;;  %v1182_v13 = vcvt.s32.f32 %v1180_v16  ;;  %v1436_v41 = vand.u32 65535, %v4280_v33 }
 0x210   : > { %330 = vst.msk [vmem:[%s3591_s30 + $0x30] sm:$0xff] %vm291_vm0, %v2266_v39  ;;  %331 = vst.msk [vmem:[%s3591_s30 + $0x38] sm:$0xff] %vm291_vm0, %v2266_v39  ;;  %v1198_v33 = vcvt.s32.f32 %v1196_v45  ;;  %v4283_v45 = vld [vmem:[#allocation44_spill] sm:$0xff] }
 0x211   : > { %1648 = vmin.xlane.f32.xlu1 %v3574_v31  ;;  %v3584_v10 = vcvt.s32.f32 %v1677_v14  ;;  %332 = vst.msk [vmem:[%s3591_s30 + $0x40] sm:$0xff] %vm291_vm0, %v2266_v39  ;;  %333 = vst.msk [vmem:[%s3591_s30 + $0x48] sm:$0xff] %vm291_vm0, %v2266_v39  ;;  %v1438_v2 = vcvt.s32.f32 %v1436_v41  ;;  %v1468_v41 = vand.u32 65535, %v2858_v3 }
 0x212   : > { %334 = vst.msk [vmem:[%s3591_s30 + $0x50] sm:$0xff] %vm291_vm0, %v2266_v39  ;;  %335 = vst.msk [vmem:[%s3591_s30 + $0x58] sm:$0xff] %vm291_vm0, %v2266_v39 }
 0x213   : > { %336 = vst.msk [vmem:[%s3591_s30 + $0x60] sm:$0xff] %vm291_vm0, %v2266_v39  ;;  %337 = vst.msk [vmem:[%s3591_s30 + $0x68] sm:$0xff] %vm291_vm0, %v2266_v39 }
 0x214   : > { %338 = vst.msk [vmem:[%s3591_s30 + $0x70] sm:$0xff] %vm291_vm0, %v2266_v39  ;;  %339 = vst.msk [vmem:[%s3591_s30 + $0x78] sm:$0xff] %vm291_vm0, %v2266_v39 }
 0x215   : > { %1424 = vmin.xlane.f32.xlu1 %v3580_v58  ;;  %340 = vst.msk [vmem:[%s3591_s30 + $0x80] sm:$0xff] %vm291_vm0, %v2266_v39  ;;  %341 = vst.msk [vmem:[%s3591_s30 + $0x88] sm:$0xff] %vm291_vm0, %v2266_v39 }
 0x216   : > { %342 = vst.msk [vmem:[%s3591_s30 + $0x90] sm:$0xff] %vm291_vm0, %v2266_v39  ;;  %343 = vst.msk [vmem:[%s3591_s30 + $0x98] sm:$0xff] %vm291_vm0, %v2266_v39 }
 0x217   : > { %344 = vst.msk [vmem:[%s3591_s30 + $0xa0] sm:$0xff] %vm291_vm0, %v2266_v39  ;;  %345 = vst.msk [vmem:[%s3591_s30 + $0xa8] sm:$0xff] %vm291_vm0, %v2266_v39 }
 0x218   : > { %346 = vst.msk [vmem:[%s3591_s30 + $0xb0] sm:$0xff] %vm291_vm0, %v2266_v39  ;;  %347 = vst.msk [vmem:[%s3591_s30 + $0xb8] sm:$0xff] %vm291_vm0, %v2266_v39 }
 0x219   : > { %1680 = vmin.xlane.f32.xlu1 %v3584_v10  ;;  %348 = vst.msk [vmem:[%s3591_s30 + $0xc0] sm:$0xff] %vm291_vm0, %v2266_v39  ;;  %349 = vst.msk [vmem:[%s3591_s30 + $0xc8] sm:$0xff] %vm291_vm0, %v2266_v39 }
 0x21a   : > { %350 = vst.msk [vmem:[%s3591_s30 + $0xd0] sm:$0xff] %vm291_vm0, %v2266_v39  ;;  %351 = vst.msk [vmem:[%s3591_s30 + $0xd8] sm:$0xff] %vm291_vm0, %v2266_v39 }
 0x21b   : > { %352 = vst.msk [vmem:[%s3591_s30 + $0xe0] sm:$0xff] %vm291_vm0, %v2266_v39  ;;  %353 = vst.msk [vmem:[%s3591_s30 + $0xe8] sm:$0xff] %vm291_vm0, %v2266_v39 }
 0x21c   : > { %354 = vst.msk [vmem:[%s3591_s30 + $0xf0] sm:$0xff] %vm291_vm0, %v2266_v39  ;;  %355 = vst.msk [vmem:[%s3591_s30 + $0xf8] sm:$0xff] %vm291_vm0, %v2266_v39  ;;  %v1212_v39 = vand.u32 65535, %v2791_v51  ;;  %v4281_v51 = vld [vmem:[#allocation37_spill] sm:$0xff] }
 0x21e   : > { %v1214_v48 = vcvt.s32.f32 %v1212_v39  ;;  %v4282_v39 = vld [vmem:[#allocation41_spill] sm:$0xff] }
 0x251   : > { %v3658_v24 = vpop.xlane.xlu0 %1184 }
 0x252   : > { %vm1186_vm1 = vcmp.eq.f32.partialorder %v2714_v56, %v3658_v24 }
 0x253   : > { %v1187_v14 = vsel %vm1186_vm1, %v1182_v13, inf }
 0x254   : > { %1188 = vmin.xlane.f32.xlu0 %v1187_v14  ;;  %v1470_v14 = vcvt.s32.f32 %v1468_v41 }
 0x256   : > { %v3663_v53 = vpop.xlane.xlu0 %1440 }
 0x257   : > { %vm1442_vm8 = vcmp.eq.f32.partialorder %v2761_v37, %v3663_v53  ;;  %v1452_v37 = vand.u32 65535, %v2754_v22  ;;  %v4284_v22 = vld [vmem:[#allocation38_spill] sm:$0xff] }
 0x258   : > { %v1443_v29 = vsel %vm1442_vm8, %v1438_v2, inf }
 0x259   : > { %1444 = vmin.xlane.f32.xlu0 %v1443_v29 }
 0x25c   : > { %v3669_v16 = vpop.xlane.xlu0 %1216 }
 0x25d   : > { %vm1218_vm2 = vcmp.eq.f32.partialorder %v2839_v4, %v3669_v16  ;;  %v1454_v4 = vcvt.s32.f32 %v1452_v37 }
 0x25e   : > { %v1219_v56 = vsel %vm1218_vm2, %v1214_v48, inf  ;;  %v3673_v13 = vpop.xlane.xlu1 %1200  ;;  %v1244_v48 = vand.u32 65535, %v2903_v15  ;;  %v1500_v15 = vand.u32 65535, %v2953_v1 }
 0x25f   : > { %1220 = vmin.xlane.f32.xlu0 %v1219_v56  ;;  %vm1202_vm14 = vcmp.eq.f32.partialorder %v4281_v51, %v3673_v13  ;;  %v1228_v56 = vand.u32 65535, %v4282_v39 }
 0x260   : > { %v1203_v29 = vsel %vm1202_vm14, %v1198_v33, inf  ;;  %v1246_v41 = vcvt.s32.f32 %v1244_v48  ;;  %v1276_v48 = vand.u32 65535, %v3008_v46  ;;  %v4285_v46 = vld [vmem:[#allocation57_spill] sm:$0xff] }
 0x261   : > { %1204 = vmin.xlane.f32.xlu1 %v1203_v29  ;;  %v1230_v37 = vcvt.s32.f32 %v1228_v56 }
 0x262   : > { %v3679_v42 = vpop.xlane.xlu0 %1472  ;;  %v3681_v2 = vpop.xlane.xlu1 %1456 }
 0x263   : > { %vm1474_vm3 = vcmp.eq.f32.partialorder %v4283_v45, %v3679_v42  ;;  %vm1458_vm13 = vcmp.eq.f32.partialorder %v4284_v22, %v3681_v2  ;;  %v1502_v22 = vcvt.s32.f32 %v1500_v15 }
 0x264   : > { %v1475_v3 = vsel %vm1474_vm3, %v1470_v14, inf  ;;  %v1459_v51 = vsel %vm1458_vm13, %v1454_v4, inf  ;;  %v1484_v14 = vand.u32 65535, %v3002_v55 }
 0x265   : > { %1476 = vmin.xlane.f32.xlu0 %v1475_v3  ;;  %1460 = vmin.xlane.f32.xlu1 %v1459_v51  ;;  %v1278_v51 = vcvt.s32.f32 %v1276_v48 }
 0x266   : > { %v3689_v33 = vpop.xlane.xlu0 %1248  ;;  %v3691_v29 = vpop.xlane.xlu1 %1232  ;;  %v1486_v56 = vcvt.s32.f32 %v1484_v14 }
 0x267   : > { %vm1250_vm9 = vcmp.eq.f32.partialorder %v2967_v61, %v3689_v33  ;;  %vm1234_vm15 = vcmp.eq.f32.partialorder %v2969_v60, %v3691_v29  ;;  %v1260_v60 = vand.u32 65535, %v3064_v30 }
 0x268   : > { %v1251_v39 = vsel %vm1250_vm9, %v1246_v41, inf  ;;  %v1235_v45 = vsel %vm1234_vm15, %v1230_v37, inf }
 0x269   : > { %1252 = vmin.xlane.f32.xlu0 %v1251_v39  ;;  %1236 = vmin.xlane.f32.xlu1 %v1235_v45  ;;  %v1262_v15 = vcvt.s32.f32 %v1260_v60  ;;  %v1516_v39 = vand.u32 65535, %v3113_v28  ;;  %v1308_v28 = vand.u32 65535, %v3173_v38  ;;  %v1564_v60 = vand.u32 65535, %v3225_v44  ;;  %v4287_v38 = vld [vmem:[#allocation70_spill] sm:$0xff]  ;;  %v4288_v44 = vld [vmem:[#allocation71_spill] sm:$0xff] }
 0x26a   : > { %v3699_v4 = vpop.xlane.xlu0 %1504 }
 0x26b   : > { %vm1506_vm4 = vcmp.eq.f32.partialorder %v3010_v23, %v3699_v4  ;;  %v1532_v23 = vand.u32 65535, %v3099_v7  ;;  %v1518_v7 = vcvt.s32.f32 %v1516_v39 }
 0x26c   : > { %v1507_v61 = vsel %vm1506_vm4, %v1502_v22, inf }
 0x26d   : > { %v3704_v1 = vpop.xlane.xlu1 %1488  ;;  %1508 = vmin.xlane.f32.xlu0 %v1507_v61  ;;  %v1534_v45 = vcvt.s32.f32 %v1532_v23  ;;  %v1566_v23 = vcvt.s32.f32 %v1564_v60 }
 0x26e   : > { %vm1490_vm10 = vcmp.eq.f32.partialorder %v3028_v50, %v3704_v1  ;;  %v3709_v3 = vpop.xlane.xlu0 %1280 }
 0x26f   : > { %v1491_v55 = vsel %vm1490_vm10, %v1486_v56, inf  ;;  %vm1282_vm12 = vcmp.eq.f32.partialorder %v4285_v46, %v3709_v3  ;;  %v1310_v56 = vcvt.s32.f32 %v1308_v28  ;;  %v1548_v46 = vand.u32 65535, %v4287_v38  ;;  %v4291_v28 = vld [vmem:[#allocation3_spill] sm:$0xff]  ;;  %v4293_v38 = vld [vmem:[#allocation4_spill] sm:$0xff] }
 0x270   : > { %1492 = vmin.xlane.f32.xlu1 %v1491_v55  ;;  %v1283_v41 = vsel %vm1282_vm12, %v1278_v51, inf }
 0x271   : > { %v3714_v37 = vpop.xlane.xlu1 %1264  ;;  %1284 = vmin.xlane.f32.xlu0 %v1283_v41 }
 0x272   : > { %vm1266_vm11 = vcmp.eq.f32.partialorder %v3091_v5, %v3714_v37  ;;  %v1292_v5 = vand.u32 65535, %v3180_v62 }
 0x273   : > { %v1267_v50 = vsel %vm1266_vm11, %v1262_v15, inf }
 0x274   : > { %1268 = vmin.xlane.f32.xlu1 %v1267_v50  ;;  %v3719_v30 = vpop.xlane.xlu0 %1536  ;;  %v4289_v50 = vld [vmem:[#allocation5_spill] sm:$0xff] }
 0x275   : > { %v3721_v14 = vpop.xlane.xlu1 %1520  ;;  %vm1538_vm5 = vcmp.eq.f32.partialorder %v3123_v47, %v3719_v30  ;;  %v1294_v47 = vcvt.s32.f32 %v1292_v5 }
 0x276   : > { %v1539_v22 = vsel %vm1538_vm5, %v1534_v45, inf  ;;  %vm1522_vm1 = vcmp.eq.f32.partialorder %v3138_v40, %v3721_v14  ;;  %v4286_v40 = vld [vmem:[#allocation68_spill] sm:$0xff]  ;;  %v1340_v45 = vand.u32 65535, %v4289_v50 }
 0x277   : > { %1540 = vmin.xlane.f32.xlu0 %v1539_v22  ;;  %v1523_v48 = vsel %vm1522_vm1, %v1518_v7, inf  ;;  %v4290_v7 = vld [vmem:[#allocation74_spill] sm:$0xff] }
 0x278   : > { %1524 = vmin.xlane.f32.xlu1 %v1523_v48  ;;  %v1324_v22 = vand.u32 65535, %v4290_v7  ;;  %v1342_v60 = vcvt.s32.f32 %v1340_v45 }
 0x27a   : > { %v3729_v61 = vpop.xlane.xlu0 %1312 }
 0x27b   : > { %v3732_v55 = vpop.xlane.xlu1 %1296  ;;  %vm1314_vm8 = vcmp.eq.f32.partialorder %v3209_v26, %v3729_v61  ;;  %v1550_v26 = vcvt.s32.f32 %v1548_v46  ;;  %v4294_v46 = vld [vmem:[#allocation6_spill] sm:$0xff] }
 0x27c   : > { %v1315_v51 = vsel %vm1314_vm8, %v1310_v56, inf  ;;  %vm1298_vm2 = vcmp.eq.f32.partialorder %v4286_v40, %v3732_v55 }
 0x27d   : > { %1316 = vmin.xlane.f32.xlu0 %v1315_v51  ;;  %v1299_v62 = vsel %vm1298_vm2, %v1294_v47, inf  ;;  %v1326_v47 = vcvt.s32.f32 %v1324_v22  ;;  %v4292_v51 = vld [vmem:[#allocation7_spill] sm:$0xff] }
 0x27e   : > { %1300 = vmin.xlane.f32.xlu1 %v1299_v62  ;;  %v1596_v40 = vand.u32 65535, %v4292_v51 }
 0x27f   : > { %v3739_v41 = vpop.xlane.xlu0 %1568 }
 0x280   : > { %vm1570_vm14 = vcmp.eq.f32.partialorder %v4288_v44, %v3739_v41  ;;  %v3743_v15 = vpop.xlane.xlu1 %1552  ;;  %v4295_v44 = vld [vmem:[#allocation10_spill] sm:$0xff]  ;;  %v1598_v50 = vcvt.s32.f32 %v1596_v40 }
 0x281   : > { %v1571_v39 = vsel %vm1570_vm14, %v1566_v23, inf  ;;  %vm1554_vm3 = vcmp.eq.f32.partialorder %v4291_v28, %v3743_v15  ;;  %v1372_v28 = vand.u32 65535, %v3424_v25 }
 0x282   : > { %1572 = vmin.xlane.f32.xlu0 %v1571_v39  ;;  %v1555_v48 = vsel %vm1554_vm3, %v1550_v26, inf  ;;  %v1580_v39 = vand.u32 65535, %v4295_v44 }
 0x283   : > { %1556 = vmin.xlane.f32.xlu1 %v1555_v48  ;;  %v1356_v48 = vand.u32 65535, %v3426_v17  ;;  %v1374_v40 = vcvt.s32.f32 %v1372_v28 }
 0x284   : > { %v1582_v22 = vcvt.s32.f32 %v1580_v39 }
 0x285   : > { %v3749_v5 = vpop.xlane.xlu0 %1344  ;;  %v3751_v56 = vpop.xlane.xlu1 %1328 }
 0x286   : > { %vm1346_vm13 = vcmp.eq.f32.partialorder %v4293_v38, %v3749_v5  ;;  %vm1330_vm9 = vcmp.eq.f32.partialorder %v4294_v46, %v3751_v56  ;;  %v1628_v38 = vand.u32 65535, %v3469_v6 }
 0x287   : > { %v1347_v62 = vsel %vm1346_vm13, %v1342_v60, inf  ;;  %v1331_v23 = vsel %vm1330_vm9, %v1326_v47, inf }
 0x288   : > { %1348 = vmin.xlane.f32.xlu0 %v1347_v62  ;;  %1332 = vmin.xlane.f32.xlu1 %v1331_v23  ;;  %v1630_v62 = vcvt.s32.f32 %v1628_v38  ;;  %v1404_v23 = vand.u32 65535, %v3511_v12  ;;  %v1676_v38 = vand.u32 65535, %v3577_v35 }
 0x28a   : > { %v3759_v26 = vpop.xlane.xlu0 %1600 }
 0x28b   : > { %vm1602_vm15 = vcmp.eq.f32.partialorder %v3383_v34, %v3759_v26  ;;  %v1358_v34 = vcvt.s32.f32 %v1356_v48 }
 0x28c   : > { %v3763_v45 = vpop.xlane.xlu1 %1584  ;;  %v1603_v7 = vsel %vm1602_vm15, %v1598_v50, inf  ;;  %v1406_v50 = vcvt.s32.f32 %v1404_v23  ;;  %v1851_v23 = vld [vmem:[%s3591_s30] sm:$0xff] }
 0x28d   : > { %1604 = vmin.xlane.f32.xlu0 %v1603_v7  ;;  %vm1586_vm4 = vcmp.eq.f32.partialorder %v3413_v54, %v3763_v45  ;;  %v1612_v54 = vand.u32 65535, %v3488_v20  ;;  %v1660_v7 = vand.u32 65535, %v3531_v8 }
 0x28e   : > { %v1587_v60 = vsel %vm1586_vm4, %v1582_v22, inf }
 0x28f   : > { %1588 = vmin.xlane.f32.xlu1 %v1587_v60  ;;  %v1614_v44 = vcvt.s32.f32 %v1612_v54  ;;  %v1662_v48 = vcvt.s32.f32 %v1660_v7 }
 0x290   : > { %v3769_v47 = vpop.xlane.xlu0 %1376  ;;  %v3771_v51 = vpop.xlane.xlu1 %1360 }
 0x291   : > { %vm1378_vm10 = vcmp.eq.f32.partialorder %v3459_v43, %v3769_v47  ;;  %vm1362_vm12 = vcmp.eq.f32.partialorder %v3461_v59, %v3771_v51  ;;  %v1388_v59 = vand.u32 65535, %v3529_v32  ;;  %v1644_v32 = vand.u32 65535, %v3546_v18 }
 0x292   : > { %v1379_v17 = vsel %vm1378_vm10, %v1374_v40, inf  ;;  %v1363_v25 = vsel %vm1362_vm12, %v1358_v34, inf  ;;  %v1420_v40 = vand.u32 65535, %v3566_v27  ;;  %v1678_v27 = vcvt.s32.f32 %v1676_v38 }
 0x293   : > { %1380 = vmin.xlane.f32.xlu0 %v1379_v17  ;;  %1364 = vmin.xlane.f32.xlu1 %v1363_v25  ;;  %v1390_v22 = vcvt.s32.f32 %v1388_v59  ;;  %v1646_v60 = vcvt.s32.f32 %v1644_v32  ;;  %v1191_v25 = vcvt.f32.s32 %v3658_v24  ;;  %v4297_v59 = vld [vmem:[#allocation13_spill] sm:$0xff]  ;;  %v1223_v24 = vcvt.f32.s32 %v3669_v16  ;;  %v4299_v32 = vld [vmem:[#allocation18_spill] sm:$0xff] }
 0x294   : > { %v3779_v46 = vpop.xlane.xlu0 %1632  ;;  %v1422_v34 = vcvt.s32.f32 %v1420_v40 }
 0x295   : > { %vm1634_vm11 = vcmp.eq.f32.partialorder %v3503_v49, %v3779_v46  ;;  %v1192_v35 = vshll.u32 %v1191_v25, 16  ;;  %v4302_v25 = vld [vmem:[#allocation23_spill] sm:$0xff] }
 0x296   : > { %v3784_v6 = vpop.xlane.xlu1 %1616  ;;  %v1635_v43 = vsel %vm1634_vm11, %v1630_v62, inf }
 0x297   : > { %1636 = vmin.xlane.f32.xlu0 %v1635_v43  ;;  %vm1618_vm5 = vcmp.eq.f32.partialorder %v3526_v36, %v3784_v6 }
 0x298   : > { %v1619_v20 = vsel %vm1618_vm5, %v1614_v44, inf  ;;  %v3789_v39 = vpop.xlane.xlu0 %1408  ;;  %v4296_v44 = vld [vmem:[#allocation14_spill] sm:$0xff] }
 0x299   : > { %1620 = vmin.xlane.f32.xlu1 %v1619_v20  ;;  %vm1410_vm1 = vcmp.eq.f32.partialorder %v3542_v0, %v3789_v39  ;;  %vm4298_vm9 = vcmp.gt.f32.partialorder %v4296_v44, %v4297_v59 }
 0x29a   : > { %v3794_v12 = vpop.xlane.xlu1 %1392  ;;  %v1411_v49 = vsel %vm1410_vm1, %v1406_v50, inf }
 0x29b   : > { %1412 = vmin.xlane.f32.xlu0 %v1411_v49  ;;  %vm1394_vm8 = vcmp.eq.f32.partialorder %v3561_v19, %v3794_v12  ;;  %v1867_v49 = vld [vmem:[%s3591_s30 + $0x80] sm:$0xff] }
 0x29c   : > { %v1395_v36 = vsel %vm1394_vm8, %v1390_v22, inf  ;;  %v3799_v28 = vpop.xlane.xlu0 %1664 }
 0x29d   : > { %1396 = vmin.xlane.f32.xlu1 %v1395_v36  ;;  %vm1666_vm2 = vcmp.eq.f32.partialorder %v3563_v57, %v3799_v28  ;;  %v4300_v36 = vld [vmem:[#allocation17_spill] sm:$0xff] }
 0x29e   : > { %v3803_v8 = vpop.xlane.xlu1 %1648  ;;  %v1667_v0 = vsel %vm1666_vm2, %v1662_v48, inf  ;;  %vm4301_vm15 = vcmp.gt.f32.partialorder %v4299_v32, %v4300_v36  ;;  %v1207_v48 = vcvt.f32.s32 %v3673_v13  ;;  %v1511_v36 = vcvt.f32.s32 %v3699_v4  ;;  %v1855_v4 = vld [vmem:[%s3591_s30 + $0x20] sm:$0xff] }
 0x29f   : > { %1668 = vmin.xlane.f32.xlu0 %v1667_v0  ;;  %vm1650_vm14 = vcmp.eq.f32.partialorder %v3574_v31, %v3803_v8 }
 0x2a0   : > { %v1651_v18 = vsel %vm1650_vm14, %v1646_v60, inf  ;;  %v1224_v60 = vshll.u32 %v1223_v24, 16  ;;  %v1208_v16 = vshll.u32 %v1207_v48, 16  ;;  %v1868_v24 = vld [vmem:[%s3591_s30 + $0x88] sm:$0xff] }
 0x2a1   : > { %1652 = vmin.xlane.f32.xlu1 %v1651_v18  ;;  %v1853_v18 = vld [vmem:[%s3591_s30 + $0x10] sm:$0xff] }
 0x2a2   : > { %v3808_v19 = vpop.xlane.xlu1 %1424 }
 0x2a3   : > { %vm1426_vm3 = vcmp.eq.f32.partialorder %v3580_v58, %v3808_v19  ;;  %v1447_v58 = vcvt.f32.s32 %v3663_v53 }
 0x2a4   : > { %v1427_v57 = vsel %vm1426_vm3, %v1422_v34, inf  ;;  %v1479_v34 = vcvt.f32.s32 %v3679_v42  ;;  %v1255_v42 = vcvt.f32.s32 %v3689_v33 }
 0x2a5   : > { %1428 = vmin.xlane.f32.xlu1 %v1427_v57  ;;  %v1448_v7 = vshll.u32 %v1447_v58, 16 }
 0x2a6   : > { %v3813_v17 = vpop.xlane.xlu1 %1680  ;;  %v1480_v58 = vshll.u32 %v1479_v34, 16  ;;  %v4312_v34 = vld [vmem:[#allocation15_spill] sm:$0xff] }
 0x2a7   : > { %vm1682_vm13 = vcmp.eq.f32.partialorder %v3584_v10, %v3813_v17 }
 0x2a8   : > { %v1683_v31 = vsel %vm1682_vm13, %v1678_v27, inf  ;;  %v1463_v27 = vcvt.f32.s32 %v3681_v2  ;;  %v4305_v2 = vld [vmem:[#allocation22_spill] sm:$0xff] }
 0x2a9   : > { %1684 = vmin.xlane.f32.xlu1 %v1683_v31 }
 0x2aa   : > { %v1464_v59 = vshll.u32 %v1463_v27, 16  ;;  %v1854_v27 = vld [vmem:[%s3591_s30 + $0x18] sm:$0xff] }
 0x2e1   : > { %v1189_v54 = vpop.xlane.xlu0 %1188 }
 0x2e2   : > { %v1190_v62 = vcvt.f32.s32 %v1189_v54  ;;  %v4303_v54 = vld [vmem:[#allocation21_spill] sm:$0xff] }
 0x2e3   : > { %vm4304_vm4 = vcmp.gt.f32.partialorder %v4302_v25, %v4303_v54 }
 0x2e4   : > { %v1193_v43 = vadd.s32 %v1192_v35, %v1190_v62  ;;  %v1852_v35 = vld [vmem:[%s3591_s30 + $0x8] sm:$0xff] }
 0x2e6   : > { %v1883_v20 = vsel %vm4298_vm9, %v1193_v43, %v1851_v23  ;;  %v1445_v50 = vpop.xlane.xlu0 %1444  ;;  %v1239_v23 = vcvt.f32.s32 %v3691_v29  ;;  %v1256_v29 = vshll.u32 %v1255_v42, 16  ;;  %v4315_v42 = vld [vmem:[#allocation30_spill] sm:$0xff] }
 0x2e7   : > { %1915 = vst.msk [vmem:[%s3591_s30] sm:$0xff] %vm291_vm0, %v1883_v20  ;;  %v1446_v10 = vcvt.f32.s32 %v1445_v50  ;;  %v4306_v20 = vld [vmem:[#allocation20_spill] sm:$0xff] }
 0x2e8   : > { %vm4307_vm10 = vcmp.gt.f32.partialorder %v4305_v2, %v4306_v20  ;;  %v1240_v32 = vshll.u32 %v1239_v23, 16 }
 0x2e9   : > { %v1449_v22 = vadd.s32 %v1448_v7, %v1446_v10 }
 0x2eb   : > { %v1899_v53 = vsel %vm4301_vm15, %v1449_v22, %v1867_v49  ;;  %v1869_v49 = vld [vmem:[%s3591_s30 + $0x90] sm:$0xff] }
 0x2ec   : > { %1931 = vst.msk [vmem:[%s3591_s30 + $0x80] sm:$0xff] %vm291_vm0, %v1899_v53  ;;  %v1221_v0 = vpop.xlane.xlu0 %1220 }
 0x2ed   : > { %v1222_v40 = vcvt.f32.s32 %v1221_v0  ;;  %v4308_v0 = vld [vmem:[#allocation27_spill] sm:$0xff] }
 0x2ee   : > { %v1205_v57 = vpop.xlane.xlu1 %1204 }
 0x2ef   : > { %v1225_v38 = vadd.s32 %v1224_v60, %v1222_v40  ;;  %v1206_v31 = vcvt.f32.s32 %v1205_v57  ;;  %v4309_v60 = vld [vmem:[#allocation25_spill] sm:$0xff] }
 0x2f0   : > { %vm4310_vm12 = vcmp.gt.f32.partialorder %v4308_v0, %v4309_v60  ;;  %v1543_v0 = vcvt.f32.s32 %v3719_v30  ;;  %v4323_v60 = vld [vmem:[#allocation31_spill] sm:$0xff]  ;;  %v1856_v30 = vld [vmem:[%s3591_s30 + $0x28] sm:$0xff] }
 0x2f1   : > { %v1885_v13 = vsel %vm4304_vm4, %v1225_v38, %v1853_v18  ;;  %v1209_v62 = vadd.s32 %v1208_v16, %v1206_v31  ;;  %v4311_v18 = vld [vmem:[#allocation16_spill] sm:$0xff]  ;;  %v1495_v31 = vcvt.f32.s32 %v3704_v1  ;;  %v1871_v1 = vld [vmem:[%s3591_s30 + $0xa0] sm:$0xff] }
 0x2f2   : > { %1917 = vst.msk [vmem:[%s3591_s30 + $0x10] sm:$0xff] %vm291_vm0, %v1885_v13  ;;  %v1477_v43 = vpop.xlane.xlu0 %1476  ;;  %v1461_v44 = vpop.xlane.xlu1 %1460  ;;  %vm4313_vm11 = vcmp.gt.f32.partialorder %v4311_v18, %v4312_v34  ;;  %v1512_v13 = vshll.u32 %v1511_v36, 16 }
 0x2f3   : > { %v1884_v50 = vsel %vm4307_vm10, %v1209_v62, %v1852_v35  ;;  %v1478_v7 = vcvt.f32.s32 %v1477_v43  ;;  %v1462_v10 = vcvt.f32.s32 %v1461_v44  ;;  %v1287_v62 = vcvt.f32.s32 %v3709_v3  ;;  %v4317_v43 = vld [vmem:[#allocation28_spill] sm:$0xff]  ;;  %v4318_v44 = vld [vmem:[#allocation26_spill] sm:$0xff] }
 0x2f4   : > { %1916 = vst.msk [vmem:[%s3591_s30 + $0x8] sm:$0xff] %vm291_vm0, %v1884_v50  ;;  %vm4319_vm1 = vcmp.gt.f32.partialorder %v4317_v43, %v4318_v44  ;;  %v1496_v50 = vshll.u32 %v1495_v31, 16  ;;  %v1873_v43 = vld [vmem:[%s3591_s30 + $0xb0] sm:$0xff] }
 0x2f5   : > { %v1481_v33 = vadd.s32 %v1480_v58, %v1478_v7  ;;  %v1465_v22 = vadd.s32 %v1464_v59, %v1462_v10  ;;  %v4314_v58 = vld [vmem:[#allocation32_spill] sm:$0xff]  ;;  %v1271_v10 = vcvt.f32.s32 %v3714_v37 }
 0x2f6   : > { %v1253_v53 = vpop.xlane.xlu0 %1252  ;;  %v1237_v48 = vpop.xlane.xlu1 %1236  ;;  %vm4316_vm5 = vcmp.gt.f32.partialorder %v4314_v58, %v4315_v42  ;;  %v4330_v42 = vld [vmem:[#allocation34_spill] sm:$0xff] }
 0x2f7   : > { %v1901_v40 = vsel %vm4310_vm12, %v1481_v33, %v1869_v49  ;;  %v1900_v38 = vsel %vm4313_vm11, %v1465_v22, %v1868_v24  ;;  %v1254_v57 = vcvt.f32.s32 %v1253_v53  ;;  %v1238_v16 = vcvt.f32.s32 %v1237_v48  ;;  %v1870_v49 = vld [vmem:[%s3591_s30 + $0x98] sm:$0xff]  ;;  %v4320_v22 = vld [vmem:[#allocation35_spill] sm:$0xff]  ;;  %v1857_v48 = vld [vmem:[%s3591_s30 + $0x30] sm:$0xff] }
 0x2f8   : > { %1933 = vst.msk [vmem:[%s3591_s30 + $0x90] sm:$0xff] %vm291_vm0, %v1901_v40  ;;  %1932 = vst.msk [vmem:[%s3591_s30 + $0x88] sm:$0xff] %vm291_vm0, %v1900_v38  ;;  %v1288_v33 = vshll.u32 %v1287_v62, 16  ;;  %v4324_v40 = vld [vmem:[#allocation29_spill] sm:$0xff]  ;;  %v1272_v38 = vshll.u32 %v1271_v10, 16 }
 0x2f9   : > { %v1257_v25 = vadd.s32 %v1256_v29, %v1254_v57  ;;  %v1241_v54 = vadd.s32 %v1240_v32, %v1238_v16  ;;  %v4321_v29 = vld [vmem:[#allocation33_spill] sm:$0xff]  ;;  %vm4325_vm2 = vcmp.gt.f32.partialorder %v4323_v60, %v4324_v40  ;;  %v1527_v57 = vcvt.f32.s32 %v3721_v14  ;;  %v4329_v14 = vld [vmem:[#allocation36_spill] sm:$0xff]  ;;  %v1858_v40 = vld [vmem:[%s3591_s30 + $0x38] sm:$0xff] }
 0x2fa   : > { %v1509_v35 = vpop.xlane.xlu0 %1508  ;;  %vm4322_vm8 = vcmp.gt.f32.partialorder %v4320_v22, %v4321_v29  ;;  %vm4331_vm3 = vcmp.gt.f32.partialorder %v4329_v14, %v4330_v42  ;;  %v1575_v29 = vcvt.f32.s32 %v3739_v41  ;;  %v4339_v41 = vld [vmem:[#allocation50_spill] sm:$0xff]  ;;  %v4345_v14 = vld [vmem:[#allocation53_spill] sm:$0xff] }
 0x2fb   : > { %v1887_v23 = vsel %vm4316_vm5, %v1257_v25, %v1855_v4  ;;  %v1886_v59 = vsel %vm4319_vm1, %v1241_v54, %v1854_v27  ;;  %v1510_v2 = vcvt.f32.s32 %v1509_v35  ;;  %v4326_v4 = vld [vmem:[#allocation43_spill] sm:$0xff]  ;;  %v4327_v27 = vld [vmem:[#allocation40_spill] sm:$0xff]  ;;  %v1528_v58 = vshll.u32 %v1527_v57, 16 }
 0x2fc   : > { %1919 = vst.msk [vmem:[%s3591_s30 + $0x20] sm:$0xff] %vm291_vm0, %v1887_v23  ;;  %1918 = vst.msk [vmem:[%s3591_s30 + $0x18] sm:$0xff] %vm291_vm0, %v1886_v59  ;;  %vm4328_vm14 = vcmp.gt.f32.partialorder %v4326_v4, %v4327_v27  ;;  %v1319_v59 = vcvt.f32.s32 %v3729_v61  ;;  %v1351_v4 = vcvt.f32.s32 %v3749_v5  ;;  %v1335_v27 = vcvt.f32.s32 %v3751_v56  ;;  %v4344_v5 = vld [vmem:[#allocation54_spill] sm:$0xff] }
 0x2fd   : > { %v1493_v20 = vpop.xlane.xlu1 %1492  ;;  %v1513_v7 = vadd.s32 %v1512_v13, %v1510_v2  ;;  %v1544_v13 = vshll.u32 %v1543_v0, 16  ;;  %v1559_v0 = vcvt.f32.s32 %v3743_v15  ;;  %v4342_v15 = vld [vmem:[#allocation46_spill] sm:$0xff]  ;;  %vm4346_vm10 = vcmp.gt.f32.partialorder %v4344_v5, %v4345_v14 }
 0x2fe   : > { %v1494_v3 = vcvt.f32.s32 %v1493_v20  ;;  %v1285_v24 = vpop.xlane.xlu0 %1284  ;;  %v1303_v20 = vcvt.f32.s32 %v3732_v55  ;;  %v1320_v22 = vshll.u32 %v1319_v59, 16  ;;  %v1862_v5 = vld [vmem:[%s3591_s30 + $0x58] sm:$0xff]  ;;  %v1623_v14 = vcvt.f32.s32 %v3784_v6  ;;  %v1879_v6 = vld [vmem:[%s3591_s30 + $0xe0] sm:$0xff] }
 0x2ff   : > { %v1903_v32 = vsel %vm4322_vm8, %v1513_v7, %v1871_v1  ;;  %v1286_v53 = vcvt.f32.s32 %v1285_v24  ;;  %v1872_v1 = vld [vmem:[%s3591_s30 + $0xa8] sm:$0xff]  ;;  %v4332_v7 = vld [vmem:[#allocation47_spill] sm:$0xff] }
 0x300   : > { %v1497_v36 = vadd.s32 %v1496_v50, %v1494_v3  ;;  %1935 = vst.msk [vmem:[%s3591_s30 + $0xa0] sm:$0xff] %vm291_vm0, %v1903_v32  ;;  %v4333_v3 = vld [vmem:[#allocation45_spill] sm:$0xff]  ;;  %v4336_v24 = vld [vmem:[#allocation39_spill] sm:$0xff] }
 0x301   : > { %v1289_v18 = vadd.s32 %v1288_v33, %v1286_v53  ;;  %v1269_v34 = vpop.xlane.xlu1 %1268  ;;  %vm4334_vm13 = vcmp.gt.f32.partialorder %v4332_v7, %v4333_v3  ;;  %v1859_v53 = vld [vmem:[%s3591_s30 + $0x40] sm:$0xff] }
 0x302   : > { %v1902_v37 = vsel %vm4325_vm2, %v1497_v36, %v1870_v49  ;;  %v1270_v16 = vcvt.f32.s32 %v1269_v34  ;;  %v4335_v49 = vld [vmem:[#allocation42_spill] sm:$0xff]  ;;  %v1304_v36 = vshll.u32 %v1303_v20, 16  ;;  %v1576_v34 = vshll.u32 %v1575_v29, 16  ;;  %v4348_v20 = vld [vmem:[#allocation49_spill] sm:$0xff] }
 0x303   : > { %1934 = vst.msk [vmem:[%s3591_s30 + $0x98] sm:$0xff] %vm291_vm0, %v1902_v37  ;;  %v1889_v31 = vsel %vm4328_vm14, %v1289_v18, %v1857_v48  ;;  %vm4337_vm9 = vcmp.gt.f32.partialorder %v4335_v49, %v4336_v24  ;;  %v1860_v49 = vld [vmem:[%s3591_s30 + $0x48] sm:$0xff]  ;;  %v1591_v24 = vcvt.f32.s32 %v3763_v45  ;;  %v4350_v29 = vld [vmem:[#allocation61_spill] sm:$0xff] }
 0x304   : > { %1921 = vst.msk [vmem:[%s3591_s30 + $0x30] sm:$0xff] %vm291_vm0, %v1889_v31  ;;  %v1273_v25 = vadd.s32 %v1272_v38, %v1270_v16  ;;  %v1541_v54 = vpop.xlane.xlu0 %1540  ;;  %v4338_v38 = vld [vmem:[#allocation52_spill] sm:$0xff]  ;;  %v1877_v45 = vld [vmem:[%s3591_s30 + $0xd0] sm:$0xff] }
 0x305   : > { %v1542_v35 = vcvt.f32.s32 %v1541_v54  ;;  %v1525_v62 = vpop.xlane.xlu1 %1524  ;;  %vm4340_vm15 = vcmp.gt.f32.partialorder %v4338_v38, %v4339_v41  ;;  %v4341_v31 = vld [vmem:[#allocation48_spill] sm:$0xff] }
 0x306   : > { %v1888_v23 = vsel %vm4331_vm3, %v1273_v25, %v1856_v30  ;;  %v1526_v44 = vcvt.f32.s32 %v1525_v62  ;;  %vm4343_vm4 = vcmp.gt.f32.partialorder %v4341_v31, %v4342_v15  ;;  %v1875_v25 = vld [vmem:[%s3591_s30 + $0xc0] sm:$0xff]  ;;  %v1876_v41 = vld [vmem:[%s3591_s30 + $0xc8] sm:$0xff] }
 0x307   : > { %1920 = vst.msk [vmem:[%s3591_s30 + $0x28] sm:$0xff] %vm291_vm0, %v1888_v23  ;;  %v1545_v2 = vadd.s32 %v1544_v13, %v1542_v35  ;;  %v1560_v13 = vshll.u32 %v1559_v0, 16  ;;  %v1352_v23 = vshll.u32 %v1351_v4, 16 }
 0x308   : > { %v1529_v50 = vadd.s32 %v1528_v58, %v1526_v44  ;;  %v1874_v58 = vld [vmem:[%s3591_s30 + $0xb8] sm:$0xff] }
 0x309   : > { %v1905_v10 = vsel %vm4334_vm13, %v1545_v2, %v1873_v43  ;;  %v1336_v43 = vshll.u32 %v1335_v27, 16  ;;  %v1607_v2 = vcvt.f32.s32 %v3759_v26 }
 0x30a   : > { %1937 = vst.msk [vmem:[%s3591_s30 + $0xb0] sm:$0xff] %vm291_vm0, %v1905_v10  ;;  %v1904_v33 = vsel %vm4337_vm9, %v1529_v50, %v1872_v1  ;;  %v1317_v61 = vpop.xlane.xlu0 %1316  ;;  %v4347_v1 = vld [vmem:[#allocation51_spill] sm:$0xff]  ;;  %v1861_v10 = vld [vmem:[%s3591_s30 + $0x50] sm:$0xff] }
 0x30b   : > { %1936 = vst.msk [vmem:[%s3591_s30 + $0xa8] sm:$0xff] %vm291_vm0, %v1904_v33  ;;  %v1318_v55 = vcvt.f32.s32 %v1317_v61  ;;  %v1301_v32 = vpop.xlane.xlu1 %1300  ;;  %vm4349_vm12 = vcmp.gt.f32.partialorder %v4347_v1, %v4348_v20  ;;  %v1608_v26 = vshll.u32 %v1607_v2, 16  ;;  %v4365_v1 = vld [vmem:[#allocation64_spill] sm:$0xff]  ;;  %v4366_v20 = vld [vmem:[#allocation65_spill] sm:$0xff] }
 0x30c   : > { %v1302_v48 = vcvt.f32.s32 %v1301_v32  ;;  %vm4367_vm14 = vcmp.gt.f32.partialorder %v4365_v1, %v4366_v20 }
 0x30d   : > { %v1321_v60 = vadd.s32 %v1320_v22, %v1318_v55  ;;  %v4351_v55 = vld [vmem:[#allocation60_spill] sm:$0xff] }
 0x30e   : > { %v1305_v37 = vadd.s32 %v1304_v36, %v1302_v48  ;;  %vm4352_vm11 = vcmp.gt.f32.partialorder %v4350_v29, %v4351_v55  ;;  %v4353_v36 = vld [vmem:[#allocation56_spill] sm:$0xff] }
 0x30f   : > { %v1573_v18 = vpop.xlane.xlu0 %1572  ;;  %v1891_v57 = vsel %vm4340_vm15, %v1321_v60, %v1859_v53  ;;  %v4354_v53 = vld [vmem:[#allocation55_spill] sm:$0xff]  ;;  %v1383_v60 = vcvt.f32.s32 %v3769_v47  ;;  %v4368_v29 = vld [vmem:[#allocation72_spill] sm:$0xff] }
 0x310   : > { %v1574_v16 = vcvt.f32.s32 %v1573_v18  ;;  %1923 = vst.msk [vmem:[%s3591_s30 + $0x40] sm:$0xff] %vm291_vm0, %v1891_v57  ;;  %v1890_v30 = vsel %vm4343_vm4, %v1305_v37, %v1858_v40  ;;  %v1557_v54 = vpop.xlane.xlu1 %1556  ;;  %vm4355_vm5 = vcmp.gt.f32.partialorder %v4353_v36, %v4354_v53  ;;  %v1367_v40 = vcvt.f32.s32 %v3771_v51  ;;  %v4356_v57 = vld [vmem:[#allocation63_spill] sm:$0xff] }
 0x311   : > { %1922 = vst.msk [vmem:[%s3591_s30 + $0x38] sm:$0xff] %vm291_vm0, %v1890_v30  ;;  %v1558_v62 = vcvt.f32.s32 %v1557_v54  ;;  %v1592_v18 = vshll.u32 %v1591_v24, 16  ;;  %v1384_v27 = vshll.u32 %v1383_v60, 16  ;;  %v1639_v30 = vcvt.f32.s32 %v3779_v46  ;;  %v4360_v54 = vld [vmem:[#allocation58_spill] sm:$0xff] }
 0x312   : > { %v1577_v35 = vadd.s32 %v1576_v34, %v1574_v16  ;;  %v4357_v16 = vld [vmem:[#allocation62_spill] sm:$0xff]  ;;  %v1368_v51 = vshll.u32 %v1367_v40, 16  ;;  %v1415_v46 = vcvt.f32.s32 %v3789_v39  ;;  %v1624_v39 = vshll.u32 %v1623_v14, 16 }
 0x313   : > { %v1561_v42 = vadd.s32 %v1560_v13, %v1558_v62  ;;  %vm4358_vm1 = vcmp.gt.f32.partialorder %v4356_v57, %v4357_v16  ;;  %vm4369_vm3 = vcmp.gt.f32.partialorder %v3251_v52, %v4368_v29  ;;  %v1655_v53 = vcvt.f32.s32 %v3803_v8  ;;  %v4370_v60 = vld [vmem:[#allocation66_spill] sm:$0xff]  ;;  %v1864_v52 = vld [vmem:[%s3591_s30 + $0x68] sm:$0xff] }
 0x314   : > { %v1907_v56 = vsel %vm4346_vm10, %v1577_v35, %v1875_v25  ;;  %v4359_v25 = vld [vmem:[#allocation59_spill] sm:$0xff]  ;;  %vm4371_vm13 = vcmp.gt.f32.partialorder %v3201_v63, %v4370_v60  ;;  %v1881_v63 = vld [vmem:[%s3591_s30 + $0xf0] sm:$0xff] }
 0x315   : > { %1939 = vst.msk [vmem:[%s3591_s30 + $0xc0] sm:$0xff] %vm291_vm0, %v1907_v56  ;;  %v1349_v44 = vpop.xlane.xlu0 %1348  ;;  %v1333_v59 = vpop.xlane.xlu1 %1332  ;;  %v1906_v50 = vsel %vm4349_vm12, %v1561_v42, %v1874_v58  ;;  %vm4361_vm8 = vcmp.gt.f32.partialorder %v4359_v25, %v4360_v54  ;;  %v1863_v58 = vld [vmem:[%s3591_s30 + $0x60] sm:$0xff]  ;;  %v1656_v57 = vshll.u32 %v1655_v53, 16 }
 0x316   : > { %v1350_v7 = vcvt.f32.s32 %v1349_v44  ;;  %v1334_v3 = vcvt.f32.s32 %v1333_v59  ;;  %1938 = vst.msk [vmem:[%s3591_s30 + $0xb8] sm:$0xff] %vm291_vm0, %v1906_v50  ;;  %v4362_v44 = vld [vmem:[#allocation67_spill] sm:$0xff]  ;;  %v4363_v59 = vld [vmem:[#allocation69_spill] sm:$0xff] }
 0x317   : > { %vm4364_vm2 = vcmp.gt.f32.partialorder %v4362_v44, %v4363_v59  ;;  %v1882_v44 = vld [vmem:[%s3591_s30 + $0xf8] sm:$0xff] }
 0x318   : > { %v1353_v33 = vadd.s32 %v1352_v23, %v1350_v7  ;;  %v1337_v61 = vadd.s32 %v1336_v43, %v1334_v3  ;;  %v1640_v43 = vshll.u32 %v1639_v30, 16 }
 0x31a   : > { %v1605_v22 = vpop.xlane.xlu0 %1604  ;;  %v1893_v32 = vsel %vm4352_vm11, %v1353_v33, %v1861_v10  ;;  %v1892_v48 = vsel %vm4355_vm5, %v1337_v61, %v1860_v49  ;;  %v1399_v10 = vcvt.f32.s32 %v3794_v12  ;;  %v1416_v33 = vshll.u32 %v1415_v46, 16  ;;  %v1878_v61 = vld [vmem:[%s3591_s30 + $0xd8] sm:$0xff]  ;;  %v1865_v12 = vld [vmem:[%s3591_s30 + $0x70] sm:$0xff] }
 0x31b   : > { %v1606_v0 = vcvt.f32.s32 %v1605_v22  ;;  %1925 = vst.msk [vmem:[%s3591_s30 + $0x50] sm:$0xff] %vm291_vm0, %v1893_v32  ;;  %1924 = vst.msk [vmem:[%s3591_s30 + $0x48] sm:$0xff] %vm291_vm0, %v1892_v48 }
 0x31c   : > { %v1589_v37 = vpop.xlane.xlu1 %1588 }
 0x31d   : > { %v1609_v34 = vadd.s32 %v1608_v26, %v1606_v0  ;;  %v1590_v38 = vcvt.f32.s32 %v1589_v37  ;;  %v1671_v26 = vcvt.f32.s32 %v3799_v28  ;;  %v1400_v0 = vshll.u32 %v1399_v10, 16 }
 0x31f   : > { %v1909_v4 = vsel %vm4358_vm1, %v1609_v34, %v1877_v45  ;;  %v1593_v47 = vadd.s32 %v1592_v18, %v1590_v38  ;;  %v1672_v8 = vshll.u32 %v1671_v26, 16  ;;  %v4372_v18 = vld [vmem:[#allocation76_spill] sm:$0xff] }
 0x320   : > { %1941 = vst.msk [vmem:[%s3591_s30 + $0xd0] sm:$0xff] %vm291_vm0, %v1909_v4  ;;  %v1381_v31 = vpop.xlane.xlu0 %1380  ;;  %v1365_v15 = vpop.xlane.xlu1 %1364  ;;  %vm4373_vm9 = vcmp.gt.f32.partialorder %v3302_v9, %v4372_v18  ;;  %v1431_v4 = vcvt.f32.s32 %v3808_v19  ;;  %v1880_v9 = vld [vmem:[%s3591_s30 + $0xe8] sm:$0xff] }
 0x321   : > { %v1908_v13 = vsel %vm4361_vm8, %v1593_v47, %v1876_v41  ;;  %v1382_v35 = vcvt.f32.s32 %v1381_v31  ;;  %v1366_v62 = vcvt.f32.s32 %v1365_v15  ;;  %v4374_v47 = vld [vmem:[#allocation73_spill] sm:$0xff]  ;;  %v4376_v15 = vld [vmem:[#allocation11_spill] sm:$0xff] }
 0x322   : > { %1940 = vst.msk [vmem:[%s3591_s30 + $0xc8] sm:$0xff] %vm291_vm0, %v1908_v13  ;;  %vm4375_vm15 = vcmp.gt.f32.partialorder %v3253_v11, %v4374_v47  ;;  %vm4377_vm4 = vcmp.gt.f32.partialorder %v3379_v21, %v4376_v15  ;;  %v1432_v19 = vshll.u32 %v1431_v4, 16  ;;  %v1687_v11 = vcvt.f32.s32 %v3813_v17  ;;  %v4378_v13 = vld [vmem:[#allocation75_spill] sm:$0xff] }
 0x323   : > { %v1385_v56 = vadd.s32 %v1384_v27, %v1382_v35  ;;  %v1369_v42 = vadd.s32 %v1368_v51, %v1366_v62  ;;  %v4379_v35 = vld [vmem:[#allocation8_spill] sm:$0xff] }
 0x324   : > { %v1637_v23 = vpop.xlane.xlu0 %1636  ;;  %vm4380_vm10 = vcmp.gt.f32.partialorder %v4378_v13, %v4379_v35 }
 0x325   : > { %v1895_v2 = vsel %vm4364_vm2, %v1385_v56, %v1863_v58  ;;  %v1894_v50 = vsel %vm4367_vm14, %v1369_v42, %v1862_v5  ;;  %v1638_v7 = vcvt.f32.s32 %v1637_v23  ;;  %v1866_v5 = vld [vmem:[%s3591_s30 + $0x78] sm:$0xff]  ;;  %v1688_v56 = vshll.u32 %v1687_v11, 16 }
 0x326   : > { %1927 = vst.msk [vmem:[%s3591_s30 + $0x60] sm:$0xff] %vm291_vm0, %v1895_v2  ;;  %1926 = vst.msk [vmem:[%s3591_s30 + $0x58] sm:$0xff] %vm291_vm0, %v1894_v50  ;;  %v1621_v3 = vpop.xlane.xlu1 %1620 }
 0x327   : > { %v1641_v49 = vadd.s32 %v1640_v43, %v1638_v7  ;;  %v1622_v24 = vcvt.f32.s32 %v1621_v3 }
 0x328   : > { %v1413_v22 = vpop.xlane.xlu0 %1412 }
 0x329   : > { %v1911_v55 = vsel %vm4369_vm3, %v1641_v49, %v1879_v6  ;;  %v1625_v32 = vadd.s32 %v1624_v39, %v1622_v24  ;;  %v1414_v36 = vcvt.f32.s32 %v1413_v22 }
 0x32a   : > { %1943 = vst.msk [vmem:[%s3591_s30 + $0xe0] sm:$0xff] %vm291_vm0, %v1911_v55  ;;  %v1397_v48 = vpop.xlane.xlu1 %1396 }
 0x32b   : > { %v1910_v40 = vsel %vm4371_vm13, %v1625_v32, %v1878_v61  ;;  %v1417_v28 = vadd.s32 %v1416_v33, %v1414_v36  ;;  %v1398_v45 = vcvt.f32.s32 %v1397_v48 }
 0x32c   : > { %1942 = vst.msk [vmem:[%s3591_s30 + $0xd8] sm:$0xff] %vm291_vm0, %v1910_v40  ;;  %v1669_v37 = vpop.xlane.xlu0 %1668 }
 0x32d   : > { %v1897_v34 = vsel %vm4373_vm9, %v1417_v28, %v1865_v12  ;;  %v1401_v38 = vadd.s32 %v1400_v0, %v1398_v45  ;;  %v1670_v41 = vcvt.f32.s32 %v1669_v37 }
 0x32e   : > { %1929 = vst.msk [vmem:[%s3591_s30 + $0x70] sm:$0xff] %vm291_vm0, %v1897_v34  ;;  %v1653_v16 = vpop.xlane.xlu1 %1652 }
 0x32f   : > { %v1896_v27 = vsel %vm4375_vm15, %v1401_v38, %v1864_v52  ;;  %v1673_v51 = vadd.s32 %v1672_v8, %v1670_v41  ;;  %v1654_v31 = vcvt.f32.s32 %v1653_v16 }
 0x330   : > { %1928 = vst.msk [vmem:[%s3591_s30 + $0x68] sm:$0xff] %vm291_vm0, %v1896_v27 }
 0x331   : > { %v1913_v30 = vsel %vm4377_vm4, %v1673_v51, %v1881_v63  ;;  %v1657_v25 = vadd.s32 %v1656_v57, %v1654_v31 }
 0x332   : > { %1945 = vst.msk [vmem:[%s3591_s30 + $0xf0] sm:$0xff] %vm291_vm0, %v1913_v30  ;;  %v1429_v54 = vpop.xlane.xlu1 %1428 }
 0x333   : > { %v1912_v62 = vsel %vm4380_vm10, %v1657_v25, %v1880_v9  ;;  %v1430_v58 = vcvt.f32.s32 %v1429_v54 }
 0x334   : > { %1944 = vst.msk [vmem:[%s3591_s30 + $0xe8] sm:$0xff] %vm291_vm0, %v1912_v62 }
 0x335   : > { %v1433_v21 = vadd.s32 %v1432_v19, %v1430_v58 }
 0x336   : > { %v1685_v14 = vpop.xlane.xlu1 %1684 }
 0x337   : > { %v1898_v23 = vsel %vm1769_vm7, %v1433_v21, %v1866_v5  ;;  %v1686_v43 = vcvt.f32.s32 %v1685_v14 }
 0x338   : > { %1930 = vst.msk [vmem:[%s3591_s30 + $0x78] sm:$0xff] %vm291_vm0, %v1898_v23 }
 0x339   : > { %v1689_v17 = vadd.s32 %v1688_v56, %v1686_v43 }
 0x33b   : > { %v1914_v1 = vsel %vm1785_vm6, %v1689_v17, %v1882_v44 }
 0x33c   : > { %1946 = vst.msk [vmem:[%s3591_s30 + $0xf8] sm:$0xff] %vm291_vm0, %v1914_v1 }
 0x33d PF: > { %s13_s14 = sadd.s32 1, %s2263_s14   ;;  %s4385_s12 = smov %s2259_s13 }
 0x33e   : > { %p10_p5 = scmp.ge.s32.totalorder %s13_s14, 4   ;;  %s4386_s13 = smov %s4388_s15 }
 0x340   :  { %12 = sbr.rel (!%p10_p5) target bundleno = 2 (0x2), region = 72 }

</bundles_post_ra>
